<compile_context>
chip_gen: v6e
topology: v6e:2x2x1
jax: 0.10.0
libtpu: 0.0.40
codegen_flags: <defaults>
</compile_context>

<pallas_src>
import functools
import math

import jax
import jax.numpy as jnp
from jax import lax
from jax.experimental import pallas as pl
from jax.experimental.pallas import tpu as pltpu

# ---------------------------------------------------------------------------
# Model hyper-parameters (small, consistent with the module's constructor).
# z1_dims = z2_dims = 128 because the autoregressive feedback feeds the 128-wide
# linear_out output back into grucell_1/grucell_3 (as in the PyTorch module).
# ---------------------------------------------------------------------------
HIDDEN = 32          # hidden_dims
Z1 = 128             # z1_dims
Z2 = 128             # z2_dims
OUT_DIM = 128        # linear_out_0 / linear_out_1 width (fixed in the module)
N_STEP = 6
N_MIDDLE = 2
T_TOTAL = N_STEP + N_MIDDLE   # self.n_step = n_step + n_middle
N1 = 4               # teacher-forcing prefix length (static: determines output length)
N2 = 4               # unused by forward()
BATCH = 2

# Packed-slab static indices.
W_INIT, W_IH1 = 0, 1                                   # w_big planes   (256, 256)
W_HH1, W_FB, W_IH2, W_HH2, W_OUT = 0, 1, 2, 3, 4       # w_small planes (64, 256)
B_INIT, B_IH1, B_HH1, B_FB, B_IH2, B_HH2, B_OUT = range(7)   # bias rows (8, 256)


# ---------------------------------------------------------------------------
# Single fused kernel: merged rhythm + pitch decoders, fully unrolled in time.
# n1 / n_step are static Python ints (closed over with functools.partial).
# ---------------------------------------------------------------------------
def interp_kernel(n1, n_step,
                  ztf_ref, z8_ref, wbig_ref, wsmall_ref, bias_ref,
                  zp_out_ref, zr_out_ref):
    f32, bf16 = jnp.float32, jnp.bfloat16
    B = z8_ref.shape[0]
    H2 = 2 * HIDDEN              # merged hidden width: [rhythm(32) | pitch(32)]
    D = OUT_DIM

    def bias(k):
        # (1, 256) row read at the use site; broadcasts on add.
        return bias_ref[k:k + 1, :]

    def mm(x, k, ref):
        # Weight plane read at the use site (short live range); bf16 MXU operands,
        # f32 accumulation.  Gate math / hidden states stay f32 on the VPU/EUP.
        return jnp.dot(x.astype(bf16), ref[k], preferred_element_type=f32)

    def gru(gi, gh, h):
        # Merged gate layout: [:, 0:64]=r, [:, 64:128]=z, [:, 128:192]=n,
        # each gate ordered [rhythm(32) | pitch(32)] to match h.
        r = jax.nn.sigmoid(gi[:, :H2] + gh[:, :H2])
        z = jax.nn.sigmoid(gi[:, H2:2 * H2] + gh[:, H2:2 * H2])
        n = jnp.tanh(gi[:, 2 * H2:3 * H2] + r * gh[:, 2 * H2:3 * H2])
        return (1.0 - z) * n + z * h

    # ---- initial hidden state: [linear_init_0(zr8) | linear_init_1(zp8)] ----
    h0 = (mm(z8_ref[...], W_INIT, wbig_ref) + bias(B_INIT))[:, :H2]        # (B, 64) f32

    # ---- batched teacher-forced cell-1 input gates: one (n1*B,256)x(256,256) dot ----
    gi_tf = mm(ztf_ref[...], W_IH1, wbig_ref) + bias(B_IH1)                # (n1*B, 256)

    h1 = None
    outs = []
    # Fully unrolled: one basic block, so the serial recurrence, the folded feedback
    # gate and the off-critical-path linear_out matmuls interleave under the LLO
    # scheduler.
    for i in range(n_step):
        if i <= n1 - 1:
            gi = gi_tf[i * B:(i + 1) * B, :]
        else:
            # linear_out folded into the feedback gate:
            #   gi = out_{i-1} @ W_ih + b_ih = h1_{i-1} @ (W_out @ W_ih) + b_fb
            gi = mm(h1, W_FB, wsmall_ref) + bias(B_FB)
        gh = mm(h0, W_HH1, wsmall_ref) + bias(B_HH1)
        h0 = gru(gi, gh, h0)
        if i == 0:
            h1 = h0                         # "if i == 0: hx[1] = hx[0]" (trace-time peel)
        gi2 = mm(h0, W_IH2, wsmall_ref) + bias(B_IH2)
        gh2 = mm(h1, W_HH2, wsmall_ref) + bias(B_HH2)
        h1 = gru(gi2, gh2, h1)
        if i >= n1 - 1:
            # Only needed for the collected outputs; off the serial dependency chain.
            outs.append(mm(h1, W_OUT, wsmall_ref) + bias(B_OUT))           # (B, 256)

    # Single lane-dense store per output (each piece is a 128-lane-aligned slice of
    # the merged (B, 256) output); the wrapper splits the minor dim back to
    # (B, T_out, 128).
    zr_out_ref[...] = jnp.concatenate([o[:, :D] for o in outs], axis=-1)
    zp_out_ref[...] = jnp.concatenate([o[:, D:] for o in outs], axis=-1)


# ---------------------------------------------------------------------------
# Parameter initialization (deterministic, synthetic, PyTorch-style uniform).
# Weights stored transposed as (in_dim, out_dim); biases as (1, out_dim).
# ---------------------------------------------------------------------------
def init_params(key):
    state = {"key": key}

    def u(shape, fan_in):
        state["key"], sub = jax.random.split(state["key"])
        b = 1.0 / math.sqrt(fan_in)
        return jax.random.uniform(sub, shape, jnp.float32, -b, b)

    H = HIDDEN
    p = {}
    # linear_init_0 / linear_init_1
    p["w_init0"] = u((Z2, H), Z2); p["b_init0"] = u((1, H), Z2)
    p["w_init1"] = u((Z1, H), Z1); p["b_init1"] = u((1, H), Z1)
    # grucell_1 (z2 -> H), grucell_2 (H -> H)
    p["w_ih1"] = u((Z2, 3 * H), H); p["w_hh1"] = u((H, 3 * H), H)
    p["b_ih1"] = u((1, 3 * H), H);  p["b_hh1"] = u((1, 3 * H), H)
    p["w_ih2"] = u((H, 3 * H), H);  p["w_hh2"] = u((H, 3 * H), H)
    p["b_ih2"] = u((1, 3 * H), H);  p["b_hh2"] = u((1, 3 * H), H)
    # grucell_3 (z1 -> H), grucell_4 (H -> H)
    p["w_ih3"] = u((Z1, 3 * H), H); p["w_hh3"] = u((H, 3 * H), H)
    p["b_ih3"] = u((1, 3 * H), H);  p["b_hh3"] = u((1, 3 * H), H)
    p["w_ih4"] = u((H, 3 * H), H);  p["w_hh4"] = u((H, 3 * H), H)
    p["b_ih4"] = u((1, 3 * H), H);  p["b_hh4"] = u((1, 3 * H), H)
    # linear_out_0 / linear_out_1
    p["w_out0"] = u((H, OUT_DIM), H); p["b_out0"] = u((1, OUT_DIM), H)
    p["w_out1"] = u((H, OUT_DIM), H); p["b_out1"] = u((1, OUT_DIM), H)
    return p


# ---------------------------------------------------------------------------
# One-time packing: merge the two decoders' parameters into block-diagonal /
# gate-interleaved slabs, fold linear_out into the feedback gate, pad to 256
# lanes, cast weights to bf16.  Done once at init; the forward pass sees only
# 3 parameter slabs.
# ---------------------------------------------------------------------------
def pack_params(p):
    f32 = jnp.float32
    H = HIDDEN

    def merge_gate_w(wr, wp):
        # (kr,3H) + (kp,3H) -> (kr+kp, 6H); gates interleaved [r_r r_p z_r z_p n_r n_p]
        kr, kp = wr.shape[0], wp.shape[0]
        m = jnp.zeros((kr + kp, 6 * H), f32)
        for g in range(3):
            m = m.at[:kr, (2 * g) * H:(2 * g + 1) * H].set(wr[:, g * H:(g + 1) * H])
            m = m.at[kr:, (2 * g + 1) * H:(2 * g + 2) * H].set(wp[:, g * H:(g + 1) * H])
        return m

    def merge_gate_b(br, bp):
        m = jnp.zeros((1, 6 * H), f32)
        for g in range(3):
            m = m.at[:, (2 * g) * H:(2 * g + 1) * H].set(br[:, g * H:(g + 1) * H])
            m = m.at[:, (2 * g + 1) * H:(2 * g + 2) * H].set(bp[:, g * H:(g + 1) * H])
        return m

    def pad_cols(a, width=256):
        return jnp.pad(a, ((0, 0), (0, width - a.shape[1])))

    # Fold linear_out into the autoregressive feedback input gate (f32, once).
    wfb0 = p["w_out0"] @ p["w_ih1"]                       # (32, 96)
    wfb1 = p["w_out1"] @ p["w_ih3"]
    bfb0 = p["b_out0"] @ p["w_ih1"] + p["b_ih1"]          # (1, 96)
    bfb1 = p["b_out1"] @ p["w_ih3"] + p["b_ih3"]

    # Block-diagonal init / out projections.
    winit = jnp.zeros((2 * Z2, 2 * H), f32)
    winit = winit.at[:Z2, :H].set(p["w_init0"]).at[Z2:, H:].set(p["w_init1"])
    wout = jnp.zeros((2 * H, 2 * OUT_DIM), f32)
    wout = wout.at[:H, :OUT_DIM].set(p["w_out0"]).at[H:, OUT_DIM:].set(p["w_out1"])

    wih1_m = merge_gate_w(p["w_ih1"], p["w_ih3"])         # (256, 192)
    whh1_m = merge_gate_w(p["w_hh1"], p["w_hh3"])         # (64, 192)
    wfb_m = merge_gate_w(wfb0, wfb1)                      # (64, 192)
    wih2_m = merge_gate_w(p["w_ih2"], p["w_ih4"])         # (64, 192)
    whh2_m = merge_gate_w(p["w_hh2"], p["w_hh4"])         # (64, 192)

    w_big = jnp.stack([pad_cols(winit), pad_cols(wih1_m)]).astype(jnp.bfloat16)
    w_small = jnp.stack([pad_cols(whh1_m), pad_cols(wfb_m), pad_cols(wih2_m),
                         pad_cols(whh2_m), pad_cols(wout)]).astype(jnp.bfloat16)

    biases = jnp.concatenate([
        pad_cols(jnp.concatenate([p["b_init0"], p["b_init1"]], axis=-1)),   # B_INIT
        pad_cols(merge_gate_b(p["b_ih1"], p["b_ih3"])),                     # B_IH1
        pad_cols(merge_gate_b(p["b_hh1"], p["b_hh3"])),                     # B_HH1
        pad_cols(merge_gate_b(bfb0, bfb1)),                                 # B_FB
        pad_cols(merge_gate_b(p["b_ih2"], p["b_ih4"])),                     # B_IH2
        pad_cols(merge_gate_b(p["b_hh2"], p["b_hh4"])),                     # B_HH2
        jnp.concatenate([p["b_out0"], p["b_out1"]], axis=-1),               # B_OUT
        jnp.zeros((1, 256), f32),                                           # pad row
    ], axis=0)                                                              # (8, 256)

    return {"w_big": w_big, "w_small": w_small, "biases": biases}


# ---------------------------------------------------------------------------
# Forward wrapper, mirroring Interpolationrl.forward(zp, zr, zp8, zr8, n1, n2).
# n1/n2 are static Python ints (n1 determines the output length).
# ---------------------------------------------------------------------------
@functools.partial(jax.jit, static_argnums=(5, 6))
def interpolationrl_forward(packed, zp, zr, zp8, zr8, n1, n2):
    del n2  # accepted for signature parity; unused by the reference forward
    n_step = T_TOTAL                                   # self.n_step = n_step + n_middle
    if not (1 <= n1 <= n_step):
        raise ValueError(f"n1 must satisfy 1 <= n1 <= {n_step} (got {n1}); "
                         "the reference module is degenerate otherwise.")
    t_out = n_step - n1 + 1
    B = zp8.shape[0]

    # Pack the activation inputs (tiny) so the kernel sees only 2 activation DMAs and
    # the merged matmuls get their [rhythm | pitch] lane layout for free.
    ztf = jnp.concatenate([zr[:, :n1, :], zp[:, :n1, :]], axis=-1)      # (B, n1, 256)
    ztf = jnp.transpose(ztf, (1, 0, 2)).reshape(n1 * B, Z1 + Z2)        # row = i*B + b
    ztf = ztf.astype(jnp.bfloat16)
    z8 = jnp.concatenate([zr8, zp8], axis=-1).astype(jnp.bfloat16)      # (B, 256)

    vmem_spec = pl.BlockSpec(memory_space=pltpu.MemorySpace.VMEM)
    kernel = functools.partial(interp_kernel, n1, n_step)
    zp_flat, zr_flat = pl.pallas_call(
        kernel,
        out_shape=(jax.ShapeDtypeStruct((B, t_out * OUT_DIM), jnp.float32),
                   jax.ShapeDtypeStruct((B, t_out * OUT_DIM), jnp.float32)),
        in_specs=[vmem_spec] * 5,
        out_specs=(vmem_spec, vmem_spec),
    )(ztf, z8, packed["w_big"], packed["w_small"], packed["biases"])

    # Minor-dim split back to (B, T_out, 128) — trivial reshape in XLA.
    z_p = zp_flat.reshape(B, t_out, OUT_DIM)
    z_r = zr_flat.reshape(B, t_out, OUT_DIM)
    return z_p, z_r


# ---------------------------------------------------------------------------
# Pure-JAX reference of the PyTorch module (f32, Precision.HIGHEST), for
# verification.  It mirrors the PyTorch code exactly (no fold / merge / bf16).
# ---------------------------------------------------------------------------
def reference_forward(params, zp, zr, zp8, zr8, n1, n_step):
    H = HIDDEN

    def hpdot(a, b):
        return jnp.dot(a, b, precision=lax.Precision.HIGHEST)

    def cell(x, h, wih, whh, bih, bhh):
        gi = hpdot(x, wih) + bih
        gh = hpdot(h, whh) + bhh
        r = jax.nn.sigmoid(gi[:, :H] + gh[:, :H])
        z = jax.nn.sigmoid(gi[:, H:2 * H] + gh[:, H:2 * H])
        n = jnp.tanh(gi[:, 2 * H:] + r * gh[:, 2 * H:])
        return (1.0 - z) * n + z * h

    def decoder(z_seq, z8, w_init, b_init, wih_a, whh_a, bih_a, bhh_a,
                wih_b, whh_b, bih_b, bhh_b, w_out, b_out):
        B = z8.shape[0]
        out = jnp.zeros((B, OUT_DIM), jnp.float32).at[:, -1].set(1.0)
        hx0 = hpdot(z8, w_init) + b_init
        hx1 = None
        xs = []
        for i in range(n_step):
            inp = z_seq[:, i, :] if i <= n1 - 1 else out
            hx0 = cell(inp, hx0, wih_a, whh_a, bih_a, bhh_a)
            if i == 0:
                hx1 = hx0
            hx1 = cell(hx0, hx1, wih_b, whh_b, bih_b, bhh_b)
            out = hpdot(hx1, w_out) + b_out
            if i >= n1 - 1:
                xs.append(out)
        return jnp.stack(xs, axis=1)

    z_r = decoder(zr, zr8, params["w_init0"], params["b_init0"],
                  params["w_ih1"], params["w_hh1"], params["b_ih1"], params["b_hh1"],
                  params["w_ih2"], params["w_hh2"], params["b_ih2"], params["b_hh2"],
                  params["w_out0"], params["b_out0"])
    z_p = decoder(zp, zp8, params["w_init1"], params["b_init1"],
                  params["w_ih3"], params["w_hh3"], params["b_ih3"], params["b_hh3"],
                  params["w_ih4"], params["w_hh4"], params["b_ih4"], params["b_hh4"],
                  params["w_out1"], params["b_out1"])
    return z_p, z_r


if __name__ == "__main__":
    key = jax.random.PRNGKey(0)
    pk, kzp, kzr, kzp8, kzr8 = jax.random.split(key, 5)
    params = init_params(pk)
    packed = pack_params(params)      # one-time slab packing (outside the forward path)

    zp = jax.random.normal(kzp, (BATCH, T_TOTAL, Z1), jnp.float32)
    zr = jax.random.normal(kzr, (BATCH, T_TOTAL, Z2), jnp.float32)
    zp8 = jax.random.normal(kzp8, (BATCH, Z1), jnp.float32)
    zr8 = jax.random.normal(kzr8, (BATCH, Z2), jnp.float32)

    z_p, z_r = interpolationrl_forward(packed, zp, zr, zp8, zr8, N1, N2)
    z_p, z_r = jax.block_until_ready((z_p, z_r))

    t_out = T_TOTAL - N1 + 1
    assert z_p.shape == (BATCH, t_out, OUT_DIM)
    assert z_r.shape == (BATCH, t_out, OUT_DIM)

    # Tolerance: bf16 MXU operands (per perf review) drift vs the f32
    # Precision.HIGHEST reference across the 8-step autoregressive recurrence;
    # the structural changes (block-diagonal merge, linear_out fold, batched
    # teacher-forced matmul) are exact up to f32 rounding.
    z_p_ref, z_r_ref = reference_forward(params, zp, zr, zp8, zr8, N1, T_TOTAL)
    assert jnp.allclose(z_p, z_p_ref, atol=1e-1, rtol=1e-1), \
        float(jnp.max(jnp.abs(z_p - z_p_ref)))
    assert jnp.allclose(z_r, z_r_ref, atol=1e-1, rtol=1e-1), \
        float(jnp.max(jnp.abs(z_r - z_r_ref)))

    print("KERNEL_OK")
</pallas_src>

<mosaic_0001>
module attributes {stable_mosaic.version = 11 : i64} {
  func.func @interp_kernel(%arg0: memref<8x256xbf16, #tpu.memory_space<vmem>>, %arg1: memref<2x256xbf16, #tpu.memory_space<vmem>>, %arg2: memref<2x256x256xbf16, #tpu.memory_space<vmem>>, %arg3: memref<5x64x256xbf16, #tpu.memory_space<vmem>>, %arg4: memref<8x256xf32, #tpu.memory_space<vmem>>, %arg5: memref<2x640xf32, #tpu.memory_space<vmem>>, %arg6: memref<2x640xf32, #tpu.memory_space<vmem>>) attributes {dimension_semantics = [], scalar_prefetch = 0 : i64, scratch_operands = 0 : i64, tpu.core_type = #tpu.core_type<tc>} {
    %c0 = arith.constant 0 : index
    %c0_0 = arith.constant 0 : index
    %0 = vector.load %arg1[%c0, %c0_0] : memref<2x256xbf16, #tpu.memory_space<vmem>>, vector<2x256xbf16>
    %c0_1 = arith.constant 0 : index
    %c0_2 = arith.constant 0 : index
    %c0_3 = arith.constant 0 : index
    %1 = vector.load %arg2[%c0_1, %c0_2, %c0_3] : memref<2x256x256xbf16, #tpu.memory_space<vmem>>, vector<1x256x256xbf16>
    %2 = vector.shape_cast %1 : vector<1x256x256xbf16> to vector<256x256xbf16>
    %cst = arith.constant dense<0.000000e+00> : vector<2x256xf32>
    %3 = tpu.matmul %0, %2, %cst {dimension_numbers = #tpu.dot_dimension_numbers<[1], [0], [0], [1], [0, 0, 1, 1], [], []>} : vector<2x256xbf16>, vector<256x256xbf16>, vector<2x256xf32> -> vector<2x256xf32>
    %c0_4 = arith.constant 0 : index
    %c0_5 = arith.constant 0 : index
    %4 = vector.load %arg4[%c0_4, %c0_5] : memref<8x256xf32, #tpu.memory_space<vmem>>, vector<1x256xf32>
    %5 = vector.broadcast %4 : vector<1x256xf32> to vector<2x256xf32>
    %6 = arith.addf %3, %5 : vector<2x256xf32>
    %7 = vector.extract_strided_slice %6 {offsets = [0, 0], sizes = [2, 64], strides = [1, 1]} : vector<2x256xf32> to vector<2x64xf32>
    %c0_6 = arith.constant 0 : index
    %c0_7 = arith.constant 0 : index
    %8 = vector.load %arg0[%c0_6, %c0_7] : memref<8x256xbf16, #tpu.memory_space<vmem>>, vector<8x256xbf16>
    %c1 = arith.constant 1 : index
    %c0_8 = arith.constant 0 : index
    %c0_9 = arith.constant 0 : index
    %9 = vector.load %arg2[%c1, %c0_8, %c0_9] : memref<2x256x256xbf16, #tpu.memory_space<vmem>>, vector<1x256x256xbf16>
    %10 = vector.shape_cast %9 : vector<1x256x256xbf16> to vector<256x256xbf16>
    %cst_10 = arith.constant dense<0.000000e+00> : vector<8x256xf32>
    %11 = tpu.matmul %8, %10, %cst_10 {dimension_numbers = #tpu.dot_dimension_numbers<[1], [0], [0], [1], [0, 0, 1, 1], [], []>} : vector<8x256xbf16>, vector<256x256xbf16>, vector<8x256xf32> -> vector<8x256xf32>
    %c1_11 = arith.constant 1 : index
    %c0_12 = arith.constant 0 : index
    %12 = vector.load %arg4[%c1_11, %c0_12] : memref<8x256xf32, #tpu.memory_space<vmem>>, vector<1x256xf32>
    %13 = vector.broadcast %12 : vector<1x256xf32> to vector<8x256xf32>
    %14 = arith.addf %11, %13 : vector<8x256xf32>
    %15 = vector.extract_strided_slice %14 {offsets = [0, 0], sizes = [2, 256], strides = [1, 1]} : vector<8x256xf32> to vector<2x256xf32>
    %16 = arith.truncf %7 : vector<2x64xf32> to vector<2x64xbf16>
    %c0_13 = arith.constant 0 : index
    %c0_14 = arith.constant 0 : index
    %c0_15 = arith.constant 0 : index
    %17 = vector.load %arg3[%c0_13, %c0_14, %c0_15] : memref<5x64x256xbf16, #tpu.memory_space<vmem>>, vector<1x64x256xbf16>
    %18 = vector.shape_cast %17 : vector<1x64x256xbf16> to vector<64x256xbf16>
    %cst_16 = arith.constant dense<0.000000e+00> : vector<2x256xf32>
    %19 = tpu.matmul %16, %18, %cst_16 {dimension_numbers = #tpu.dot_dimension_numbers<[1], [0], [0], [1], [0, 0, 1, 1], [], []>} : vector<2x64xbf16>, vector<64x256xbf16>, vector<2x256xf32> -> vector<2x256xf32>
    %c2 = arith.constant 2 : index
    %c0_17 = arith.constant 0 : index
    %20 = vector.load %arg4[%c2, %c0_17] : memref<8x256xf32, #tpu.memory_space<vmem>>, vector<1x256xf32>
    %21 = vector.broadcast %20 : vector<1x256xf32> to vector<2x256xf32>
    %22 = arith.addf %19, %21 : vector<2x256xf32>
    %23 = vector.extract_strided_slice %15 {offsets = [0, 0], sizes = [2, 64], strides = [1, 1]} : vector<2x256xf32> to vector<2x64xf32>
    %24 = vector.extract_strided_slice %22 {offsets = [0, 0], sizes = [2, 64], strides = [1, 1]} : vector<2x256xf32> to vector<2x64xf32>
    %25 = arith.addf %23, %24 : vector<2x64xf32>
    %26 = arith.negf %25 : vector<2x64xf32>
    %27 = math.exp %26 : vector<2x64xf32>
    %cst_18 = arith.constant 1.000000e+00 : f32
    %28 = vector.broadcast %cst_18 : f32 to vector<2x64xf32>
    %29 = arith.addf %28, %27 : vector<2x64xf32>
    %30 = arith.divf %28, %29 : vector<2x64xf32>
    %31 = vector.extract_strided_slice %15 {offsets = [0, 64], sizes = [2, 64], strides = [1, 1]} : vector<2x256xf32> to vector<2x64xf32>
    %32 = vector.extract_strided_slice %22 {offsets = [0, 64], sizes = [2, 64], strides = [1, 1]} : vector<2x256xf32> to vector<2x64xf32>
    %33 = arith.addf %31, %32 : vector<2x64xf32>
    %34 = arith.negf %33 : vector<2x64xf32>
    %35 = math.exp %34 : vector<2x64xf32>
    %cst_19 = arith.constant 1.000000e+00 : f32
    %36 = vector.broadcast %cst_19 : f32 to vector<2x64xf32>
    %37 = arith.addf %36, %35 : vector<2x64xf32>
    %38 = arith.divf %36, %37 : vector<2x64xf32>
    %39 = vector.extract_strided_slice %15 {offsets = [0, 128], sizes = [2, 64], strides = [1, 1]} : vector<2x256xf32> to vector<2x64xf32>
    %40 = vector.extract_strided_slice %22 {offsets = [0, 128], sizes = [2, 64], strides = [1, 1]} : vector<2x256xf32> to vector<2x64xf32>
    %41 = arith.mulf %30, %40 : vector<2x64xf32>
    %42 = arith.addf %39, %41 : vector<2x64xf32>
    %43 = math.tanh %42 : vector<2x64xf32>
    %cst_20 = arith.constant 1.000000e+00 : f32
    %44 = vector.broadcast %cst_20 : f32 to vector<2x64xf32>
    %45 = arith.subf %44, %38 : vector<2x64xf32>
    %46 = arith.mulf %45, %43 : vector<2x64xf32>
    %47 = arith.mulf %38, %7 : vector<2x64xf32>
    %48 = arith.addf %46, %47 : vector<2x64xf32>
    %49 = arith.truncf %48 : vector<2x64xf32> to vector<2x64xbf16>
    %c2_21 = arith.constant 2 : index
    %c0_22 = arith.constant 0 : index
    %c0_23 = arith.constant 0 : index
    %50 = vector.load %arg3[%c2_21, %c0_22, %c0_23] : memref<5x64x256xbf16, #tpu.memory_space<vmem>>, vector<1x64x256xbf16>
    %51 = vector.shape_cast %50 : vector<1x64x256xbf16> to vector<64x256xbf16>
    %cst_24 = arith.constant dense<0.000000e+00> : vector<2x256xf32>
    %52 = tpu.matmul %49, %51, %cst_24 {dimension_numbers = #tpu.dot_dimension_numbers<[1], [0], [0], [1], [0, 0, 1, 1], [], []>} : vector<2x64xbf16>, vector<64x256xbf16>, vector<2x256xf32> -> vector<2x256xf32>
    %c4 = arith.constant 4 : index
    %c0_25 = arith.constant 0 : index
    %53 = vector.load %arg4[%c4, %c0_25] : memref<8x256xf32, #tpu.memory_space<vmem>>, vector<1x256xf32>
    %54 = vector.broadcast %53 : vector<1x256xf32> to vector<2x256xf32>
    %55 = arith.addf %52, %54 : vector<2x256xf32>
    %56 = arith.truncf %48 : vector<2x64xf32> to vector<2x64xbf16>
    %c3 = arith.constant 3 : index
    %c0_26 = arith.constant 0 : index
    %c0_27 = arith.constant 0 : index
    %57 = vector.load %arg3[%c3, %c0_26, %c0_27] : memref<5x64x256xbf16, #tpu.memory_space<vmem>>, vector<1x64x256xbf16>
    %58 = vector.shape_cast %57 : vector<1x64x256xbf16> to vector<64x256xbf16>
    %cst_28 = arith.constant dense<0.000000e+00> : vector<2x256xf32>
    %59 = tpu.matmul %56, %58, %cst_28 {dimension_numbers = #tpu.dot_dimension_numbers<[1], [0], [0], [1], [0, 0, 1, 1], [], []>} : vector<2x64xbf16>, vector<64x256xbf16>, vector<2x256xf32> -> vector<2x256xf32>
    %c5 = arith.constant 5 : index
    %c0_29 = arith.constant 0 : index
    %60 = vector.load %arg4[%c5, %c0_29] : memref<8x256xf32, #tpu.memory_space<vmem>>, vector<1x256xf32>
    %61 = vector.broadcast %60 : vector<1x256xf32> to vector<2x256xf32>
    %62 = arith.addf %59, %61 : vector<2x256xf32>
    %63 = vector.extract_strided_slice %55 {offsets = [0, 0], sizes = [2, 64], strides = [1, 1]} : vector<2x256xf32> to vector<2x64xf32>
    %64 = vector.extract_strided_slice %62 {offsets = [0, 0], sizes = [2, 64], strides = [1, 1]} : vector<2x256xf32> to vector<2x64xf32>
    %65 = arith.addf %63, %64 : vector<2x64xf32>
    %66 = arith.negf %65 : vector<2x64xf32>
    %67 = math.exp %66 : vector<2x64xf32>
    %cst_30 = arith.constant 1.000000e+00 : f32
    %68 = vector.broadcast %cst_30 : f32 to vector<2x64xf32>
    %69 = arith.addf %68, %67 : vector<2x64xf32>
    %70 = arith.divf %68, %69 : vector<2x64xf32>
    %71 = vector.extract_strided_slice %55 {offsets = [0, 64], sizes = [2, 64], strides = [1, 1]} : vector<2x256xf32> to vector<2x64xf32>
    %72 = vector.extract_strided_slice %62 {offsets = [0, 64], sizes = [2, 64], strides = [1, 1]} : vector<2x256xf32> to vector<2x64xf32>
    %73 = arith.addf %71, %72 : vector<2x64xf32>
    %74 = arith.negf %73 : vector<2x64xf32>
    %75 = math.exp %74 : vector<2x64xf32>
    %cst_31 = arith.constant 1.000000e+00 : f32
    %76 = vector.broadcast %cst_31 : f32 to vector<2x64xf32>
    %77 = arith.addf %76, %75 : vector<2x64xf32>
    %78 = arith.divf %76, %77 : vector<2x64xf32>
    %79 = vector.extract_strided_slice %55 {offsets = [0, 128], sizes = [2, 64], strides = [1, 1]} : vector<2x256xf32> to vector<2x64xf32>
    %80 = vector.extract_strided_slice %62 {offsets = [0, 128], sizes = [2, 64], strides = [1, 1]} : vector<2x256xf32> to vector<2x64xf32>
    %81 = arith.mulf %70, %80 : vector<2x64xf32>
    %82 = arith.addf %79, %81 : vector<2x64xf32>
    %83 = math.tanh %82 : vector<2x64xf32>
    %cst_32 = arith.constant 1.000000e+00 : f32
    %84 = vector.broadcast %cst_32 : f32 to vector<2x64xf32>
    %85 = arith.subf %84, %78 : vector<2x64xf32>
    %86 = arith.mulf %85, %83 : vector<2x64xf32>
    %87 = arith.mulf %78, %48 : vector<2x64xf32>
    %88 = arith.addf %86, %87 : vector<2x64xf32>
    %89 = vector.extract_strided_slice %14 {offsets = [2, 0], sizes = [2, 256], strides = [1, 1]} : vector<8x256xf32> to vector<2x256xf32>
    %90 = arith.truncf %48 : vector<2x64xf32> to vector<2x64xbf16>
    %c0_33 = arith.constant 0 : index
    %c0_34 = arith.constant 0 : index
    %c0_35 = arith.constant 0 : index
    %91 = vector.load %arg3[%c0_33, %c0_34, %c0_35] : memref<5x64x256xbf16, #tpu.memory_space<vmem>>, vector<1x64x256xbf16>
    %92 = vector.shape_cast %91 : vector<1x64x256xbf16> to vector<64x256xbf16>
    %cst_36 = arith.constant dense<0.000000e+00> : vector<2x256xf32>
    %93 = tpu.matmul %90, %92, %cst_36 {dimension_numbers = #tpu.dot_dimension_numbers<[1], [0], [0], [1], [0, 0, 1, 1], [], []>} : vector<2x64xbf16>, vector<64x256xbf16>, vector<2x256xf32> -> vector<2x256xf32>
    %c2_37 = arith.constant 2 : index
    %c0_38 = arith.constant 0 : index
    %94 = vector.load %arg4[%c2_37, %c0_38] : memref<8x256xf32, #tpu.memory_space<vmem>>, vector<1x256xf32>
    %95 = vector.broadcast %94 : vector<1x256xf32> to vector<2x256xf32>
    %96 = arith.addf %93, %95 : vector<2x256xf32>
    %97 = vector.extract_strided_slice %89 {offsets = [0, 0], sizes = [2, 64], strides = [1, 1]} : vector<2x256xf32> to vector<2x64xf32>
    %98 = vector.extract_strided_slice %96 {offsets = [0, 0], sizes = [2, 64], strides = [1, 1]} : vector<2x256xf32> to vector<2x64xf32>
    %99 = arith.addf %97, %98 : vector<2x64xf32>
    %100 = arith.negf %99 : vector<2x64xf32>
    %101 = math.exp %100 : vector<2x64xf32>
    %cst_39 = arith.constant 1.000000e+00 : f32
    %102 = vector.broadcast %cst_39 : f32 to vector<2x64xf32>
    %103 = arith.addf %102, %101 : vector<2x64xf32>
    %104 = arith.divf %102, %103 : vector<2x64xf32>
    %105 = vector.extract_strided_slice %89 {offsets = [0, 64], sizes = [2, 64], strides = [1, 1]} : vector<2x256xf32> to vector<2x64xf32>
    %106 = vector.extract_strided_slice %96 {offsets = [0, 64], sizes = [2, 64], strides = [1, 1]} : vector<2x256xf32> to vector<2x64xf32>
    %107 = arith.addf %105, %106 : vector<2x64xf32>
    %108 = arith.negf %107 : vector<2x64xf32>
    %109 = math.exp %108 : vector<2x64xf32>
    %cst_40 = arith.constant 1.000000e+00 : f32
    %110 = vector.broadcast %cst_40 : f32 to vector<2x64xf32>
    %111 = arith.addf %110, %109 : vector<2x64xf32>
    %112 = arith.divf %110, %111 : vector<2x64xf32>
    %113 = vector.extract_strided_slice %89 {offsets = [0, 128], sizes = [2, 64], strides = [1, 1]} : vector<2x256xf32> to vector<2x64xf32>
    %114 = vector.extract_strided_slice %96 {offsets = [0, 128], sizes = [2, 64], strides = [1, 1]} : vector<2x256xf32> to vector<2x64xf32>
    %115 = arith.mulf %104, %114 : vector<2x64xf32>
    %116 = arith.addf %113, %115 : vector<2x64xf32>
    %117 = math.tanh %116 : vector<2x64xf32>
    %cst_41 = arith.constant 1.000000e+00 : f32
    %118 = vector.broadcast %cst_41 : f32 to vector<2x64xf32>
    %119 = arith.subf %118, %112 : vector<2x64xf32>
    %120 = arith.mulf %119, %117 : vector<2x64xf32>
    %121 = arith.mulf %112, %48 : vector<2x64xf32>
    %122 = arith.addf %120, %121 : vector<2x64xf32>
    %123 = arith.truncf %122 : vector<2x64xf32> to vector<2x64xbf16>
    %c2_42 = arith.constant 2 : index
    %c0_43 = arith.constant 0 : index
    %c0_44 = arith.constant 0 : index
    %124 = vector.load %arg3[%c2_42, %c0_43, %c0_44] : memref<5x64x256xbf16, #tpu.memory_space<vmem>>, vector<1x64x256xbf16>
    %125 = vector.shape_cast %124 : vector<1x64x256xbf16> to vector<64x256xbf16>
    %cst_45 = arith.constant dense<0.000000e+00> : vector<2x256xf32>
    %126 = tpu.matmul %123, %125, %cst_45 {dimension_numbers = #tpu.dot_dimension_numbers<[1], [0], [0], [1], [0, 0, 1, 1], [], []>} : vector<2x64xbf16>, vector<64x256xbf16>, vector<2x256xf32> -> vector<2x256xf32>
    %c4_46 = arith.constant 4 : index
    %c0_47 = arith.constant 0 : index
    %127 = vector.load %arg4[%c4_46, %c0_47] : memref<8x256xf32, #tpu.memory_space<vmem>>, vector<1x256xf32>
    %128 = vector.broadcast %127 : vector<1x256xf32> to vector<2x256xf32>
    %129 = arith.addf %126, %128 : vector<2x256xf32>
    %130 = arith.truncf %88 : vector<2x64xf32> to vector<2x64xbf16>
    %c3_48 = arith.constant 3 : index
    %c0_49 = arith.constant 0 : index
    %c0_50 = arith.constant 0 : index
    %131 = vector.load %arg3[%c3_48, %c0_49, %c0_50] : memref<5x64x256xbf16, #tpu.memory_space<vmem>>, vector<1x64x256xbf16>
    %132 = vector.shape_cast %131 : vector<1x64x256xbf16> to vector<64x256xbf16>
    %cst_51 = arith.constant dense<0.000000e+00> : vector<2x256xf32>
    %133 = tpu.matmul %130, %132, %cst_51 {dimension_numbers = #tpu.dot_dimension_numbers<[1], [0], [0], [1], [0, 0, 1, 1], [], []>} : vector<2x64xbf16>, vector<64x256xbf16>, vector<2x256xf32> -> vector<2x256xf32>
    %c5_52 = arith.constant 5 : index
    %c0_53 = arith.constant 0 : index
    %134 = vector.load %arg4[%c5_52, %c0_53] : memref<8x256xf32, #tpu.memory_space<vmem>>, vector<1x256xf32>
    %135 = vector.broadcast %134 : vector<1x256xf32> to vector<2x256xf32>
    %136 = arith.addf %133, %135 : vector<2x256xf32>
    %137 = vector.extract_strided_slice %129 {offsets = [0, 0], sizes = [2, 64], strides = [1, 1]} : vector<2x256xf32> to vector<2x64xf32>
    %138 = vector.extract_strided_slice %136 {offsets = [0, 0], sizes = [2, 64], strides = [1, 1]} : vector<2x256xf32> to vector<2x64xf32>
    %139 = arith.addf %137, %138 : vector<2x64xf32>
    %140 = arith.negf %139 : vector<2x64xf32>
    %141 = math.exp %140 : vector<2x64xf32>
    %cst_54 = arith.constant 1.000000e+00 : f32
    %142 = vector.broadcast %cst_54 : f32 to vector<2x64xf32>
    %143 = arith.addf %142, %141 : vector<2x64xf32>
    %144 = arith.divf %142, %143 : vector<2x64xf32>
    %145 = vector.extract_strided_slice %129 {offsets = [0, 64], sizes = [2, 64], strides = [1, 1]} : vector<2x256xf32> to vector<2x64xf32>
    %146 = vector.extract_strided_slice %136 {offsets = [0, 64], sizes = [2, 64], strides = [1, 1]} : vector<2x256xf32> to vector<2x64xf32>
    %147 = arith.addf %145, %146 : vector<2x64xf32>
    %148 = arith.negf %147 : vector<2x64xf32>
    %149 = math.exp %148 : vector<2x64xf32>
    %cst_55 = arith.constant 1.000000e+00 : f32
    %150 = vector.broadcast %cst_55 : f32 to vector<2x64xf32>
    %151 = arith.addf %150, %149 : vector<2x64xf32>
    %152 = arith.divf %150, %151 : vector<2x64xf32>
    %153 = vector.extract_strided_slice %129 {offsets = [0, 128], sizes = [2, 64], strides = [1, 1]} : vector<2x256xf32> to vector<2x64xf32>
    %154 = vector.extract_strided_slice %136 {offsets = [0, 128], sizes = [2, 64], strides = [1, 1]} : vector<2x256xf32> to vector<2x64xf32>
    %155 = arith.mulf %144, %154 : vector<2x64xf32>
    %156 = arith.addf %153, %155 : vector<2x64xf32>
    %157 = math.tanh %156 : vector<2x64xf32>
    %cst_56 = arith.constant 1.000000e+00 : f32
    %158 = vector.broadcast %cst_56 : f32 to vector<2x64xf32>
    %159 = arith.subf %158, %152 : vector<2x64xf32>
    %160 = arith.mulf %159, %157 : vector<2x64xf32>
    %161 = arith.mulf %152, %88 : vector<2x64xf32>
    %162 = arith.addf %160, %161 : vector<2x64xf32>
    %163 = vector.extract_strided_slice %14 {offsets = [4, 0], sizes = [2, 256], strides = [1, 1]} : vector<8x256xf32> to vector<2x256xf32>
    %164 = arith.truncf %122 : vector<2x64xf32> to vector<2x64xbf16>
    %c0_57 = arith.constant 0 : index
    %c0_58 = arith.constant 0 : index
    %c0_59 = arith.constant 0 : index
    %165 = vector.load %arg3[%c0_57, %c0_58, %c0_59] : memref<5x64x256xbf16, #tpu.memory_space<vmem>>, vector<1x64x256xbf16>
    %166 = vector.shape_cast %165 : vector<1x64x256xbf16> to vector<64x256xbf16>
    %cst_60 = arith.constant dense<0.000000e+00> : vector<2x256xf32>
    %167 = tpu.matmul %164, %166, %cst_60 {dimension_numbers = #tpu.dot_dimension_numbers<[1], [0], [0], [1], [0, 0, 1, 1], [], []>} : vector<2x64xbf16>, vector<64x256xbf16>, vector<2x256xf32> -> vector<2x256xf32>
    %c2_61 = arith.constant 2 : index
    %c0_62 = arith.constant 0 : index
    %168 = vector.load %arg4[%c2_61, %c0_62] : memref<8x256xf32, #tpu.memory_space<vmem>>, vector<1x256xf32>
    %169 = vector.broadcast %168 : vector<1x256xf32> to vector<2x256xf32>
    %170 = arith.addf %167, %169 : vector<2x256xf32>
    %171 = vector.extract_strided_slice %163 {offsets = [0, 0], sizes = [2, 64], strides = [1, 1]} : vector<2x256xf32> to vector<2x64xf32>
    %172 = vector.extract_strided_slice %170 {offsets = [0, 0], sizes = [2, 64], strides = [1, 1]} : vector<2x256xf32> to vector<2x64xf32>
    %173 = arith.addf %171, %172 : vector<2x64xf32>
    %174 = arith.negf %173 : vector<2x64xf32>
    %175 = math.exp %174 : vector<2x64xf32>
    %cst_63 = arith.constant 1.000000e+00 : f32
    %176 = vector.broadcast %cst_63 : f32 to vector<2x64xf32>
    %177 = arith.addf %176, %175 : vector<2x64xf32>
    %178 = arith.divf %176, %177 : vector<2x64xf32>
    %179 = vector.extract_strided_slice %163 {offsets = [0, 64], sizes = [2, 64], strides = [1, 1]} : vector<2x256xf32> to vector<2x64xf32>
    %180 = vector.extract_strided_slice %170 {offsets = [0, 64], sizes = [2, 64], strides = [1, 1]} : vector<2x256xf32> to vector<2x64xf32>
    %181 = arith.addf %179, %180 : vector<2x64xf32>
    %182 = arith.negf %181 : vector<2x64xf32>
    %183 = math.exp %182 : vector<2x64xf32>
    %cst_64 = arith.constant 1.000000e+00 : f32
    %184 = vector.broadcast %cst_64 : f32 to vector<2x64xf32>
    %185 = arith.addf %184, %183 : vector<2x64xf32>
    %186 = arith.divf %184, %185 : vector<2x64xf32>
    %187 = vector.extract_strided_slice %163 {offsets = [0, 128], sizes = [2, 64], strides = [1, 1]} : vector<2x256xf32> to vector<2x64xf32>
    %188 = vector.extract_strided_slice %170 {offsets = [0, 128], sizes = [2, 64], strides = [1, 1]} : vector<2x256xf32> to vector<2x64xf32>
    %189 = arith.mulf %178, %188 : vector<2x64xf32>
    %190 = arith.addf %187, %189 : vector<2x64xf32>
    %191 = math.tanh %190 : vector<2x64xf32>
    %cst_65 = arith.constant 1.000000e+00 : f32
    %192 = vector.broadcast %cst_65 : f32 to vector<2x64xf32>
    %193 = arith.subf %192, %186 : vector<2x64xf32>
    %194 = arith.mulf %193, %191 : vector<2x64xf32>
    %195 = arith.mulf %186, %122 : vector<2x64xf32>
    %196 = arith.addf %194, %195 : vector<2x64xf32>
    %197 = arith.truncf %196 : vector<2x64xf32> to vector<2x64xbf16>
    %c2_66 = arith.constant 2 : index
    %c0_67 = arith.constant 0 : index
    %c0_68 = arith.constant 0 : index
    %198 = vector.load %arg3[%c2_66, %c0_67, %c0_68] : memref<5x64x256xbf16, #tpu.memory_space<vmem>>, vector<1x64x256xbf16>
    %199 = vector.shape_cast %198 : vector<1x64x256xbf16> to vector<64x256xbf16>
    %cst_69 = arith.constant dense<0.000000e+00> : vector<2x256xf32>
    %200 = tpu.matmul %197, %199, %cst_69 {dimension_numbers = #tpu.dot_dimension_numbers<[1], [0], [0], [1], [0, 0, 1, 1], [], []>} : vector<2x64xbf16>, vector<64x256xbf16>, vector<2x256xf32> -> vector<2x256xf32>
    %c4_70 = arith.constant 4 : index
    %c0_71 = arith.constant 0 : index
    %201 = vector.load %arg4[%c4_70, %c0_71] : memref<8x256xf32, #tpu.memory_space<vmem>>, vector<1x256xf32>
    %202 = vector.broadcast %201 : vector<1x256xf32> to vector<2x256xf32>
    %203 = arith.addf %200, %202 : vector<2x256xf32>
    %204 = arith.truncf %162 : vector<2x64xf32> to vector<2x64xbf16>
    %c3_72 = arith.constant 3 : index
    %c0_73 = arith.constant 0 : index
    %c0_74 = arith.constant 0 : index
    %205 = vector.load %arg3[%c3_72, %c0_73, %c0_74] : memref<5x64x256xbf16, #tpu.memory_space<vmem>>, vector<1x64x256xbf16>
    %206 = vector.shape_cast %205 : vector<1x64x256xbf16> to vector<64x256xbf16>
    %cst_75 = arith.constant dense<0.000000e+00> : vector<2x256xf32>
    %207 = tpu.matmul %204, %206, %cst_75 {dimension_numbers = #tpu.dot_dimension_numbers<[1], [0], [0], [1], [0, 0, 1, 1], [], []>} : vector<2x64xbf16>, vector<64x256xbf16>, vector<2x256xf32> -> vector<2x256xf32>
    %c5_76 = arith.constant 5 : index
    %c0_77 = arith.constant 0 : index
    %208 = vector.load %arg4[%c5_76, %c0_77] : memref<8x256xf32, #tpu.memory_space<vmem>>, vector<1x256xf32>
    %209 = vector.broadcast %208 : vector<1x256xf32> to vector<2x256xf32>
    %210 = arith.addf %207, %209 : vector<2x256xf32>
    %211 = vector.extract_strided_slice %203 {offsets = [0, 0], sizes = [2, 64], strides = [1, 1]} : vector<2x256xf32> to vector<2x64xf32>
    %212 = vector.extract_strided_slice %210 {offsets = [0, 0], sizes = [2, 64], strides = [1, 1]} : vector<2x256xf32> to vector<2x64xf32>
    %213 = arith.addf %211, %212 : vector<2x64xf32>
    %214 = arith.negf %213 : vector<2x64xf32>
    %215 = math.exp %214 : vector<2x64xf32>
    %cst_78 = arith.constant 1.000000e+00 : f32
    %216 = vector.broadcast %cst_78 : f32 to vector<2x64xf32>
    %217 = arith.addf %216, %215 : vector<2x64xf32>
    %218 = arith.divf %216, %217 : vector<2x64xf32>
    %219 = vector.extract_strided_slice %203 {offsets = [0, 64], sizes = [2, 64], strides = [1, 1]} : vector<2x256xf32> to vector<2x64xf32>
    %220 = vector.extract_strided_slice %210 {offsets = [0, 64], sizes = [2, 64], strides = [1, 1]} : vector<2x256xf32> to vector<2x64xf32>
    %221 = arith.addf %219, %220 : vector<2x64xf32>
    %222 = arith.negf %221 : vector<2x64xf32>
    %223 = math.exp %222 : vector<2x64xf32>
    %cst_79 = arith.constant 1.000000e+00 : f32
    %224 = vector.broadcast %cst_79 : f32 to vector<2x64xf32>
    %225 = arith.addf %224, %223 : vector<2x64xf32>
    %226 = arith.divf %224, %225 : vector<2x64xf32>
    %227 = vector.extract_strided_slice %203 {offsets = [0, 128], sizes = [2, 64], strides = [1, 1]} : vector<2x256xf32> to vector<2x64xf32>
    %228 = vector.extract_strided_slice %210 {offsets = [0, 128], sizes = [2, 64], strides = [1, 1]} : vector<2x256xf32> to vector<2x64xf32>
    %229 = arith.mulf %218, %228 : vector<2x64xf32>
    %230 = arith.addf %227, %229 : vector<2x64xf32>
    %231 = math.tanh %230 : vector<2x64xf32>
    %cst_80 = arith.constant 1.000000e+00 : f32
    %232 = vector.broadcast %cst_80 : f32 to vector<2x64xf32>
    %233 = arith.subf %232, %226 : vector<2x64xf32>
    %234 = arith.mulf %233, %231 : vector<2x64xf32>
    %235 = arith.mulf %226, %162 : vector<2x64xf32>
    %236 = arith.addf %234, %235 : vector<2x64xf32>
    %237 = vector.extract_strided_slice %14 {offsets = [6, 0], sizes = [2, 256], strides = [1, 1]} : vector<8x256xf32> to vector<2x256xf32>
    %238 = arith.truncf %196 : vector<2x64xf32> to vector<2x64xbf16>
    %c0_81 = arith.constant 0 : index
    %c0_82 = arith.constant 0 : index
    %c0_83 = arith.constant 0 : index
    %239 = vector.load %arg3[%c0_81, %c0_82, %c0_83] : memref<5x64x256xbf16, #tpu.memory_space<vmem>>, vector<1x64x256xbf16>
    %240 = vector.shape_cast %239 : vector<1x64x256xbf16> to vector<64x256xbf16>
    %cst_84 = arith.constant dense<0.000000e+00> : vector<2x256xf32>
    %241 = tpu.matmul %238, %240, %cst_84 {dimension_numbers = #tpu.dot_dimension_numbers<[1], [0], [0], [1], [0, 0, 1, 1], [], []>} : vector<2x64xbf16>, vector<64x256xbf16>, vector<2x256xf32> -> vector<2x256xf32>
    %c2_85 = arith.constant 2 : index
    %c0_86 = arith.constant 0 : index
    %242 = vector.load %arg4[%c2_85, %c0_86] : memref<8x256xf32, #tpu.memory_space<vmem>>, vector<1x256xf32>
    %243 = vector.broadcast %242 : vector<1x256xf32> to vector<2x256xf32>
    %244 = arith.addf %241, %243 : vector<2x256xf32>
    %245 = vector.extract_strided_slice %237 {offsets = [0, 0], sizes = [2, 64], strides = [1, 1]} : vector<2x256xf32> to vector<2x64xf32>
    %246 = vector.extract_strided_slice %244 {offsets = [0, 0], sizes = [2, 64], strides = [1, 1]} : vector<2x256xf32> to vector<2x64xf32>
    %247 = arith.addf %245, %246 : vector<2x64xf32>
    %248 = arith.negf %247 : vector<2x64xf32>
    %249 = math.exp %248 : vector<2x64xf32>
    %cst_87 = arith.constant 1.000000e+00 : f32
    %250 = vector.broadcast %cst_87 : f32 to vector<2x64xf32>
    %251 = arith.addf %250, %249 : vector<2x64xf32>
    %252 = arith.divf %250, %251 : vector<2x64xf32>
    %253 = vector.extract_strided_slice %237 {offsets = [0, 64], sizes = [2, 64], strides = [1, 1]} : vector<2x256xf32> to vector<2x64xf32>
    %254 = vector.extract_strided_slice %244 {offsets = [0, 64], sizes = [2, 64], strides = [1, 1]} : vector<2x256xf32> to vector<2x64xf32>
    %255 = arith.addf %253, %254 : vector<2x64xf32>
    %256 = arith.negf %255 : vector<2x64xf32>
    %257 = math.exp %256 : vector<2x64xf32>
    %cst_88 = arith.constant 1.000000e+00 : f32
    %258 = vector.broadcast %cst_88 : f32 to vector<2x64xf32>
    %259 = arith.addf %258, %257 : vector<2x64xf32>
    %260 = arith.divf %258, %259 : vector<2x64xf32>
    %261 = vector.extract_strided_slice %237 {offsets = [0, 128], sizes = [2, 64], strides = [1, 1]} : vector<2x256xf32> to vector<2x64xf32>
    %262 = vector.extract_strided_slice %244 {offsets = [0, 128], sizes = [2, 64], strides = [1, 1]} : vector<2x256xf32> to vector<2x64xf32>
    %263 = arith.mulf %252, %262 : vector<2x64xf32>
    %264 = arith.addf %261, %263 : vector<2x64xf32>
    %265 = math.tanh %264 : vector<2x64xf32>
    %cst_89 = arith.constant 1.000000e+00 : f32
    %266 = vector.broadcast %cst_89 : f32 to vector<2x64xf32>
    %267 = arith.subf %266, %260 : vector<2x64xf32>
    %268 = arith.mulf %267, %265 : vector<2x64xf32>
    %269 = arith.mulf %260, %196 : vector<2x64xf32>
    %270 = arith.addf %268, %269 : vector<2x64xf32>
    %271 = arith.truncf %270 : vector<2x64xf32> to vector<2x64xbf16>
    %c2_90 = arith.constant 2 : index
    %c0_91 = arith.constant 0 : index
    %c0_92 = arith.constant 0 : index
    %272 = vector.load %arg3[%c2_90, %c0_91, %c0_92] : memref<5x64x256xbf16, #tpu.memory_space<vmem>>, vector<1x64x256xbf16>
    %273 = vector.shape_cast %272 : vector<1x64x256xbf16> to vector<64x256xbf16>
    %cst_93 = arith.constant dense<0.000000e+00> : vector<2x256xf32>
    %274 = tpu.matmul %271, %273, %cst_93 {dimension_numbers = #tpu.dot_dimension_numbers<[1], [0], [0], [1], [0, 0, 1, 1], [], []>} : vector<2x64xbf16>, vector<64x256xbf16>, vector<2x256xf32> -> vector<2x256xf32>
    %c4_94 = arith.constant 4 : index
    %c0_95 = arith.constant 0 : index
    %275 = vector.load %arg4[%c4_94, %c0_95] : memref<8x256xf32, #tpu.memory_space<vmem>>, vector<1x256xf32>
    %276 = vector.broadcast %275 : vector<1x256xf32> to vector<2x256xf32>
    %277 = arith.addf %274, %276 : vector<2x256xf32>
    %278 = arith.truncf %236 : vector<2x64xf32> to vector<2x64xbf16>
    %c3_96 = arith.constant 3 : index
    %c0_97 = arith.constant 0 : index
    %c0_98 = arith.constant 0 : index
    %279 = vector.load %arg3[%c3_96, %c0_97, %c0_98] : memref<5x64x256xbf16, #tpu.memory_space<vmem>>, vector<1x64x256xbf16>
    %280 = vector.shape_cast %279 : vector<1x64x256xbf16> to vector<64x256xbf16>
    %cst_99 = arith.constant dense<0.000000e+00> : vector<2x256xf32>
    %281 = tpu.matmul %278, %280, %cst_99 {dimension_numbers = #tpu.dot_dimension_numbers<[1], [0], [0], [1], [0, 0, 1, 1], [], []>} : vector<2x64xbf16>, vector<64x256xbf16>, vector<2x256xf32> -> vector<2x256xf32>
    %c5_100 = arith.constant 5 : index
    %c0_101 = arith.constant 0 : index
    %282 = vector.load %arg4[%c5_100, %c0_101] : memref<8x256xf32, #tpu.memory_space<vmem>>, vector<1x256xf32>
    %283 = vector.broadcast %282 : vector<1x256xf32> to vector<2x256xf32>
    %284 = arith.addf %281, %283 : vector<2x256xf32>
    %285 = vector.extract_strided_slice %277 {offsets = [0, 0], sizes = [2, 64], strides = [1, 1]} : vector<2x256xf32> to vector<2x64xf32>
    %286 = vector.extract_strided_slice %284 {offsets = [0, 0], sizes = [2, 64], strides = [1, 1]} : vector<2x256xf32> to vector<2x64xf32>
    %287 = arith.addf %285, %286 : vector<2x64xf32>
    %288 = arith.negf %287 : vector<2x64xf32>
    %289 = math.exp %288 : vector<2x64xf32>
    %cst_102 = arith.constant 1.000000e+00 : f32
    %290 = vector.broadcast %cst_102 : f32 to vector<2x64xf32>
    %291 = arith.addf %290, %289 : vector<2x64xf32>
    %292 = arith.divf %290, %291 : vector<2x64xf32>
    %293 = vector.extract_strided_slice %277 {offsets = [0, 64], sizes = [2, 64], strides = [1, 1]} : vector<2x256xf32> to vector<2x64xf32>
    %294 = vector.extract_strided_slice %284 {offsets = [0, 64], sizes = [2, 64], strides = [1, 1]} : vector<2x256xf32> to vector<2x64xf32>
    %295 = arith.addf %293, %294 : vector<2x64xf32>
    %296 = arith.negf %295 : vector<2x64xf32>
    %297 = math.exp %296 : vector<2x64xf32>
    %cst_103 = arith.constant 1.000000e+00 : f32
    %298 = vector.broadcast %cst_103 : f32 to vector<2x64xf32>
    %299 = arith.addf %298, %297 : vector<2x64xf32>
    %300 = arith.divf %298, %299 : vector<2x64xf32>
    %301 = vector.extract_strided_slice %277 {offsets = [0, 128], sizes = [2, 64], strides = [1, 1]} : vector<2x256xf32> to vector<2x64xf32>
    %302 = vector.extract_strided_slice %284 {offsets = [0, 128], sizes = [2, 64], strides = [1, 1]} : vector<2x256xf32> to vector<2x64xf32>
    %303 = arith.mulf %292, %302 : vector<2x64xf32>
    %304 = arith.addf %301, %303 : vector<2x64xf32>
    %305 = math.tanh %304 : vector<2x64xf32>
    %cst_104 = arith.constant 1.000000e+00 : f32
    %306 = vector.broadcast %cst_104 : f32 to vector<2x64xf32>
    %307 = arith.subf %306, %300 : vector<2x64xf32>
    %308 = arith.mulf %307, %305 : vector<2x64xf32>
    %309 = arith.mulf %300, %236 : vector<2x64xf32>
    %310 = arith.addf %308, %309 : vector<2x64xf32>
    %311 = arith.truncf %310 : vector<2x64xf32> to vector<2x64xbf16>
    %c4_105 = arith.constant 4 : index
    %c0_106 = arith.constant 0 : index
    %c0_107 = arith.constant 0 : index
    %312 = vector.load %arg3[%c4_105, %c0_106, %c0_107] : memref<5x64x256xbf16, #tpu.memory_space<vmem>>, vector<1x64x256xbf16>
    %313 = vector.shape_cast %312 : vector<1x64x256xbf16> to vector<64x256xbf16>
    %cst_108 = arith.constant dense<0.000000e+00> : vector<2x256xf32>
    %314 = tpu.matmul %311, %313, %cst_108 {dimension_numbers = #tpu.dot_dimension_numbers<[1], [0], [0], [1], [0, 0, 1, 1], [], []>} : vector<2x64xbf16>, vector<64x256xbf16>, vector<2x256xf32> -> vector<2x256xf32>
    %c6 = arith.constant 6 : index
    %c0_109 = arith.constant 0 : index
    %315 = vector.load %arg4[%c6, %c0_109] : memref<8x256xf32, #tpu.memory_space<vmem>>, vector<1x256xf32>
    %316 = vector.broadcast %315 : vector<1x256xf32> to vector<2x256xf32>
    %317 = arith.addf %314, %316 : vector<2x256xf32>
    %318 = arith.truncf %310 : vector<2x64xf32> to vector<2x64xbf16>
    %c1_110 = arith.constant 1 : index
    %c0_111 = arith.constant 0 : index
    %c0_112 = arith.constant 0 : index
    %319 = vector.load %arg3[%c1_110, %c0_111, %c0_112] : memref<5x64x256xbf16, #tpu.memory_space<vmem>>, vector<1x64x256xbf16>
    %320 = vector.shape_cast %319 : vector<1x64x256xbf16> to vector<64x256xbf16>
    %cst_113 = arith.constant dense<0.000000e+00> : vector<2x256xf32>
    %321 = tpu.matmul %318, %320, %cst_113 {dimension_numbers = #tpu.dot_dimension_numbers<[1], [0], [0], [1], [0, 0, 1, 1], [], []>} : vector<2x64xbf16>, vector<64x256xbf16>, vector<2x256xf32> -> vector<2x256xf32>
    %c3_114 = arith.constant 3 : index
    %c0_115 = arith.constant 0 : index
    %322 = vector.load %arg4[%c3_114, %c0_115] : memref<8x256xf32, #tpu.memory_space<vmem>>, vector<1x256xf32>
    %323 = vector.broadcast %322 : vector<1x256xf32> to vector<2x256xf32>
    %324 = arith.addf %321, %323 : vector<2x256xf32>
    %325 = arith.truncf %270 : vector<2x64xf32> to vector<2x64xbf16>
    %c0_116 = arith.constant 0 : index
    %c0_117 = arith.constant 0 : index
    %c0_118 = arith.constant 0 : index
    %326 = vector.load %arg3[%c0_116, %c0_117, %c0_118] : memref<5x64x256xbf16, #tpu.memory_space<vmem>>, vector<1x64x256xbf16>
    %327 = vector.shape_cast %326 : vector<1x64x256xbf16> to vector<64x256xbf16>
    %cst_119 = arith.constant dense<0.000000e+00> : vector<2x256xf32>
    %328 = tpu.matmul %325, %327, %cst_119 {dimension_numbers = #tpu.dot_dimension_numbers<[1], [0], [0], [1], [0, 0, 1, 1], [], []>} : vector<2x64xbf16>, vector<64x256xbf16>, vector<2x256xf32> -> vector<2x256xf32>
    %c2_120 = arith.constant 2 : index
    %c0_121 = arith.constant 0 : index
    %329 = vector.load %arg4[%c2_120, %c0_121] : memref<8x256xf32, #tpu.memory_space<vmem>>, vector<1x256xf32>
    %330 = vector.broadcast %329 : vector<1x256xf32> to vector<2x256xf32>
    %331 = arith.addf %328, %330 : vector<2x256xf32>
    %332 = vector.extract_strided_slice %324 {offsets = [0, 0], sizes = [2, 64], strides = [1, 1]} : vector<2x256xf32> to vector<2x64xf32>
    %333 = vector.extract_strided_slice %331 {offsets = [0, 0], sizes = [2, 64], strides = [1, 1]} : vector<2x256xf32> to vector<2x64xf32>
    %334 = arith.addf %332, %333 : vector<2x64xf32>
    %335 = arith.negf %334 : vector<2x64xf32>
    %336 = math.exp %335 : vector<2x64xf32>
    %cst_122 = arith.constant 1.000000e+00 : f32
    %337 = vector.broadcast %cst_122 : f32 to vector<2x64xf32>
    %338 = arith.addf %337, %336 : vector<2x64xf32>
    %339 = arith.divf %337, %338 : vector<2x64xf32>
    %340 = vector.extract_strided_slice %324 {offsets = [0, 64], sizes = [2, 64], strides = [1, 1]} : vector<2x256xf32> to vector<2x64xf32>
    %341 = vector.extract_strided_slice %331 {offsets = [0, 64], sizes = [2, 64], strides = [1, 1]} : vector<2x256xf32> to vector<2x64xf32>
    %342 = arith.addf %340, %341 : vector<2x64xf32>
    %343 = arith.negf %342 : vector<2x64xf32>
    %344 = math.exp %343 : vector<2x64xf32>
    %cst_123 = arith.constant 1.000000e+00 : f32
    %345 = vector.broadcast %cst_123 : f32 to vector<2x64xf32>
    %346 = arith.addf %345, %344 : vector<2x64xf32>
    %347 = arith.divf %345, %346 : vector<2x64xf32>
    %348 = vector.extract_strided_slice %324 {offsets = [0, 128], sizes = [2, 64], strides = [1, 1]} : vector<2x256xf32> to vector<2x64xf32>
    %349 = vector.extract_strided_slice %331 {offsets = [0, 128], sizes = [2, 64], strides = [1, 1]} : vector<2x256xf32> to vector<2x64xf32>
    %350 = arith.mulf %339, %349 : vector<2x64xf32>
    %351 = arith.addf %348, %350 : vector<2x64xf32>
    %352 = math.tanh %351 : vector<2x64xf32>
    %cst_124 = arith.constant 1.000000e+00 : f32
    %353 = vector.broadcast %cst_124 : f32 to vector<2x64xf32>
    %354 = arith.subf %353, %347 : vector<2x64xf32>
    %355 = arith.mulf %354, %352 : vector<2x64xf32>
    %356 = arith.mulf %347, %270 : vector<2x64xf32>
    %357 = arith.addf %355, %356 : vector<2x64xf32>
    %358 = arith.truncf %357 : vector<2x64xf32> to vector<2x64xbf16>
    %c2_125 = arith.constant 2 : index
    %c0_126 = arith.constant 0 : index
    %c0_127 = arith.constant 0 : index
    %359 = vector.load %arg3[%c2_125, %c0_126, %c0_127] : memref<5x64x256xbf16, #tpu.memory_space<vmem>>, vector<1x64x256xbf16>
    %360 = vector.shape_cast %359 : vector<1x64x256xbf16> to vector<64x256xbf16>
    %cst_128 = arith.constant dense<0.000000e+00> : vector<2x256xf32>
    %361 = tpu.matmul %358, %360, %cst_128 {dimension_numbers = #tpu.dot_dimension_numbers<[1], [0], [0], [1], [0, 0, 1, 1], [], []>} : vector<2x64xbf16>, vector<64x256xbf16>, vector<2x256xf32> -> vector<2x256xf32>
    %c4_129 = arith.constant 4 : index
    %c0_130 = arith.constant 0 : index
    %362 = vector.load %arg4[%c4_129, %c0_130] : memref<8x256xf32, #tpu.memory_space<vmem>>, vector<1x256xf32>
    %363 = vector.broadcast %362 : vector<1x256xf32> to vector<2x256xf32>
    %364 = arith.addf %361, %363 : vector<2x256xf32>
    %365 = arith.truncf %310 : vector<2x64xf32> to vector<2x64xbf16>
    %c3_131 = arith.constant 3 : index
    %c0_132 = arith.constant 0 : index
    %c0_133 = arith.constant 0 : index
    %366 = vector.load %arg3[%c3_131, %c0_132, %c0_133] : memref<5x64x256xbf16, #tpu.memory_space<vmem>>, vector<1x64x256xbf16>
    %367 = vector.shape_cast %366 : vector<1x64x256xbf16> to vector<64x256xbf16>
    %cst_134 = arith.constant dense<0.000000e+00> : vector<2x256xf32>
    %368 = tpu.matmul %365, %367, %cst_134 {dimension_numbers = #tpu.dot_dimension_numbers<[1], [0], [0], [1], [0, 0, 1, 1], [], []>} : vector<2x64xbf16>, vector<64x256xbf16>, vector<2x256xf32> -> vector<2x256xf32>
    %c5_135 = arith.constant 5 : index
    %c0_136 = arith.constant 0 : index
    %369 = vector.load %arg4[%c5_135, %c0_136] : memref<8x256xf32, #tpu.memory_space<vmem>>, vector<1x256xf32>
    %370 = vector.broadcast %369 : vector<1x256xf32> to vector<2x256xf32>
    %371 = arith.addf %368, %370 : vector<2x256xf32>
    %372 = vector.extract_strided_slice %364 {offsets = [0, 0], sizes = [2, 64], strides = [1, 1]} : vector<2x256xf32> to vector<2x64xf32>
    %373 = vector.extract_strided_slice %371 {offsets = [0, 0], sizes = [2, 64], strides = [1, 1]} : vector<2x256xf32> to vector<2x64xf32>
    %374 = arith.addf %372, %373 : vector<2x64xf32>
    %375 = arith.negf %374 : vector<2x64xf32>
    %376 = math.exp %375 : vector<2x64xf32>
    %cst_137 = arith.constant 1.000000e+00 : f32
    %377 = vector.broadcast %cst_137 : f32 to vector<2x64xf32>
    %378 = arith.addf %377, %376 : vector<2x64xf32>
    %379 = arith.divf %377, %378 : vector<2x64xf32>
    %380 = vector.extract_strided_slice %364 {offsets = [0, 64], sizes = [2, 64], strides = [1, 1]} : vector<2x256xf32> to vector<2x64xf32>
    %381 = vector.extract_strided_slice %371 {offsets = [0, 64], sizes = [2, 64], strides = [1, 1]} : vector<2x256xf32> to vector<2x64xf32>
    %382 = arith.addf %380, %381 : vector<2x64xf32>
    %383 = arith.negf %382 : vector<2x64xf32>
    %384 = math.exp %383 : vector<2x64xf32>
    %cst_138 = arith.constant 1.000000e+00 : f32
    %385 = vector.broadcast %cst_138 : f32 to vector<2x64xf32>
    %386 = arith.addf %385, %384 : vector<2x64xf32>
    %387 = arith.divf %385, %386 : vector<2x64xf32>
    %388 = vector.extract_strided_slice %364 {offsets = [0, 128], sizes = [2, 64], strides = [1, 1]} : vector<2x256xf32> to vector<2x64xf32>
    %389 = vector.extract_strided_slice %371 {offsets = [0, 128], sizes = [2, 64], strides = [1, 1]} : vector<2x256xf32> to vector<2x64xf32>
    %390 = arith.mulf %379, %389 : vector<2x64xf32>
    %391 = arith.addf %388, %390 : vector<2x64xf32>
    %392 = math.tanh %391 : vector<2x64xf32>
    %cst_139 = arith.constant 1.000000e+00 : f32
    %393 = vector.broadcast %cst_139 : f32 to vector<2x64xf32>
    %394 = arith.subf %393, %387 : vector<2x64xf32>
    %395 = arith.mulf %394, %392 : vector<2x64xf32>
    %396 = arith.mulf %387, %310 : vector<2x64xf32>
    %397 = arith.addf %395, %396 : vector<2x64xf32>
    %398 = arith.truncf %397 : vector<2x64xf32> to vector<2x64xbf16>
    %c4_140 = arith.constant 4 : index
    %c0_141 = arith.constant 0 : index
    %c0_142 = arith.constant 0 : index
    %399 = vector.load %arg3[%c4_140, %c0_141, %c0_142] : memref<5x64x256xbf16, #tpu.memory_space<vmem>>, vector<1x64x256xbf16>
    %400 = vector.shape_cast %399 : vector<1x64x256xbf16> to vector<64x256xbf16>
    %cst_143 = arith.constant dense<0.000000e+00> : vector<2x256xf32>
    %401 = tpu.matmul %398, %400, %cst_143 {dimension_numbers = #tpu.dot_dimension_numbers<[1], [0], [0], [1], [0, 0, 1, 1], [], []>} : vector<2x64xbf16>, vector<64x256xbf16>, vector<2x256xf32> -> vector<2x256xf32>
    %c6_144 = arith.constant 6 : index
    %c0_145 = arith.constant 0 : index
    %402 = vector.load %arg4[%c6_144, %c0_145] : memref<8x256xf32, #tpu.memory_space<vmem>>, vector<1x256xf32>
    %403 = vector.broadcast %402 : vector<1x256xf32> to vector<2x256xf32>
    %404 = arith.addf %401, %403 : vector<2x256xf32>
    %405 = arith.truncf %397 : vector<2x64xf32> to vector<2x64xbf16>
    %c1_146 = arith.constant 1 : index
    %c0_147 = arith.constant 0 : index
    %c0_148 = arith.constant 0 : index
    %406 = vector.load %arg3[%c1_146, %c0_147, %c0_148] : memref<5x64x256xbf16, #tpu.memory_space<vmem>>, vector<1x64x256xbf16>
    %407 = vector.shape_cast %406 : vector<1x64x256xbf16> to vector<64x256xbf16>
    %cst_149 = arith.constant dense<0.000000e+00> : vector<2x256xf32>
    %408 = tpu.matmul %405, %407, %cst_149 {dimension_numbers = #tpu.dot_dimension_numbers<[1], [0], [0], [1], [0, 0, 1, 1], [], []>} : vector<2x64xbf16>, vector<64x256xbf16>, vector<2x256xf32> -> vector<2x256xf32>
    %c3_150 = arith.constant 3 : index
    %c0_151 = arith.constant 0 : index
    %409 = vector.load %arg4[%c3_150, %c0_151] : memref<8x256xf32, #tpu.memory_space<vmem>>, vector<1x256xf32>
    %410 = vector.broadcast %409 : vector<1x256xf32> to vector<2x256xf32>
    %411 = arith.addf %408, %410 : vector<2x256xf32>
    %412 = arith.truncf %357 : vector<2x64xf32> to vector<2x64xbf16>
    %c0_152 = arith.constant 0 : index
    %c0_153 = arith.constant 0 : index
    %c0_154 = arith.constant 0 : index
    %413 = vector.load %arg3[%c0_152, %c0_153, %c0_154] : memref<5x64x256xbf16, #tpu.memory_space<vmem>>, vector<1x64x256xbf16>
    %414 = vector.shape_cast %413 : vector<1x64x256xbf16> to vector<64x256xbf16>
    %cst_155 = arith.constant dense<0.000000e+00> : vector<2x256xf32>
    %415 = tpu.matmul %412, %414, %cst_155 {dimension_numbers = #tpu.dot_dimension_numbers<[1], [0], [0], [1], [0, 0, 1, 1], [], []>} : vector<2x64xbf16>, vector<64x256xbf16>, vector<2x256xf32> -> vector<2x256xf32>
    %c2_156 = arith.constant 2 : index
    %c0_157 = arith.constant 0 : index
    %416 = vector.load %arg4[%c2_156, %c0_157] : memref<8x256xf32, #tpu.memory_space<vmem>>, vector<1x256xf32>
    %417 = vector.broadcast %416 : vector<1x256xf32> to vector<2x256xf32>
    %418 = arith.addf %415, %417 : vector<2x256xf32>
    %419 = vector.extract_strided_slice %411 {offsets = [0, 0], sizes = [2, 64], strides = [1, 1]} : vector<2x256xf32> to vector<2x64xf32>
    %420 = vector.extract_strided_slice %418 {offsets = [0, 0], sizes = [2, 64], strides = [1, 1]} : vector<2x256xf32> to vector<2x64xf32>
    %421 = arith.addf %419, %420 : vector<2x64xf32>
    %422 = arith.negf %421 : vector<2x64xf32>
    %423 = math.exp %422 : vector<2x64xf32>
    %cst_158 = arith.constant 1.000000e+00 : f32
    %424 = vector.broadcast %cst_158 : f32 to vector<2x64xf32>
    %425 = arith.addf %424, %423 : vector<2x64xf32>
    %426 = arith.divf %424, %425 : vector<2x64xf32>
    %427 = vector.extract_strided_slice %411 {offsets = [0, 64], sizes = [2, 64], strides = [1, 1]} : vector<2x256xf32> to vector<2x64xf32>
    %428 = vector.extract_strided_slice %418 {offsets = [0, 64], sizes = [2, 64], strides = [1, 1]} : vector<2x256xf32> to vector<2x64xf32>
    %429 = arith.addf %427, %428 : vector<2x64xf32>
    %430 = arith.negf %429 : vector<2x64xf32>
    %431 = math.exp %430 : vector<2x64xf32>
    %cst_159 = arith.constant 1.000000e+00 : f32
    %432 = vector.broadcast %cst_159 : f32 to vector<2x64xf32>
    %433 = arith.addf %432, %431 : vector<2x64xf32>
    %434 = arith.divf %432, %433 : vector<2x64xf32>
    %435 = vector.extract_strided_slice %411 {offsets = [0, 128], sizes = [2, 64], strides = [1, 1]} : vector<2x256xf32> to vector<2x64xf32>
    %436 = vector.extract_strided_slice %418 {offsets = [0, 128], sizes = [2, 64], strides = [1, 1]} : vector<2x256xf32> to vector<2x64xf32>
    %437 = arith.mulf %426, %436 : vector<2x64xf32>
    %438 = arith.addf %435, %437 : vector<2x64xf32>
    %439 = math.tanh %438 : vector<2x64xf32>
    %cst_160 = arith.constant 1.000000e+00 : f32
    %440 = vector.broadcast %cst_160 : f32 to vector<2x64xf32>
    %441 = arith.subf %440, %434 : vector<2x64xf32>
    %442 = arith.mulf %441, %439 : vector<2x64xf32>
    %443 = arith.mulf %434, %357 : vector<2x64xf32>
    %444 = arith.addf %442, %443 : vector<2x64xf32>
    %445 = arith.truncf %444 : vector<2x64xf32> to vector<2x64xbf16>
    %c2_161 = arith.constant 2 : index
    %c0_162 = arith.constant 0 : index
    %c0_163 = arith.constant 0 : index
    %446 = vector.load %arg3[%c2_161, %c0_162, %c0_163] : memref<5x64x256xbf16, #tpu.memory_space<vmem>>, vector<1x64x256xbf16>
    %447 = vector.shape_cast %446 : vector<1x64x256xbf16> to vector<64x256xbf16>
    %cst_164 = arith.constant dense<0.000000e+00> : vector<2x256xf32>
    %448 = tpu.matmul %445, %447, %cst_164 {dimension_numbers = #tpu.dot_dimension_numbers<[1], [0], [0], [1], [0, 0, 1, 1], [], []>} : vector<2x64xbf16>, vector<64x256xbf16>, vector<2x256xf32> -> vector<2x256xf32>
    %c4_165 = arith.constant 4 : index
    %c0_166 = arith.constant 0 : index
    %449 = vector.load %arg4[%c4_165, %c0_166] : memref<8x256xf32, #tpu.memory_space<vmem>>, vector<1x256xf32>
    %450 = vector.broadcast %449 : vector<1x256xf32> to vector<2x256xf32>
    %451 = arith.addf %448, %450 : vector<2x256xf32>
    %452 = arith.truncf %397 : vector<2x64xf32> to vector<2x64xbf16>
    %c3_167 = arith.constant 3 : index
    %c0_168 = arith.constant 0 : index
    %c0_169 = arith.constant 0 : index
    %453 = vector.load %arg3[%c3_167, %c0_168, %c0_169] : memref<5x64x256xbf16, #tpu.memory_space<vmem>>, vector<1x64x256xbf16>
    %454 = vector.shape_cast %453 : vector<1x64x256xbf16> to vector<64x256xbf16>
    %cst_170 = arith.constant dense<0.000000e+00> : vector<2x256xf32>
    %455 = tpu.matmul %452, %454, %cst_170 {dimension_numbers = #tpu.dot_dimension_numbers<[1], [0], [0], [1], [0, 0, 1, 1], [], []>} : vector<2x64xbf16>, vector<64x256xbf16>, vector<2x256xf32> -> vector<2x256xf32>
    %c5_171 = arith.constant 5 : index
    %c0_172 = arith.constant 0 : index
    %456 = vector.load %arg4[%c5_171, %c0_172] : memref<8x256xf32, #tpu.memory_space<vmem>>, vector<1x256xf32>
    %457 = vector.broadcast %456 : vector<1x256xf32> to vector<2x256xf32>
    %458 = arith.addf %455, %457 : vector<2x256xf32>
    %459 = vector.extract_strided_slice %451 {offsets = [0, 0], sizes = [2, 64], strides = [1, 1]} : vector<2x256xf32> to vector<2x64xf32>
    %460 = vector.extract_strided_slice %458 {offsets = [0, 0], sizes = [2, 64], strides = [1, 1]} : vector<2x256xf32> to vector<2x64xf32>
    %461 = arith.addf %459, %460 : vector<2x64xf32>
    %462 = arith.negf %461 : vector<2x64xf32>
    %463 = math.exp %462 : vector<2x64xf32>
    %cst_173 = arith.constant 1.000000e+00 : f32
    %464 = vector.broadcast %cst_173 : f32 to vector<2x64xf32>
    %465 = arith.addf %464, %463 : vector<2x64xf32>
    %466 = arith.divf %464, %465 : vector<2x64xf32>
    %467 = vector.extract_strided_slice %451 {offsets = [0, 64], sizes = [2, 64], strides = [1, 1]} : vector<2x256xf32> to vector<2x64xf32>
    %468 = vector.extract_strided_slice %458 {offsets = [0, 64], sizes = [2, 64], strides = [1, 1]} : vector<2x256xf32> to vector<2x64xf32>
    %469 = arith.addf %467, %468 : vector<2x64xf32>
    %470 = arith.negf %469 : vector<2x64xf32>
    %471 = math.exp %470 : vector<2x64xf32>
    %cst_174 = arith.constant 1.000000e+00 : f32
    %472 = vector.broadcast %cst_174 : f32 to vector<2x64xf32>
    %473 = arith.addf %472, %471 : vector<2x64xf32>
    %474 = arith.divf %472, %473 : vector<2x64xf32>
    %475 = vector.extract_strided_slice %451 {offsets = [0, 128], sizes = [2, 64], strides = [1, 1]} : vector<2x256xf32> to vector<2x64xf32>
    %476 = vector.extract_strided_slice %458 {offsets = [0, 128], sizes = [2, 64], strides = [1, 1]} : vector<2x256xf32> to vector<2x64xf32>
    %477 = arith.mulf %466, %476 : vector<2x64xf32>
    %478 = arith.addf %475, %477 : vector<2x64xf32>
    %479 = math.tanh %478 : vector<2x64xf32>
    %cst_175 = arith.constant 1.000000e+00 : f32
    %480 = vector.broadcast %cst_175 : f32 to vector<2x64xf32>
    %481 = arith.subf %480, %474 : vector<2x64xf32>
    %482 = arith.mulf %481, %479 : vector<2x64xf32>
    %483 = arith.mulf %474, %397 : vector<2x64xf32>
    %484 = arith.addf %482, %483 : vector<2x64xf32>
    %485 = arith.truncf %484 : vector<2x64xf32> to vector<2x64xbf16>
    %c4_176 = arith.constant 4 : index
    %c0_177 = arith.constant 0 : index
    %c0_178 = arith.constant 0 : index
    %486 = vector.load %arg3[%c4_176, %c0_177, %c0_178] : memref<5x64x256xbf16, #tpu.memory_space<vmem>>, vector<1x64x256xbf16>
    %487 = vector.shape_cast %486 : vector<1x64x256xbf16> to vector<64x256xbf16>
    %cst_179 = arith.constant dense<0.000000e+00> : vector<2x256xf32>
    %488 = tpu.matmul %485, %487, %cst_179 {dimension_numbers = #tpu.dot_dimension_numbers<[1], [0], [0], [1], [0, 0, 1, 1], [], []>} : vector<2x64xbf16>, vector<64x256xbf16>, vector<2x256xf32> -> vector<2x256xf32>
    %c6_180 = arith.constant 6 : index
    %c0_181 = arith.constant 0 : index
    %489 = vector.load %arg4[%c6_180, %c0_181] : memref<8x256xf32, #tpu.memory_space<vmem>>, vector<1x256xf32>
    %490 = vector.broadcast %489 : vector<1x256xf32> to vector<2x256xf32>
    %491 = arith.addf %488, %490 : vector<2x256xf32>
    %492 = arith.truncf %484 : vector<2x64xf32> to vector<2x64xbf16>
    %c1_182 = arith.constant 1 : index
    %c0_183 = arith.constant 0 : index
    %c0_184 = arith.constant 0 : index
    %493 = vector.load %arg3[%c1_182, %c0_183, %c0_184] : memref<5x64x256xbf16, #tpu.memory_space<vmem>>, vector<1x64x256xbf16>
    %494 = vector.shape_cast %493 : vector<1x64x256xbf16> to vector<64x256xbf16>
    %cst_185 = arith.constant dense<0.000000e+00> : vector<2x256xf32>
    %495 = tpu.matmul %492, %494, %cst_185 {dimension_numbers = #tpu.dot_dimension_numbers<[1], [0], [0], [1], [0, 0, 1, 1], [], []>} : vector<2x64xbf16>, vector<64x256xbf16>, vector<2x256xf32> -> vector<2x256xf32>
    %c3_186 = arith.constant 3 : index
    %c0_187 = arith.constant 0 : index
    %496 = vector.load %arg4[%c3_186, %c0_187] : memref<8x256xf32, #tpu.memory_space<vmem>>, vector<1x256xf32>
    %497 = vector.broadcast %496 : vector<1x256xf32> to vector<2x256xf32>
    %498 = arith.addf %495, %497 : vector<2x256xf32>
    %499 = arith.truncf %444 : vector<2x64xf32> to vector<2x64xbf16>
    %c0_188 = arith.constant 0 : index
    %c0_189 = arith.constant 0 : index
    %c0_190 = arith.constant 0 : index
    %500 = vector.load %arg3[%c0_188, %c0_189, %c0_190] : memref<5x64x256xbf16, #tpu.memory_space<vmem>>, vector<1x64x256xbf16>
    %501 = vector.shape_cast %500 : vector<1x64x256xbf16> to vector<64x256xbf16>
    %cst_191 = arith.constant dense<0.000000e+00> : vector<2x256xf32>
    %502 = tpu.matmul %499, %501, %cst_191 {dimension_numbers = #tpu.dot_dimension_numbers<[1], [0], [0], [1], [0, 0, 1, 1], [], []>} : vector<2x64xbf16>, vector<64x256xbf16>, vector<2x256xf32> -> vector<2x256xf32>
    %c2_192 = arith.constant 2 : index
    %c0_193 = arith.constant 0 : index
    %503 = vector.load %arg4[%c2_192, %c0_193] : memref<8x256xf32, #tpu.memory_space<vmem>>, vector<1x256xf32>
    %504 = vector.broadcast %503 : vector<1x256xf32> to vector<2x256xf32>
    %505 = arith.addf %502, %504 : vector<2x256xf32>
    %506 = vector.extract_strided_slice %498 {offsets = [0, 0], sizes = [2, 64], strides = [1, 1]} : vector<2x256xf32> to vector<2x64xf32>
    %507 = vector.extract_strided_slice %505 {offsets = [0, 0], sizes = [2, 64], strides = [1, 1]} : vector<2x256xf32> to vector<2x64xf32>
    %508 = arith.addf %506, %507 : vector<2x64xf32>
    %509 = arith.negf %508 : vector<2x64xf32>
    %510 = math.exp %509 : vector<2x64xf32>
    %cst_194 = arith.constant 1.000000e+00 : f32
    %511 = vector.broadcast %cst_194 : f32 to vector<2x64xf32>
    %512 = arith.addf %511, %510 : vector<2x64xf32>
    %513 = arith.divf %511, %512 : vector<2x64xf32>
    %514 = vector.extract_strided_slice %498 {offsets = [0, 64], sizes = [2, 64], strides = [1, 1]} : vector<2x256xf32> to vector<2x64xf32>
    %515 = vector.extract_strided_slice %505 {offsets = [0, 64], sizes = [2, 64], strides = [1, 1]} : vector<2x256xf32> to vector<2x64xf32>
    %516 = arith.addf %514, %515 : vector<2x64xf32>
    %517 = arith.negf %516 : vector<2x64xf32>
    %518 = math.exp %517 : vector<2x64xf32>
    %cst_195 = arith.constant 1.000000e+00 : f32
    %519 = vector.broadcast %cst_195 : f32 to vector<2x64xf32>
    %520 = arith.addf %519, %518 : vector<2x64xf32>
    %521 = arith.divf %519, %520 : vector<2x64xf32>
    %522 = vector.extract_strided_slice %498 {offsets = [0, 128], sizes = [2, 64], strides = [1, 1]} : vector<2x256xf32> to vector<2x64xf32>
    %523 = vector.extract_strided_slice %505 {offsets = [0, 128], sizes = [2, 64], strides = [1, 1]} : vector<2x256xf32> to vector<2x64xf32>
    %524 = arith.mulf %513, %523 : vector<2x64xf32>
    %525 = arith.addf %522, %524 : vector<2x64xf32>
    %526 = math.tanh %525 : vector<2x64xf32>
    %cst_196 = arith.constant 1.000000e+00 : f32
    %527 = vector.broadcast %cst_196 : f32 to vector<2x64xf32>
    %528 = arith.subf %527, %521 : vector<2x64xf32>
    %529 = arith.mulf %528, %526 : vector<2x64xf32>
    %530 = arith.mulf %521, %444 : vector<2x64xf32>
    %531 = arith.addf %529, %530 : vector<2x64xf32>
    %532 = arith.truncf %531 : vector<2x64xf32> to vector<2x64xbf16>
    %c2_197 = arith.constant 2 : index
    %c0_198 = arith.constant 0 : index
    %c0_199 = arith.constant 0 : index
    %533 = vector.load %arg3[%c2_197, %c0_198, %c0_199] : memref<5x64x256xbf16, #tpu.memory_space<vmem>>, vector<1x64x256xbf16>
    %534 = vector.shape_cast %533 : vector<1x64x256xbf16> to vector<64x256xbf16>
    %cst_200 = arith.constant dense<0.000000e+00> : vector<2x256xf32>
    %535 = tpu.matmul %532, %534, %cst_200 {dimension_numbers = #tpu.dot_dimension_numbers<[1], [0], [0], [1], [0, 0, 1, 1], [], []>} : vector<2x64xbf16>, vector<64x256xbf16>, vector<2x256xf32> -> vector<2x256xf32>
    %c4_201 = arith.constant 4 : index
    %c0_202 = arith.constant 0 : index
    %536 = vector.load %arg4[%c4_201, %c0_202] : memref<8x256xf32, #tpu.memory_space<vmem>>, vector<1x256xf32>
    %537 = vector.broadcast %536 : vector<1x256xf32> to vector<2x256xf32>
    %538 = arith.addf %535, %537 : vector<2x256xf32>
    %539 = arith.truncf %484 : vector<2x64xf32> to vector<2x64xbf16>
    %c3_203 = arith.constant 3 : index
    %c0_204 = arith.constant 0 : index
    %c0_205 = arith.constant 0 : index
    %540 = vector.load %arg3[%c3_203, %c0_204, %c0_205] : memref<5x64x256xbf16, #tpu.memory_space<vmem>>, vector<1x64x256xbf16>
    %541 = vector.shape_cast %540 : vector<1x64x256xbf16> to vector<64x256xbf16>
    %cst_206 = arith.constant dense<0.000000e+00> : vector<2x256xf32>
    %542 = tpu.matmul %539, %541, %cst_206 {dimension_numbers = #tpu.dot_dimension_numbers<[1], [0], [0], [1], [0, 0, 1, 1], [], []>} : vector<2x64xbf16>, vector<64x256xbf16>, vector<2x256xf32> -> vector<2x256xf32>
    %c5_207 = arith.constant 5 : index
    %c0_208 = arith.constant 0 : index
    %543 = vector.load %arg4[%c5_207, %c0_208] : memref<8x256xf32, #tpu.memory_space<vmem>>, vector<1x256xf32>
    %544 = vector.broadcast %543 : vector<1x256xf32> to vector<2x256xf32>
    %545 = arith.addf %542, %544 : vector<2x256xf32>
    %546 = vector.extract_strided_slice %538 {offsets = [0, 0], sizes = [2, 64], strides = [1, 1]} : vector<2x256xf32> to vector<2x64xf32>
    %547 = vector.extract_strided_slice %545 {offsets = [0, 0], sizes = [2, 64], strides = [1, 1]} : vector<2x256xf32> to vector<2x64xf32>
    %548 = arith.addf %546, %547 : vector<2x64xf32>
    %549 = arith.negf %548 : vector<2x64xf32>
    %550 = math.exp %549 : vector<2x64xf32>
    %cst_209 = arith.constant 1.000000e+00 : f32
    %551 = vector.broadcast %cst_209 : f32 to vector<2x64xf32>
    %552 = arith.addf %551, %550 : vector<2x64xf32>
    %553 = arith.divf %551, %552 : vector<2x64xf32>
    %554 = vector.extract_strided_slice %538 {offsets = [0, 64], sizes = [2, 64], strides = [1, 1]} : vector<2x256xf32> to vector<2x64xf32>
    %555 = vector.extract_strided_slice %545 {offsets = [0, 64], sizes = [2, 64], strides = [1, 1]} : vector<2x256xf32> to vector<2x64xf32>
    %556 = arith.addf %554, %555 : vector<2x64xf32>
    %557 = arith.negf %556 : vector<2x64xf32>
    %558 = math.exp %557 : vector<2x64xf32>
    %cst_210 = arith.constant 1.000000e+00 : f32
    %559 = vector.broadcast %cst_210 : f32 to vector<2x64xf32>
    %560 = arith.addf %559, %558 : vector<2x64xf32>
    %561 = arith.divf %559, %560 : vector<2x64xf32>
    %562 = vector.extract_strided_slice %538 {offsets = [0, 128], sizes = [2, 64], strides = [1, 1]} : vector<2x256xf32> to vector<2x64xf32>
    %563 = vector.extract_strided_slice %545 {offsets = [0, 128], sizes = [2, 64], strides = [1, 1]} : vector<2x256xf32> to vector<2x64xf32>
    %564 = arith.mulf %553, %563 : vector<2x64xf32>
    %565 = arith.addf %562, %564 : vector<2x64xf32>
    %566 = math.tanh %565 : vector<2x64xf32>
    %cst_211 = arith.constant 1.000000e+00 : f32
    %567 = vector.broadcast %cst_211 : f32 to vector<2x64xf32>
    %568 = arith.subf %567, %561 : vector<2x64xf32>
    %569 = arith.mulf %568, %566 : vector<2x64xf32>
    %570 = arith.mulf %561, %484 : vector<2x64xf32>
    %571 = arith.addf %569, %570 : vector<2x64xf32>
    %572 = arith.truncf %571 : vector<2x64xf32> to vector<2x64xbf16>
    %c4_212 = arith.constant 4 : index
    %c0_213 = arith.constant 0 : index
    %c0_214 = arith.constant 0 : index
    %573 = vector.load %arg3[%c4_212, %c0_213, %c0_214] : memref<5x64x256xbf16, #tpu.memory_space<vmem>>, vector<1x64x256xbf16>
    %574 = vector.shape_cast %573 : vector<1x64x256xbf16> to vector<64x256xbf16>
    %cst_215 = arith.constant dense<0.000000e+00> : vector<2x256xf32>
    %575 = tpu.matmul %572, %574, %cst_215 {dimension_numbers = #tpu.dot_dimension_numbers<[1], [0], [0], [1], [0, 0, 1, 1], [], []>} : vector<2x64xbf16>, vector<64x256xbf16>, vector<2x256xf32> -> vector<2x256xf32>
    %c6_216 = arith.constant 6 : index
    %c0_217 = arith.constant 0 : index
    %576 = vector.load %arg4[%c6_216, %c0_217] : memref<8x256xf32, #tpu.memory_space<vmem>>, vector<1x256xf32>
    %577 = vector.broadcast %576 : vector<1x256xf32> to vector<2x256xf32>
    %578 = arith.addf %575, %577 : vector<2x256xf32>
    %579 = arith.truncf %571 : vector<2x64xf32> to vector<2x64xbf16>
    %c1_218 = arith.constant 1 : index
    %c0_219 = arith.constant 0 : index
    %c0_220 = arith.constant 0 : index
    %580 = vector.load %arg3[%c1_218, %c0_219, %c0_220] : memref<5x64x256xbf16, #tpu.memory_space<vmem>>, vector<1x64x256xbf16>
    %581 = vector.shape_cast %580 : vector<1x64x256xbf16> to vector<64x256xbf16>
    %cst_221 = arith.constant dense<0.000000e+00> : vector<2x256xf32>
    %582 = tpu.matmul %579, %581, %cst_221 {dimension_numbers = #tpu.dot_dimension_numbers<[1], [0], [0], [1], [0, 0, 1, 1], [], []>} : vector<2x64xbf16>, vector<64x256xbf16>, vector<2x256xf32> -> vector<2x256xf32>
    %c3_222 = arith.constant 3 : index
    %c0_223 = arith.constant 0 : index
    %583 = vector.load %arg4[%c3_222, %c0_223] : memref<8x256xf32, #tpu.memory_space<vmem>>, vector<1x256xf32>
    %584 = vector.broadcast %583 : vector<1x256xf32> to vector<2x256xf32>
    %585 = arith.addf %582, %584 : vector<2x256xf32>
    %586 = arith.truncf %531 : vector<2x64xf32> to vector<2x64xbf16>
    %c0_224 = arith.constant 0 : index
    %c0_225 = arith.constant 0 : index
    %c0_226 = arith.constant 0 : index
    %587 = vector.load %arg3[%c0_224, %c0_225, %c0_226] : memref<5x64x256xbf16, #tpu.memory_space<vmem>>, vector<1x64x256xbf16>
    %588 = vector.shape_cast %587 : vector<1x64x256xbf16> to vector<64x256xbf16>
    %cst_227 = arith.constant dense<0.000000e+00> : vector<2x256xf32>
    %589 = tpu.matmul %586, %588, %cst_227 {dimension_numbers = #tpu.dot_dimension_numbers<[1], [0], [0], [1], [0, 0, 1, 1], [], []>} : vector<2x64xbf16>, vector<64x256xbf16>, vector<2x256xf32> -> vector<2x256xf32>
    %c2_228 = arith.constant 2 : index
    %c0_229 = arith.constant 0 : index
    %590 = vector.load %arg4[%c2_228, %c0_229] : memref<8x256xf32, #tpu.memory_space<vmem>>, vector<1x256xf32>
    %591 = vector.broadcast %590 : vector<1x256xf32> to vector<2x256xf32>
    %592 = arith.addf %589, %591 : vector<2x256xf32>
    %593 = vector.extract_strided_slice %585 {offsets = [0, 0], sizes = [2, 64], strides = [1, 1]} : vector<2x256xf32> to vector<2x64xf32>
    %594 = vector.extract_strided_slice %592 {offsets = [0, 0], sizes = [2, 64], strides = [1, 1]} : vector<2x256xf32> to vector<2x64xf32>
    %595 = arith.addf %593, %594 : vector<2x64xf32>
    %596 = arith.negf %595 : vector<2x64xf32>
    %597 = math.exp %596 : vector<2x64xf32>
    %cst_230 = arith.constant 1.000000e+00 : f32
    %598 = vector.broadcast %cst_230 : f32 to vector<2x64xf32>
    %599 = arith.addf %598, %597 : vector<2x64xf32>
    %600 = arith.divf %598, %599 : vector<2x64xf32>
    %601 = vector.extract_strided_slice %585 {offsets = [0, 64], sizes = [2, 64], strides = [1, 1]} : vector<2x256xf32> to vector<2x64xf32>
    %602 = vector.extract_strided_slice %592 {offsets = [0, 64], sizes = [2, 64], strides = [1, 1]} : vector<2x256xf32> to vector<2x64xf32>
    %603 = arith.addf %601, %602 : vector<2x64xf32>
    %604 = arith.negf %603 : vector<2x64xf32>
    %605 = math.exp %604 : vector<2x64xf32>
    %cst_231 = arith.constant 1.000000e+00 : f32
    %606 = vector.broadcast %cst_231 : f32 to vector<2x64xf32>
    %607 = arith.addf %606, %605 : vector<2x64xf32>
    %608 = arith.divf %606, %607 : vector<2x64xf32>
    %609 = vector.extract_strided_slice %585 {offsets = [0, 128], sizes = [2, 64], strides = [1, 1]} : vector<2x256xf32> to vector<2x64xf32>
    %610 = vector.extract_strided_slice %592 {offsets = [0, 128], sizes = [2, 64], strides = [1, 1]} : vector<2x256xf32> to vector<2x64xf32>
    %611 = arith.mulf %600, %610 : vector<2x64xf32>
    %612 = arith.addf %609, %611 : vector<2x64xf32>
    %613 = math.tanh %612 : vector<2x64xf32>
    %cst_232 = arith.constant 1.000000e+00 : f32
    %614 = vector.broadcast %cst_232 : f32 to vector<2x64xf32>
    %615 = arith.subf %614, %608 : vector<2x64xf32>
    %616 = arith.mulf %615, %613 : vector<2x64xf32>
    %617 = arith.mulf %608, %531 : vector<2x64xf32>
    %618 = arith.addf %616, %617 : vector<2x64xf32>
    %619 = arith.truncf %618 : vector<2x64xf32> to vector<2x64xbf16>
    %c2_233 = arith.constant 2 : index
    %c0_234 = arith.constant 0 : index
    %c0_235 = arith.constant 0 : index
    %620 = vector.load %arg3[%c2_233, %c0_234, %c0_235] : memref<5x64x256xbf16, #tpu.memory_space<vmem>>, vector<1x64x256xbf16>
    %621 = vector.shape_cast %620 : vector<1x64x256xbf16> to vector<64x256xbf16>
    %cst_236 = arith.constant dense<0.000000e+00> : vector<2x256xf32>
    %622 = tpu.matmul %619, %621, %cst_236 {dimension_numbers = #tpu.dot_dimension_numbers<[1], [0], [0], [1], [0, 0, 1, 1], [], []>} : vector<2x64xbf16>, vector<64x256xbf16>, vector<2x256xf32> -> vector<2x256xf32>
    %c4_237 = arith.constant 4 : index
    %c0_238 = arith.constant 0 : index
    %623 = vector.load %arg4[%c4_237, %c0_238] : memref<8x256xf32, #tpu.memory_space<vmem>>, vector<1x256xf32>
    %624 = vector.broadcast %623 : vector<1x256xf32> to vector<2x256xf32>
    %625 = arith.addf %622, %624 : vector<2x256xf32>
    %626 = arith.truncf %571 : vector<2x64xf32> to vector<2x64xbf16>
    %c3_239 = arith.constant 3 : index
    %c0_240 = arith.constant 0 : index
    %c0_241 = arith.constant 0 : index
    %627 = vector.load %arg3[%c3_239, %c0_240, %c0_241] : memref<5x64x256xbf16, #tpu.memory_space<vmem>>, vector<1x64x256xbf16>
    %628 = vector.shape_cast %627 : vector<1x64x256xbf16> to vector<64x256xbf16>
    %cst_242 = arith.constant dense<0.000000e+00> : vector<2x256xf32>
    %629 = tpu.matmul %626, %628, %cst_242 {dimension_numbers = #tpu.dot_dimension_numbers<[1], [0], [0], [1], [0, 0, 1, 1], [], []>} : vector<2x64xbf16>, vector<64x256xbf16>, vector<2x256xf32> -> vector<2x256xf32>
    %c5_243 = arith.constant 5 : index
    %c0_244 = arith.constant 0 : index
    %630 = vector.load %arg4[%c5_243, %c0_244] : memref<8x256xf32, #tpu.memory_space<vmem>>, vector<1x256xf32>
    %631 = vector.broadcast %630 : vector<1x256xf32> to vector<2x256xf32>
    %632 = arith.addf %629, %631 : vector<2x256xf32>
    %633 = vector.extract_strided_slice %625 {offsets = [0, 0], sizes = [2, 64], strides = [1, 1]} : vector<2x256xf32> to vector<2x64xf32>
    %634 = vector.extract_strided_slice %632 {offsets = [0, 0], sizes = [2, 64], strides = [1, 1]} : vector<2x256xf32> to vector<2x64xf32>
    %635 = arith.addf %633, %634 : vector<2x64xf32>
    %636 = arith.negf %635 : vector<2x64xf32>
    %637 = math.exp %636 : vector<2x64xf32>
    %cst_245 = arith.constant 1.000000e+00 : f32
    %638 = vector.broadcast %cst_245 : f32 to vector<2x64xf32>
    %639 = arith.addf %638, %637 : vector<2x64xf32>
    %640 = arith.divf %638, %639 : vector<2x64xf32>
    %641 = vector.extract_strided_slice %625 {offsets = [0, 64], sizes = [2, 64], strides = [1, 1]} : vector<2x256xf32> to vector<2x64xf32>
    %642 = vector.extract_strided_slice %632 {offsets = [0, 64], sizes = [2, 64], strides = [1, 1]} : vector<2x256xf32> to vector<2x64xf32>
    %643 = arith.addf %641, %642 : vector<2x64xf32>
    %644 = arith.negf %643 : vector<2x64xf32>
    %645 = math.exp %644 : vector<2x64xf32>
    %cst_246 = arith.constant 1.000000e+00 : f32
    %646 = vector.broadcast %cst_246 : f32 to vector<2x64xf32>
    %647 = arith.addf %646, %645 : vector<2x64xf32>
    %648 = arith.divf %646, %647 : vector<2x64xf32>
    %649 = vector.extract_strided_slice %625 {offsets = [0, 128], sizes = [2, 64], strides = [1, 1]} : vector<2x256xf32> to vector<2x64xf32>
    %650 = vector.extract_strided_slice %632 {offsets = [0, 128], sizes = [2, 64], strides = [1, 1]} : vector<2x256xf32> to vector<2x64xf32>
    %651 = arith.mulf %640, %650 : vector<2x64xf32>
    %652 = arith.addf %649, %651 : vector<2x64xf32>
    %653 = math.tanh %652 : vector<2x64xf32>
    %cst_247 = arith.constant 1.000000e+00 : f32
    %654 = vector.broadcast %cst_247 : f32 to vector<2x64xf32>
    %655 = arith.subf %654, %648 : vector<2x64xf32>
    %656 = arith.mulf %655, %653 : vector<2x64xf32>
    %657 = arith.mulf %648, %571 : vector<2x64xf32>
    %658 = arith.addf %656, %657 : vector<2x64xf32>
    %659 = arith.truncf %658 : vector<2x64xf32> to vector<2x64xbf16>
    %c4_248 = arith.constant 4 : index
    %c0_249 = arith.constant 0 : index
    %c0_250 = arith.constant 0 : index
    %660 = vector.load %arg3[%c4_248, %c0_249, %c0_250] : memref<5x64x256xbf16, #tpu.memory_space<vmem>>, vector<1x64x256xbf16>
    %661 = vector.shape_cast %660 : vector<1x64x256xbf16> to vector<64x256xbf16>
    %cst_251 = arith.constant dense<0.000000e+00> : vector<2x256xf32>
    %662 = tpu.matmul %659, %661, %cst_251 {dimension_numbers = #tpu.dot_dimension_numbers<[1], [0], [0], [1], [0, 0, 1, 1], [], []>} : vector<2x64xbf16>, vector<64x256xbf16>, vector<2x256xf32> -> vector<2x256xf32>
    %c6_252 = arith.constant 6 : index
    %c0_253 = arith.constant 0 : index
    %663 = vector.load %arg4[%c6_252, %c0_253] : memref<8x256xf32, #tpu.memory_space<vmem>>, vector<1x256xf32>
    %664 = vector.broadcast %663 : vector<1x256xf32> to vector<2x256xf32>
    %665 = arith.addf %662, %664 : vector<2x256xf32>
    %666 = vector.extract_strided_slice %317 {offsets = [0, 0], sizes = [2, 128], strides = [1, 1]} : vector<2x256xf32> to vector<2x128xf32>
    %667 = vector.extract_strided_slice %404 {offsets = [0, 0], sizes = [2, 128], strides = [1, 1]} : vector<2x256xf32> to vector<2x128xf32>
    %668 = vector.extract_strided_slice %491 {offsets = [0, 0], sizes = [2, 128], strides = [1, 1]} : vector<2x256xf32> to vector<2x128xf32>
    %669 = vector.extract_strided_slice %578 {offsets = [0, 0], sizes = [2, 128], strides = [1, 1]} : vector<2x256xf32> to vector<2x128xf32>
    %670 = vector.extract_strided_slice %665 {offsets = [0, 0], sizes = [2, 128], strides = [1, 1]} : vector<2x256xf32> to vector<2x128xf32>
    %671 = tpu.concatenate %666, %667, %668, %669, %670 in 1 : vector<2x128xf32>, vector<2x128xf32>, vector<2x128xf32>, vector<2x128xf32>, vector<2x128xf32> -> vector<2x640xf32>
    %c0_254 = arith.constant 0 : index
    %c0_255 = arith.constant 0 : index
    %672 = vector.load %arg6[%c0_254, %c0_255] : memref<2x640xf32, #tpu.memory_space<vmem>>, vector<2x640xf32>
    tpu.vector_store %arg6[%c0_254, %c0_255], %671 {strides = array<i32>} : memref<2x640xf32, #tpu.memory_space<vmem>>, vector<2x640xf32>,
    %673 = vector.extract_strided_slice %317 {offsets = [0, 128], sizes = [2, 128], strides = [1, 1]} : vector<2x256xf32> to vector<2x128xf32>
    %674 = vector.extract_strided_slice %404 {offsets = [0, 128], sizes = [2, 128], strides = [1, 1]} : vector<2x256xf32> to vector<2x128xf32>
    %675 = vector.extract_strided_slice %491 {offsets = [0, 128], sizes = [2, 128], strides = [1, 1]} : vector<2x256xf32> to vector<2x128xf32>
    %676 = vector.extract_strided_slice %578 {offsets = [0, 128], sizes = [2, 128], strides = [1, 1]} : vector<2x256xf32> to vector<2x128xf32>
    %677 = vector.extract_strided_slice %665 {offsets = [0, 128], sizes = [2, 128], strides = [1, 1]} : vector<2x256xf32> to vector<2x128xf32>
    %678 = tpu.concatenate %673, %674, %675, %676, %677 in 1 : vector<2x128xf32>, vector<2x128xf32>, vector<2x128xf32>, vector<2x128xf32>, vector<2x128xf32> -> vector<2x640xf32>
    %c0_256 = arith.constant 0 : index
    %c0_257 = arith.constant 0 : index
    %679 = vector.load %arg5[%c0_256, %c0_257] : memref<2x640xf32, #tpu.memory_space<vmem>>, vector<2x640xf32>
    tpu.vector_store %arg5[%c0_256, %c0_257], %678 {strides = array<i32>} : memref<2x640xf32, #tpu.memory_space<vmem>>, vector<2x640xf32>,
    return
  }
}

</mosaic_0001>

<bundles_post_ra>
// kernel: interpolationrl_forward.1
= control target key start
LH: loop header
LB: loop body
LE: loop exit
PB: predicated region body
PF: predicated region fallthrough
CT: control target
= control target key end

     0   :  { %12 = vsyncpa [#allocation3], 0  ;;  %s4133_s0 = inlined_call_operand.vmem [shape: bf16[8,256], index: 0, kind: input, shape index: {}]   ;;  %s4134_s1 = inlined_call_operand.vmem [shape: bf16[2,256], index: 1, kind: input, shape index: {}]   ;;  %s4135_s2 = inlined_call_operand.hbm [shape: bf16[2,256,256], index: 2, kind: input, shape index: {}]   ;;  %s4136_s3 = inlined_call_operand.hbm [shape: bf16[5,64,256], index: 3, kind: input, shape index: {}]   ;;  %s4137_s4 = inlined_call_operand.vmem [shape: f32[8,256], index: 4, kind: input, shape index: {}]   ;;  %s4138_s5 = inlined_call_operand.hbm [shape: f32[2,640], index: 5, kind: output, shape index: {0}]   ;;  %s4139_s6 = inlined_call_operand.hbm [shape: f32[2,640], index: 6, kind: output, shape index: {1}]  }
   0x1   :  { %13 = vsyncpa [#allocation6], 0 }
   0x2   :  { %14 = vsyncpa [#allocation4], 0 }
   0x3   :  { %15 = vsyncpa [#allocation9], 0  ;;  %s3313_s21 = smov [#allocation2]  }
   0x4   :  { %s25_s22 = sshll.u32 %s3313_s21, 4  ;;  %s26_s22 = int_to_ptr.vmem [resolvable:$true] %s25_s22 }
   0x5   :  { %s3233_s23 = scalar_lea.vmem %s26_s22, 8192  ;;  %p3238_p1 = scmp.lt.s32.totalorder %s26_s22, %s26_s22 }
   0x6   :  { %p3234_p0 = scmp.ne.s32.totalorder %s26_s22, %s3233_s23  ;;  %p3239_p2 = scmp.lt.s32.totalorder %s3233_s23, %s3233_s23 }
   0x8   :  { %p3240_p3 = por %p3239_p2, %p3238_p1 }
   0xa   :  { %p3241_p4 = pnand %p3240_p3, %p3234_p0 }
   0xc   :  { %3244 = shalt.err (!%p3241_p4)
}
   0xd   :  { %s3314_s24 = smov 128   ;;  %s3315_s25 = smov 8  }
   0xe   :  { %31 = dma.hbm_to_vmem [thread:$0]  %s4135_s2, 8192, %s26_s22, [#allocation3], %s3314_s24, %s3314_s24, %s3315_s25  }
   0xf   :  { %s3316_s28 = smov [#allocation5]  }
  0x10   :  { %s37_s29 = sshll.u32 %s3316_s28, 4  ;;  %s38_s29 = int_to_ptr.vmem [resolvable:$true] %s37_s29 }
  0x11   :  { %s3253_s30 = scalar_lea.vmem %s38_s29, 5120  ;;  %p3258_p6 = scmp.lt.s32.totalorder %s38_s29, %s38_s29 }
  0x12   :  { %p3254_p5 = scmp.ne.s32.totalorder %s38_s29, %s3253_s30  ;;  %p3259_p7 = scmp.lt.s32.totalorder %s3253_s30, %s3253_s30 }
  0x14   :  { %p3260_p8 = por %p3259_p7, %p3258_p6 }
  0x16   :  { %p3261_p9 = pnand %p3260_p8, %p3254_p5 }
  0x18   :  { %3264 = shalt.err (!%p3261_p9)
}
  0x19   :  { %43 = dma.hbm_to_vmem [thread:$0]  %s4136_s3, 5120, %s38_s29, [#allocation6], %s3314_s24, %s3314_s24, %s3315_s25  }
  0x1a   :  { %3305 = dma.done.wait [#allocation3], 8192  }
  0x1b   :  { %3306 = vsyncadd [#allocation3], 4294959104 }
  0x1c   :  { %3307 = dma.done.wait [#allocation6], 5120  }
  0x1d   :  { %3308 = vsyncadd [#allocation6], 4294962176  ;;  %v2947_v0 = vld [vmem:[#allocation2 + $0x74] ss:$8 sps:$4 sm:$0xff]   ;;  %v2949_v1 = vld [vmem:[#allocation2 + $0x70] ss:$8 sps:$4 sm:$0xff]   ;;  %v88_v9 = vlaneseq }
  0x1e   :  { %278 = vmatprep.subr.bf16.mxu0 %v2947_v0  ;;  %v2950_v2 = vld [vmem:[#allocation2 + $0x64] ss:$8 sps:$4 sm:$0xff]   ;;  %v2952_v3 = vld [vmem:[#allocation2 + $0x60] ss:$8 sps:$4 sm:$0xff]   ;;  %v2953_v4 = vld [vmem:[#allocation2 + $0x54] ss:$8 sps:$4 sm:$0xff]  }
  0x1f   :  { %279 = vmatpush1.bf16.msra.mxu0 %v2949_v1  ;;  %v2955_v5 = vld [vmem:[#allocation2 + $0x50] ss:$8 sps:$4 sm:$0xff]   ;;  %v2956_v6 = vld [vmem:[#allocation2 + $0x44] ss:$8 sps:$4 sm:$0xff]   ;;  %v2958_v7 = vld [vmem:[#allocation2 + $0x40] ss:$8 sps:$4 sm:$0xff]  }
  0x20   :  { %280 = vmatprep.subr.bf16.mxu0 %v2950_v2  ;;  %v2959_v8 = vld [vmem:[#allocation2 + $0x34] ss:$8 sps:$4 sm:$0xff]   ;;  %v3317_v10 = vmov 1966171168   ;;  %v2961_v12 = vld [vmem:[#allocation2 + $0x30] ss:$8 sps:$4 sm:$0xff]  }
  0x21   :  { %v103_v11 = vunpack.c.l.s4 %v3317_v10  ;;  %v2962_v13 = vld [vmem:[#allocation2 + $0x24] ss:$8 sps:$4 sm:$0xff]   ;;  %v3364_v14 = vshrl.u32 %v88_v9, 7  ;;  %v2964_v16 = vld [vmem:[#allocation2 + $0x20] ss:$8 sps:$4 sm:$0xff]   ;;  %vm635_vm0 = vcmask 523264  }
  0x22   :  { %v2965_v17 = vld [vmem:[#allocation2 + $0x14] ss:$8 sps:$4 sm:$0xff]   ;;  %v2967_v19 = vld [vmem:[#allocation2 + $0x10] ss:$8 sps:$4 sm:$0xff]   ;;  %v2968_v24 = vld [vmem:[#allocation2 + $0x4] ss:$8 sps:$4 sm:$0xff]  }
  0x23   :  { %281 = vmatpush1.bf16.msra.mxu0 %v2952_v3  ;;  %4155 = vst [vmem:[#allocation14_spill] sm:$0xff] %v3364_v14  ;;  %v104_v15 = vunpack.c.0.s8 %v103_v11  ;;  %v3372_v20 = vld.sshfl [vmem:[%s4134_s1] sm:$0x11 pattern:$0x75316420]  ;;  %s3319_s15 = smov 64  }
  0x24   :  { %282 = vmatprep.subr.bf16.mxu0 %v2953_v4  ;;  %v101_v21 = vcombine.high %v3372_v20, %v3372_v20  ;;  %v2995_v22 = vld [vmem:[#allocation2 + $0x174] ss:$8 sps:$4 sm:$0xff]   ;;  %v2997_v23 = vld [vmem:[#allocation2 + $0x170] ss:$8 sps:$4 sm:$0xff]   ;;  %v2998_v26 = vld [vmem:[#allocation2 + $0x164] ss:$8 sps:$4 sm:$0xff]  }
  0x25   :  { %v3367_v18 = vsub.s32 %v104_v15, %v3364_v14  ;;  %532 = vmatprep.subr.bf16.mxu1 %v2995_v22  ;;  %v3000_v27 = vld [vmem:[#allocation2 + $0x160] ss:$8 sps:$4 sm:$0xff]   ;;  %v3001_v28 = vld [vmem:[#allocation2 + $0x154] ss:$8 sps:$4 sm:$0xff]   ;;  %v3003_v31 = vld [vmem:[#allocation2 + $0x150] ss:$8 sps:$4 sm:$0xff]  }
  0x26   :  { %533 = vmatpush1.bf16.msra.mxu1 %v2997_v23  ;;  %v2970_v29 = vld [vmem:[#allocation2] ss:$8 sps:$4 sm:$0xff]   ;;  %v2971_v30 = vld [vmem:[#allocation2 + $0xf4] ss:$8 sps:$4 sm:$0xff]   ;;  %v3004_v32 = vld [vmem:[#allocation2 + $0x144] ss:$8 sps:$4 sm:$0xff]  }
  0x27   :  { %283 = vmatpush1.bf16.msra.mxu0 %v2955_v5  ;;  %v115_v25 = vrot.slane %v101_v21, %v3367_v18  ;;  %534 = vmatprep.subr.bf16.mxu1 %v2998_v26  ;;  %v2973_v33 = vld [vmem:[#allocation2 + $0xf0] ss:$8 sps:$4 sm:$0xff]   ;;  %v2974_v34 = vld [vmem:[#allocation2 + $0xe4] ss:$8 sps:$4 sm:$0xff]   ;;  %v3006_v35 = vld [vmem:[#allocation2 + $0x140] ss:$8 sps:$4 sm:$0xff]   ;;  %v108_v2 = vrot.slane %v3372_v20, %v3367_v18 }
  0x28   :  { %284 = vmatprep.subr.bf16.mxu0 %v2956_v6  ;;  %v3007_v36 = vld [vmem:[#allocation2 + $0x134] ss:$8 sps:$4 sm:$0xff]   ;;  %v2976_v37 = vld [vmem:[#allocation2 + $0xe0] ss:$8 sps:$4 sm:$0xff]   ;;  %v3009_v39 = vld [vmem:[#allocation2 + $0x130] ss:$8 sps:$4 sm:$0xff]  }
  0x29   :  { %310 = vmatprep.mubr.bf16.mxu0 %v115_v25  ;;  %v2977_v38 = vld [vmem:[#allocation2 + $0xd4] ss:$8 sps:$4 sm:$0xff]   ;;  %v3010_v40 = vld [vmem:[#allocation2 + $0x124] ss:$8 sps:$4 sm:$0xff]   ;;  %v2979_v41 = vld [vmem:[#allocation2 + $0xd0] ss:$8 sps:$4 sm:$0xff]  }
  0x2a   :  { %535 = vmatpush1.bf16.msra.mxu1 %v3000_v27  ;;  %v2980_v42 = vld [vmem:[#allocation2 + $0xc4] ss:$8 sps:$4 sm:$0xff]   ;;  %v3012_v43 = vld [vmem:[#allocation2 + $0x120] ss:$8 sps:$4 sm:$0xff]   ;;  %v3013_v44 = vld [vmem:[#allocation2 + $0x114] ss:$8 sps:$4 sm:$0xff]  }
  0x2b   :  { %285 = vmatpush1.bf16.msra.mxu0 %v2958_v7  ;;  %536 = vmatprep.subr.bf16.mxu1 %v3001_v28  ;;  %v2982_v45 = vld [vmem:[#allocation2 + $0xc0] ss:$8 sps:$4 sm:$0xff]   ;;  %v2983_v46 = vld [vmem:[#allocation2 + $0xb4] ss:$8 sps:$4 sm:$0xff]   ;;  %v2985_v47 = vld [vmem:[#allocation2 + $0xb0] ss:$8 sps:$4 sm:$0xff]  }
  0x2c   :  { %286 = vmatprep.subr.bf16.mxu0 %v2959_v8  ;;  %v3015_v48 = vld [vmem:[#allocation2 + $0x110] ss:$8 sps:$4 sm:$0xff]   ;;  %v3016_v49 = vld [vmem:[#allocation2 + $0x104] ss:$8 sps:$4 sm:$0xff]   ;;  %v3018_v51 = vld [vmem:[#allocation2 + $0x100] ss:$8 sps:$4 sm:$0xff]  }
  0x2d   :  { %v2986_v50 = vld [vmem:[#allocation2 + $0xa4] ss:$8 sps:$4 sm:$0xff]   ;;  %v3019_v53 = vld [vmem:[#allocation2 + $0x1f4] ss:$8 sps:$4 sm:$0xff]   ;;  %v2988_v55 = vld [vmem:[#allocation2 + $0xa0] ss:$8 sps:$4 sm:$0xff]  }
  0x2e   :  { %537 = vmatpush1.bf16.msra.mxu1 %v3003_v31  ;;  %v3380_v52 = vld [vmem:[%s4133_s0] sm:$0xff]  ;;  %v2989_v56 = vld [vmem:[#allocation2 + $0x94] ss:$8 sps:$4 sm:$0xff]   ;;  %v3021_v57 = vld [vmem:[#allocation2 + $0x1f0] ss:$8 sps:$4 sm:$0xff]   ;;  %v4140_v22 = vmov 0  }
  0x2f   :  { %287 = vmatpush1.bf16.msra.mxu0 %v2961_v12  ;;  %538 = vmatprep.subr.bf16.mxu1 %v3004_v32  ;;  %v2808_v54 = vcombine.high %v3380_v52, %v3380_v52  ;;  %v3022_v58 = vld [vmem:[#allocation2 + $0x1e4] ss:$8 sps:$4 sm:$0xff]   ;;  %v2991_v59 = vld [vmem:[#allocation2 + $0x90] ss:$8 sps:$4 sm:$0xff]   ;;  %v3024_v61 = vld [vmem:[#allocation2 + $0x1e0] ss:$8 sps:$4 sm:$0xff]  }
  0x30   :  { %288 = vmatprep.subr.bf16.mxu0 %v2962_v13  ;;  %v2992_v60 = vld [vmem:[#allocation2 + $0x84] ss:$8 sps:$4 sm:$0xff]   ;;  %v3025_v62 = vld [vmem:[#allocation2 + $0x1d4] ss:$8 sps:$4 sm:$0xff]   ;;  %v2994_v63 = vld [vmem:[#allocation2 + $0x80] ss:$8 sps:$4 sm:$0xff]  }
  0x31   :  { %564 = vmatprep.mubr.bf16.mxu1 %v2808_v54  ;;  %v3384_v0 = vld [vmem:[#allocation5 + $0x34] ss:$8 sps:$4 sm:$0xff]   ;;  %v3027_v1 = vld [vmem:[#allocation2 + $0x1d0] ss:$8 sps:$4 sm:$0xff]   ;;  %v3028_v3 = vld [vmem:[#allocation2 + $0x1c4] ss:$8 sps:$4 sm:$0xff]  }
  0x32   :  { %539 = vmatpush1.bf16.msra.mxu1 %v3006_v35  ;;  %v3388_v4 = vld [vmem:[#allocation5 + $0x30] ss:$8 sps:$4 sm:$0xff]   ;;  %v3391_v5 = vld [vmem:[#allocation5 + $0x24] ss:$8 sps:$4 sm:$0xff]   ;;  %v3030_v6 = vld [vmem:[#allocation2 + $0x1c0] ss:$8 sps:$4 sm:$0xff]  }
  0x33   :  { %289 = vmatpush1.bf16.msra.mxu0 %v2964_v16  ;;  %540 = vmatprep.subr.bf16.mxu1 %v3007_v36  ;;  %v3031_v7 = vld [vmem:[#allocation2 + $0x1b4] ss:$8 sps:$4 sm:$0xff]   ;;  %v3394_v8 = vld [vmem:[#allocation5 + $0x20] ss:$8 sps:$4 sm:$0xff]   ;;  %v3033_v10 = vld [vmem:[#allocation2 + $0x1b0] ss:$8 sps:$4 sm:$0xff]  }
  0x34   :  { %290 = vmatprep.subr.bf16.mxu0 %v2965_v17  ;;  %v3397_v9 = vld [vmem:[#allocation5 + $0x14] ss:$8 sps:$4 sm:$0xff]   ;;  %v3034_v11 = vld [vmem:[#allocation2 + $0x1a4] ss:$8 sps:$4 sm:$0xff]   ;;  %v3400_v12 = vld [vmem:[#allocation5 + $0x10] ss:$8 sps:$4 sm:$0xff]  }
  0x35   :  { %v3036_v13 = vld [vmem:[#allocation2 + $0x1a0] ss:$8 sps:$4 sm:$0xff]   ;;  %v3040_v15 = vld [vmem:[#allocation2 + $0x194] ss:$8 sps:$4 sm:$0xff]   ;;  %v3042_v16 = vld [vmem:[#allocation2 + $0x190] ss:$8 sps:$4 sm:$0xff]  }
  0x36   :  { %541 = vmatpush1.bf16.msra.mxu1 %v3009_v39  ;;  %v3046_v17 = vld [vmem:[#allocation2 + $0x184] ss:$8 sps:$4 sm:$0xff]   ;;  %v3048_v18 = vld [vmem:[#allocation2 + $0x180] ss:$8 sps:$4 sm:$0xff]   ;;  %v3415_v23 = vsub.s32 0, %v3364_v14  ;;  %s3322_s25 = smov [#allocation7]  }
  0x37   :  { %291 = vmatpush1.bf16.msra.mxu0 %v2967_v19  ;;  %542 = vmatprep.subr.bf16.mxu1 %v3010_v40  ;;  %v2807_v19 = vcombine.low %v3380_v52, %v3380_v52  ;;  %v3406_v20 = vld [vmem:[#allocation5 + $0x4] ss:$8 sps:$4 sm:$0xff]   ;;  %v3408_v21 = vld [vmem:[#allocation5] ss:$8 sps:$4 sm:$0xff]   ;;  %s2749_s26 = sshll.u32 %s3322_s25, 4  ;;  %s2750_s26 = int_to_ptr.vmem [resolvable:$true] %s2749_s26 }
  0x38   :  { %292 = vmatprep.subr.bf16.mxu0 %v2968_v24  ;;  %v86_v24 = vld [vmem:[%s4137_s4] ss:$8 sm:$0x3]  ;;  %v2806_v36 = vld [vmem:[%s4137_s4 + $0x1] ss:$8 sm:$0x3] }
  0x39   :  { %v91_v25 = vrot.slane %v86_v24, %v3415_v23 }
  0x3a   :  { %543 = vmatpush1.bf16.msra.mxu1 %v3012_v43 }
  0x3b   :  { %293 = vmatpush1.bf16.msra.mxu0 %v2970_v29  ;;  %544 = vmatprep.subr.bf16.mxu1 %v3013_v44 }
  0x3c   :  { %294 = vmatprep.subr.bf16.mxu0 %v2971_v30 }
  0x3e   :  { %545 = vmatpush1.bf16.msra.mxu1 %v3015_v48 }
  0x3f   :  { %295 = vmatpush2.bf16.msra.mxu0 %v2973_v33  ;;  %546 = vmatprep.subr.bf16.mxu1 %v3016_v49 }
  0x40   :  { %296 = vmatprep.subr.bf16.mxu0 %v2974_v34 }
  0x42   :  { %547 = vmatpush1.bf16.msra.mxu1 %v3018_v51 }
  0x43   :  { %297 = vmatpush2.bf16.msra.mxu0 %v2976_v37  ;;  %548 = vmatprep.subr.bf16.mxu1 %v3019_v53  ;;  %v2841_v37 = vld [vmem:[%s4137_s4 + $0x2] ss:$8 sm:$0x3] }
  0x44   :  { %298 = vmatprep.subr.bf16.mxu0 %v2977_v38  ;;  %v358_v38 = vrot.slane %v2806_v36, %v3415_v23  ;;  %v3431_v39 = vrot.slane %v2841_v37, %v3415_v23 }
  0x46   :  { %549 = vmatpush2.bf16.msra.mxu1 %v3021_v57 }
  0x47   :  { %299 = vmatpush2.bf16.msra.mxu0 %v2979_v41  ;;  %550 = vmatprep.subr.bf16.mxu1 %v3022_v58  ;;  %v3448_v58 = vld [vmem:[#allocation5 + $0xb4] ss:$8 sps:$4 sm:$0xff]  }
  0x48   :  { %300 = vmatprep.subr.bf16.mxu0 %v2980_v42 }
  0x4a   :  { %551 = vmatpush2.bf16.msra.mxu1 %v3024_v61  ;;  %v3454_v61 = vld [vmem:[#allocation5 + $0xf0] ss:$8 sps:$4 sm:$0xff]  }
  0x4b   :  { %301 = vmatpush2.bf16.msra.mxu0 %v2982_v45  ;;  %552 = vmatprep.subr.bf16.mxu1 %v3025_v62  ;;  %v3456_v62 = vld [vmem:[#allocation5 + $0xa4] ss:$8 sps:$4 sm:$0xff]  }
  0x4c   :  { %302 = vmatprep.subr.bf16.mxu0 %v2983_v46 }
  0x4e   :  { %553 = vmatpush2.bf16.msra.mxu1 %v3027_v1  ;;  %v3460_v1 = vld [vmem:[#allocation5 + $0xe4] ss:$8 sps:$4 sm:$0xff]  }
  0x4f   :  { %303 = vmatpush2.bf16.msra.mxu0 %v2985_v47  ;;  %554 = vmatprep.subr.bf16.mxu1 %v3028_v3  ;;  %v3468_v3 = vld [vmem:[#allocation5 + $0xe0] ss:$8 sps:$4 sm:$0xff]  }
  0x50   :  { %304 = vmatprep.subr.bf16.mxu0 %v2986_v50  ;;  %v3438_v50 = vsub.s32 1, %v3364_v14 }
  0x52   :  { %555 = vmatpush2.bf16.msra.mxu1 %v3030_v6  ;;  %v3441_v51 = vrot.slane %v2841_v37, %v3438_v50  ;;  %v362_v52 = vrot.slane %v2806_v36, %v3438_v50  ;;  %v3470_v6 = vld [vmem:[#allocation5 + $0x94] ss:$8 sps:$4 sm:$0xff]  }
  0x53   :  { %305 = vmatpush2.bf16.msra.mxu0 %v2988_v55  ;;  %556 = vmatprep.subr.bf16.mxu1 %v3031_v7  ;;  %v3473_v7 = vld [vmem:[#allocation5 + $0xd4] ss:$8 sps:$4 sm:$0xff]  }
  0x54   :  { %306 = vmatprep.subr.bf16.mxu0 %v2989_v56 }
  0x56   :  { %557 = vmatpush2.bf16.msra.mxu1 %v3033_v10  ;;  %v3477_v10 = vld [vmem:[#allocation5 + $0x90] ss:$8 sps:$4 sm:$0xff]  }
  0x57   :  { %307 = vmatpush2.bf16.msra.mxu0 %v2991_v59  ;;  %558 = vmatprep.subr.bf16.mxu1 %v3034_v11  ;;  %v3450_v59 = vld [vmem:[#allocation5 + $0xb0] ss:$8 sps:$4 sm:$0xff]  }
  0x58   :  { %308 = vmatprep.subr.bf16.mxu0 %v2992_v60  ;;  %v3452_v60 = vld [vmem:[#allocation5 + $0xf4] ss:$8 sps:$4 sm:$0xff]   ;;  %v3481_v11 = vld [vmem:[#allocation5 + $0xd0] ss:$8 sps:$4 sm:$0xff]  }
  0x5a   :  { %559 = vmatpush2.bf16.msra.mxu1 %v3036_v13  ;;  %v3483_v13 = vld [vmem:[#allocation5 + $0x84] ss:$8 sps:$4 sm:$0xff]  }
  0x5b   :  { %309 = vmatpush2.bf16.msra.mxu0 %v2994_v63  ;;  %560 = vmatprep.subr.bf16.mxu1 %v3040_v15  ;;  %v3486_v15 = vld [vmem:[#allocation5 + $0xc4] ss:$8 sps:$4 sm:$0xff]  }
  0x5c   :  { %647 = vmatprep.subr.bf16.mxu0 %v3384_v0 }
  0x5e   :  { %311 = vmatmul.mubr.bf16.vlgmr.msra.gmra.mxu0 %v108_v2  ;;  %561 = vmatpush2.bf16.msra.mxu1 %v3042_v16  ;;  %v3464_v2 = vld [vmem:[#allocation5 + $0xa0] ss:$8 sps:$4 sm:$0xff]  }
  0x5f   :  { %648 = vmatpush1.bf16.msra.mxu0 %v3388_v4  ;;  %562 = vmatprep.subr.bf16.mxu1 %v3046_v17  ;;  %v3489_v16 = vld [vmem:[#allocation5 + $0x80] ss:$8 sps:$4 sm:$0xff]  }
  0x60   :  { %649 = vmatprep.subr.bf16.mxu0 %v3391_v5  ;;  %671 = vmatprep.mubr.bf16.mxu0 %v4140_v22  ;;  %v3493_v17 = vld [vmem:[#allocation5 + $0xc0] ss:$8 sps:$4 sm:$0xff]  }
  0x62   :  { %563 = vmatpush2.bf16.msra.mxu1 %v3048_v18 }
  0x63   :  { %650 = vmatpush1.bf16.msra.mxu0 %v3394_v8  ;;  %779 = vmatprep.subr.bf16.mxu1 %v3448_v58 }
  0x64   :  { %651 = vmatprep.subr.bf16.mxu0 %v3397_v9 }
  0x65   :  { %565 = vmatmul.mubr.bf16.vlgmr.msra.gmra.mxu1 %v2807_v19 }
  0x66   :  { %803 = vmatprep.mubr.bf16.mxu1 %v4140_v22  ;;  %780 = vmatpush1.bf16.msra.mxu1 %v3450_v59 }
  0x67   :  { %652 = vmatpush1.bf16.msra.mxu0 %v3400_v12  ;;  %781 = vmatprep.subr.bf16.mxu1 %v3456_v62 }
  0x68   :  { %653 = vmatprep.subr.bf16.mxu0 %v3406_v20 }
  0x6a   :  { %782 = vmatpush1.bf16.msra.mxu1 %v3464_v2 }
  0x6b   :  { %654 = vmatpush1.bf16.msra.mxu0 %v3408_v21  ;;  %783 = vmatprep.subr.bf16.mxu1 %v3470_v6 }
  0x6c   :  { %882 = vmatprep.subr.bf16.mxu0 %v3452_v60 }
  0x6e   :  { %784 = vmatpush1.bf16.msra.mxu1 %v3477_v10 }
  0x6f   :  { %785 = vmatprep.subr.bf16.mxu1 %v3483_v13 }
  0x72   :  { %786 = vmatpush1.bf16.msra.mxu1 %v3489_v16 }
  0x73   :  { %941 = vmatprep.subr.bf16.mxu1 %v3384_v0 }
 0x11e   :  { %v312_v26 = vpop.f32.mrf.mxu0 }
 0x11f   :  { %v313_v27 = vadd.f32 %v312_v26, %v91_v25 }
 0x120   :  { %v314_v28 = vpop.f32.mrf.mxu0 }
 0x121   :  { %v573_v29 = vpack.c.bf16 %v313_v27, %v313_v27 }
 0x122   :  { %v315_v30 = vpop.f32.mrf.mxu0 }
 0x123   :  { %2850 = vmatmul.mubr.msk.bf16.vlgmr.msra.gmra.mxu0 %vm635_vm0, %v573_v29  ;;  %v2852_v30 = vld [vmem:[%s4137_s4 + $0x4] ss:$8 sm:$0x3] }
 0x124   :  { %v316_v31 = vpop.f32.mrf.mxu0  ;;  %906 = vmatprep.mubr.bf16.mxu0 %v4140_v22  ;;  %883 = vmatpush1.bf16.msra.mxu0 %v3454_v61 }
 0x125   :  { %v566_v32 = vpop.f32.mrf.mxu1  ;;  %884 = vmatprep.subr.bf16.mxu0 %v3460_v1  ;;  %v2862_v31 = vld [vmem:[%s4137_s4 + $0x5] ss:$8 sm:$0x3] }
 0x126   :  { %v3433_v40 = vadd.f32 %v566_v32, %v358_v38  ;;  %v3542_v32 = vrot.slane %v2852_v30, %v3415_v23 }
 0x127   :  { %v568_v33 = vpop.f32.mrf.mxu1 }
 0x128   :  { %v3445_v55 = vadd.f32 %v568_v33, %v362_v52  ;;  %885 = vmatpush1.bf16.msra.mxu0 %v3468_v3  ;;  %v3545_v33 = vrot.slane %v2862_v31, %v3415_v23 }
 0x129   :  { %v570_v34 = vpop.f32.mrf.mxu1  ;;  %886 = vmatprep.subr.bf16.mxu0 %v3473_v7 }
 0x12b   :  { %v571_v35 = vpop.f32.mrf.mxu1 }
 0x12c   :  { %887 = vmatpush1.bf16.msra.mxu0 %v3481_v11 }
 0x12d   :  { %888 = vmatprep.subr.bf16.mxu0 %v3486_v15 }
 0x130   :  { %889 = vmatpush1.bf16.msra.mxu0 %v3493_v17 }
 0x131   :  { %1017 = vmatprep.subr.bf16.mxu0 %v3448_v58 }
 0x1e3   :  { %v673_v41 = vpop.f32.mrf.mxu0 }
 0x1e4   :  { %v674_v42 = vadd.f32 %v673_v41, %v3431_v39 }
 0x1e5   :  { %v675_v43 = vpop.f32.mrf.mxu0 }
 0x1e6   :  { %v680_v44 = vadd.f32 %v674_v42, %v3433_v40  ;;  %v676_v53 = vadd.f32 %v675_v43, %v3441_v51 }
 0x1e7   :  { %v677_v45 = vpop.f32.mrf.mxu0 }
 0x1e8   :  { %v2851_v46 = vmul.f32 -1.442695, %v680_v44 }
 0x1e9   :  { %v678_v47 = vpop.f32.mrf.mxu0 }
 0x1ea   :  { %3105 = vpow2.f32 %v2851_v46 }
 0x1f7   :  { %v3106_v48 = vpop.eup %3105 }
 0x1f8   :  { %v684_v49 = vadd.f32 1.0, %v3106_v48 }
 0x1fa   :  { %3107 = vrcp.f32 %v684_v49 }
 0x207   :  { %v3108_v54 = vpop.eup %3107 }
 0x208   :  { %v687_v56 = vmul.f32 %v3108_v54, %v676_v53  ;;  %v690_v19 = vsub.f32 1.0, %v3108_v54 }
 0x20a   :  { %v688_v57 = vadd.f32 %v687_v56, %v3445_v55 }
 0x20c   :  { %3109 = vtanh.f32 %v688_v57 }
 0x219   :  { %v3110_v63 = vpop.eup %3109 }
 0x21a   :  { %692 = vrot.lane.b32.xlu0 %v3110_v63, %s3319_s15 }
 0x21e   :  { %697 = vrot.lane.b32.xlu0 %v313_v27, %s3319_s15 }
 0x28c   :  { %v693_v18 = vpop.permute.xlu0 %692 }
 0x28d   :  { %v695_v25 = vmul.f32 %v693_v18, %v690_v19 }
 0x290   :  { %v698_v24 = vpop.permute.xlu0 %697 }
 0x291   :  { %v700_v26 = vmul.f32 %v3108_v54, %v698_v24  ;;  %v3552_v24 = vrot.slane %v2862_v31, %v3438_v50 }
 0x293   :  { %v3500_v27 = vadd.f32 %v700_v26, %v695_v25  ;;  %v3555_v25 = vrot.slane %v2852_v30, %v3438_v50 }
 0x295   :  { %v702_v28 = vpack.c.bf16 %v3500_v27, %v3500_v27 }
 0x297   :  { %726 = vrot.lane.b32.xlu1 %v702_v28, %s3319_s15 }
 0x309   :  { %v727_v29 = vpop.permute.xlu1 %726 }
 0x30a   :  { %2861 = vmatmul.mubr.msk.bf16.vlgmr.msra.gmra.mxu1 %vm635_vm0, %v727_v29  ;;  %2871 = vmatmul.mubr.msk.bf16.vlgmr.msra.gmra.mxu0 %vm635_vm0, %v727_v29 }
 0x30b   :  { %942 = vmatpush1.bf16.msra.mxu1 %v3388_v4  ;;  %965 = vmatprep.mubr.bf16.mxu1 %v4140_v22 }
 0x30c   :  { %943 = vmatprep.subr.bf16.mxu1 %v3391_v5  ;;  %1018 = vmatpush1.bf16.msra.mxu0 %v3450_v59 }
 0x30d   :  { %1019 = vmatprep.subr.bf16.mxu0 %v3456_v62  ;;  %1041 = vmatprep.mubr.bf16.mxu0 %v4140_v22 }
 0x30f   :  { %944 = vmatpush1.bf16.msra.mxu1 %v3394_v8 }
 0x310   :  { %945 = vmatprep.subr.bf16.mxu1 %v3397_v9  ;;  %1020 = vmatpush1.bf16.msra.mxu0 %v3464_v2 }
 0x311   :  { %1021 = vmatprep.subr.bf16.mxu0 %v3470_v6 }
 0x313   :  { %946 = vmatpush1.bf16.msra.mxu1 %v3400_v12 }
 0x314   :  { %947 = vmatprep.subr.bf16.mxu1 %v3406_v20  ;;  %1022 = vmatpush1.bf16.msra.mxu0 %v3477_v10 }
 0x315   :  { %1023 = vmatprep.subr.bf16.mxu0 %v3483_v13 }
 0x317   :  { %948 = vmatpush1.bf16.msra.mxu1 %v3408_v21 }
 0x318   :  { %1065 = vmatprep.subr.bf16.mxu1 %v3452_v60  ;;  %1024 = vmatpush1.bf16.msra.mxu0 %v3489_v16 }
 0x319   :  { %1124 = vmatprep.subr.bf16.mxu0 %v3384_v0 }
 0x31a   :  { %2873 = vmatmul.mubr.msk.bf16.vlgmr.msra.gmra.mxu1 %vm635_vm0, %v727_v29 }
 0x31b   :  { %1066 = vmatpush1.bf16.msra.mxu1 %v3454_v61  ;;  %1089 = vmatprep.mubr.bf16.mxu1 %v4140_v22 }
 0x31c   :  { %1067 = vmatprep.subr.bf16.mxu1 %v3460_v1 }
 0x31f   :  { %1068 = vmatpush1.bf16.msra.mxu1 %v3468_v3 }
 0x320   :  { %1069 = vmatprep.subr.bf16.mxu1 %v3473_v7 }
 0x323   :  { %1070 = vmatpush1.bf16.msra.mxu1 %v3481_v11 }
 0x324   :  { %1071 = vmatprep.subr.bf16.mxu1 %v3486_v15 }
 0x327   :  { %1072 = vmatpush1.bf16.msra.mxu1 %v3493_v17 }
 0x328   :  { %1200 = vmatprep.subr.bf16.mxu1 %v3448_v58 }
 0x3ca   :  { %v805_v34 = vpop.f32.mrf.mxu1  ;;  %v908_v35 = vpop.f32.mrf.mxu0 }
 0x3cb   :  { %v806_v36 = vadd.f32 %v805_v34, %v3542_v32  ;;  %v909_v37 = vadd.f32 %v908_v35, %v3545_v33 }
 0x3cc   :  { %v807_v38 = vpop.f32.mrf.mxu1  ;;  %v910_v41 = vpop.f32.mrf.mxu0 }
 0x3cd   :  { %v915_v42 = vadd.f32 %v909_v37, %v806_v36  ;;  %v911_v26 = vadd.f32 %v910_v41, %v3552_v24  ;;  %v808_v29 = vadd.f32 %v807_v38, %v3555_v25 }
 0x3ce   :  { %v809_v43 = vpop.f32.mrf.mxu1  ;;  %v912_v44 = vpop.f32.mrf.mxu0 }
 0x3cf   :  { %v2872_v45 = vmul.f32 -1.442695, %v915_v42 }
 0x3d0   :  { %v810_v46 = vpop.f32.mrf.mxu1  ;;  %v913_v47 = vpop.f32.mrf.mxu0 }
 0x3d1   :  { %3111 = vpow2.f32 %v2872_v45 }
 0x3da   :  { %v967_v48 = vpop.f32.mrf.mxu1 }
 0x3db   :  { %v968_v49 = vadd.f32 %v967_v48, %v3431_v39 }
 0x3dc   :  { %v969_v52 = vpop.f32.mrf.mxu1 }
 0x3dd   :  { %v975_v53 = vrot.slane %v968_v49, 6  ;;  %v970_v42 = vadd.f32 %v969_v52, %v3441_v51 }
 0x3de   :  { %v3112_v54 = vpop.eup %3111  ;;  %v971_v56 = vpop.f32.mrf.mxu1 }
 0x3df   :  { %v919_v57 = vadd.f32 1.0, %v3112_v54  ;;  %v977_v63 = vadd.f32 %v975_v53, %v3433_v40  ;;  %v985_v44 = vrot.slane %v970_v42, 6  ;;  %v997_v54 = vrot.slane %v3500_v27, 6 }
 0x3e0   :  { %v972_v18 = vpop.f32.mrf.mxu1 }
 0x3e1   :  { %3113 = vrcp.f32 %v919_v57  ;;  %v2874_v19 = vmul.f32 -1.442695, %v977_v63 }
 0x3e3   :  { %3115 = vpow2.f32 %v2874_v19 }
 0x3ee   :  { %v3114_v28 = vpop.eup %3113 }
 0x3ef   :  { %v922_v34 = vmul.f32 %v3114_v28, %v911_v26  ;;  %v925_v38 = vsub.f32 1.0, %v3114_v28  ;;  %v931_v47 = vmul.f32 %v3114_v28, %v3500_v27 }
 0x3f0   :  { %v3116_v35 = vpop.eup %3115 }
 0x3f1   :  { %v923_v36 = vadd.f32 %v922_v34, %v808_v29  ;;  %v981_v37 = vadd.f32 1.0, %v3116_v35 }
 0x3f3   :  { %3117 = vtanh.f32 %v923_v36 }
 0x3f4   :  { %3119 = vrcp.f32 %v981_v37 }
 0x400   :  { %v3118_v43 = vpop.eup %3117 }
 0x401   :  { %v3120_v31 = vpop.eup %3119  ;;  %927 = vrot.lane.b32.xlu0 %v3118_v43, %s3319_s15 }
 0x402   :  { %v987_v30 = vmul.f32 %v3120_v31, %v985_v44  ;;  %v990_v53 = vsub.f32 1.0, %v3120_v31  ;;  %v999_v57 = vmul.f32 %v3120_v31, %v997_v54 }
 0x404   :  { %v988_v45 = vadd.f32 %v987_v30, %v3445_v55 }
 0x406   :  { %3121 = vtanh.f32 %v988_v45 }
 0x413   :  { %v3122_v41 = vpop.eup %3121 }
 0x414   :  { %992 = vrot.lane.b32.xlu1 %v3122_v41, %s3319_s15 }
 0x473   :  { %v928_v46 = vpop.permute.xlu0 %927 }
 0x474   :  { %v930_v48 = vmul.f32 %v928_v46, %v925_v38 }
 0x476   :  { %v3564_v49 = vadd.f32 %v931_v47, %v930_v48 }
 0x478   :  { %v1050_v52 = vpack.c.bf16 %v3564_v49, %v3564_v49 }
 0x47a   :  { %1052 = vrot.lane.b32.xlu0 %v1050_v52, %s3319_s15 }
 0x486   :  { %v993_v56 = vpop.permute.xlu1 %992 }
 0x487   :  { %v995_v63 = vmul.f32 %v993_v56, %v990_v53 }
 0x489   :  { %v3570_v18 = vadd.f32 %v999_v57, %v995_v63 }
 0x48b   :  { %v1001_v19 = vpack.c.bf16 %v3570_v18, %v3570_v18 }
 0x48d   :  { %v1003_v26 = vrot.slane %v1001_v19, 1 }
 0x48f   :  { %1004 = vrot.lane.b32.xlu1 %v1003_v26, %s3319_s15 }
 0x4ec   :  { %v1053_v28 = vpop.permute.xlu0 %1052 }
 0x4ed   :  { %2876 = vmatmul.mubr.msk.bf16.vlgmr.msra.gmra.mxu1 %vm635_vm0, %v1053_v28 }
 0x4ee   :  { %1201 = vmatpush1.bf16.msra.mxu1 %v3450_v59  ;;  %1224 = vmatprep.mubr.bf16.mxu1 %v4140_v22 }
 0x4ef   :  { %1202 = vmatprep.subr.bf16.mxu1 %v3456_v62 }
 0x4f2   :  { %1203 = vmatpush1.bf16.msra.mxu1 %v3464_v2 }
 0x4f3   :  { %1204 = vmatprep.subr.bf16.mxu1 %v3470_v6 }
 0x4f6   :  { %1205 = vmatpush1.bf16.msra.mxu1 %v3477_v10 }
 0x4f7   :  { %1206 = vmatprep.subr.bf16.mxu1 %v3483_v13 }
 0x4fa   :  { %1207 = vmatpush1.bf16.msra.mxu1 %v3489_v16 }
 0x4fb   :  { %1307 = vmatprep.subr.bf16.mxu1 %v3384_v0 }
 0x501   :  { %v1005_v27 = vpop.permute.xlu1 %1004 }
 0x502   :  { %2875 = vmatmul.mubr.msk.bf16.vlgmr.msra.gmra.mxu0 %vm635_vm0, %v1005_v27 }
 0x503   :  { %1125 = vmatpush1.bf16.msra.mxu0 %v3388_v4  ;;  %1148 = vmatprep.mubr.bf16.mxu0 %v4140_v22 }
 0x504   :  { %1126 = vmatprep.subr.bf16.mxu0 %v3391_v5 }
 0x507   :  { %1127 = vmatpush1.bf16.msra.mxu0 %v3394_v8 }
 0x508   :  { %1128 = vmatprep.subr.bf16.mxu0 %v3397_v9 }
 0x50b   :  { %1129 = vmatpush1.bf16.msra.mxu0 %v3400_v12 }
 0x50c   :  { %1130 = vmatprep.subr.bf16.mxu0 %v3406_v20 }
 0x50f   :  { %1131 = vmatpush1.bf16.msra.mxu0 %v3408_v21 }
 0x510   :  { %1248 = vmatprep.subr.bf16.mxu0 %v3452_v60 }
 0x512   :  { %2878 = vmatmul.mubr.msk.bf16.vlgmr.msra.gmra.mxu0 %vm635_vm0, %v1005_v27 }
 0x513   :  { %1249 = vmatpush1.bf16.msra.mxu0 %v3454_v61  ;;  %1272 = vmatprep.mubr.bf16.mxu0 %v4140_v22 }
 0x514   :  { %1250 = vmatprep.subr.bf16.mxu0 %v3460_v1 }
 0x517   :  { %1251 = vmatpush1.bf16.msra.mxu0 %v3468_v3 }
 0x518   :  { %1252 = vmatprep.subr.bf16.mxu0 %v3473_v7 }
 0x51b   :  { %1253 = vmatpush1.bf16.msra.mxu0 %v3481_v11 }
 0x51c   :  { %1254 = vmatprep.subr.bf16.mxu0 %v3486_v15 }
 0x51f   :  { %1255 = vmatpush1.bf16.msra.mxu0 %v3493_v17 }
 0x520   :  { %1383 = vmatprep.subr.bf16.mxu0 %v3448_v58 }
 0x5ad   :  { %v1091_v29 = vpop.f32.mrf.mxu1 }
 0x5ae   :  { %v1092_v42 = vadd.f32 %v1091_v29, %v3545_v33 }
 0x5af   :  { %v1093_v34 = vpop.f32.mrf.mxu1 }
 0x5b0   :  { %v1094_v19 = vadd.f32 %v1093_v34, %v3552_v24 }
 0x5b1   :  { %v1095_v35 = vpop.f32.mrf.mxu1 }
 0x5b3   :  { %v1096_v36 = vpop.f32.mrf.mxu1 }
 0x5c2   :  { %v1043_v37 = vpop.f32.mrf.mxu0 }
 0x5c3   :  { %v1044_v43 = vadd.f32 %v1043_v37, %v3542_v32 }
 0x5c4   :  { %v1045_v44 = vpop.f32.mrf.mxu0 }
 0x5c5   :  { %v1098_v31 = vadd.f32 %v1092_v42, %v1044_v43  ;;  %v1046_v28 = vadd.f32 %v1045_v44, %v3555_v25  ;;  %v1180_v43 = vrot.slane %v3570_v18, 6 }
 0x5c6   :  { %v1047_v30 = vpop.f32.mrf.mxu0 }
 0x5c7   :  { %v2877_v45 = vmul.f32 -1.442695, %v1098_v31 }
 0x5c8   :  { %v1048_v41 = vpop.f32.mrf.mxu0 }
 0x5c9   :  { %3123 = vpow2.f32 %v2877_v45 }
 0x5d2   :  { %v1150_v38 = vpop.f32.mrf.mxu0 }
 0x5d3   :  { %v1151_v46 = vadd.f32 %v1150_v38, %v3431_v39 }
 0x5d4   :  { %v1152_v47 = vpop.f32.mrf.mxu0 }
 0x5d5   :  { %v1158_v48 = vrot.slane %v1151_v46, 4  ;;  %v1153_v37 = vadd.f32 %v1152_v47, %v3441_v51 }
 0x5d6   :  { %v3124_v52 = vpop.eup %3123  ;;  %v1154_v53 = vpop.f32.mrf.mxu0 }
 0x5d7   :  { %v1102_v54 = vadd.f32 1.0, %v3124_v52  ;;  %v1160_v56 = vadd.f32 %v1158_v48, %v3433_v40  ;;  %v1168_v31 = vrot.slane %v1153_v37, 4 }
 0x5d8   :  { %v1155_v57 = vpop.f32.mrf.mxu0 }
 0x5d9   :  { %3125 = vrcp.f32 %v1102_v54  ;;  %v2879_v63 = vmul.f32 -1.442695, %v1160_v56 }
 0x5db   :  { %3127 = vpow2.f32 %v2879_v63 }
 0x5e6   :  { %v3126_v26 = vpop.eup %3125 }
 0x5e7   :  { %v1105_v27 = vmul.f32 %v3126_v26, %v1094_v19  ;;  %v1108_v38 = vsub.f32 1.0, %v3126_v26  ;;  %v1114_v48 = vmul.f32 %v3126_v26, %v3564_v49 }
 0x5e8   :  { %v3128_v29 = vpop.eup %3127 }
 0x5e9   :  { %v1106_v35 = vadd.f32 %v1105_v27, %v1046_v28  ;;  %v1164_v36 = vadd.f32 1.0, %v3128_v29 }
 0x5eb   :  { %3129 = vtanh.f32 %v1106_v35 }
 0x5ec   :  { %3131 = vrcp.f32 %v1164_v36 }
 0x5f8   :  { %v3130_v42 = vpop.eup %3129 }
 0x5f9   :  { %v3132_v30 = vpop.eup %3131  ;;  %1110 = vrot.lane.b32.xlu0 %v3130_v42, %s3319_s15 }
 0x5fa   :  { %v1170_v45 = vmul.f32 %v3132_v30, %v1168_v31  ;;  %v1182_v34 = vmul.f32 %v3132_v30, %v1180_v43  ;;  %v1173_v53 = vsub.f32 1.0, %v3132_v30 }
 0x5fc   :  { %v1171_v41 = vadd.f32 %v1170_v45, %v3445_v55 }
 0x5fe   :  { %3133 = vtanh.f32 %v1171_v41 }
 0x60b   :  { %v3134_v44 = vpop.eup %3133 }
 0x60c   :  { %1175 = vrot.lane.b32.xlu1 %v3134_v44, %s3319_s15 }
 0x66b   :  { %v1111_v46 = vpop.permute.xlu0 %1110 }
 0x66c   :  { %v1113_v47 = vmul.f32 %v1111_v46, %v1108_v38 }
 0x66e   :  { %v3617_v52 = vadd.f32 %v1114_v48, %v1113_v47 }
 0x670   :  { %v1233_v18 = vpack.c.bf16 %v3617_v52, %v3617_v52 }
 0x672   :  { %1235 = vrot.lane.b32.xlu0 %v1233_v18, %s3319_s15 }
 0x67e   :  { %v1176_v54 = vpop.permute.xlu1 %1175 }
 0x67f   :  { %v1178_v56 = vmul.f32 %v1176_v54, %v1173_v53 }
 0x681   :  { %v3622_v57 = vadd.f32 %v1182_v34, %v1178_v56 }
 0x683   :  { %v1184_v63 = vpack.c.bf16 %v3622_v57, %v3622_v57 }
 0x685   :  { %v1186_v19 = vrot.slane %v1184_v63, 2 }
 0x687   :  { %1187 = vrot.lane.b32.xlu1 %v1186_v19, %s3319_s15 }
 0x6e4   :  { %v1236_v49 = vpop.permute.xlu0 %1235 }
 0x6e5   :  { %2881 = vmatmul.mubr.msk.bf16.vlgmr.msra.gmra.mxu0 %vm635_vm0, %v1236_v49 }
 0x6e6   :  { %1384 = vmatpush1.bf16.msra.mxu0 %v3450_v59  ;;  %1407 = vmatprep.mubr.bf16.mxu0 %v4140_v22 }
 0x6e7   :  { %1385 = vmatprep.subr.bf16.mxu0 %v3456_v62 }
 0x6ea   :  { %1386 = vmatpush1.bf16.msra.mxu0 %v3464_v2 }
 0x6eb   :  { %1387 = vmatprep.subr.bf16.mxu0 %v3470_v6 }
 0x6ee   :  { %1388 = vmatpush1.bf16.msra.mxu0 %v3477_v10 }
 0x6ef   :  { %1389 = vmatprep.subr.bf16.mxu0 %v3483_v13 }
 0x6f2   :  { %1390 = vmatpush1.bf16.msra.mxu0 %v3489_v16 }
 0x6f9   :  { %v1188_v26 = vpop.permute.xlu1 %1187 }
 0x6fa   :  { %2880 = vmatmul.mubr.msk.bf16.vlgmr.msra.gmra.mxu1 %vm635_vm0, %v1188_v26 }
 0x6fb   :  { %1308 = vmatpush1.bf16.msra.mxu1 %v3388_v4  ;;  %1331 = vmatprep.mubr.bf16.mxu1 %v4140_v22 }
 0x6fc   :  { %1309 = vmatprep.subr.bf16.mxu1 %v3391_v5 }
 0x6ff   :  { %1310 = vmatpush1.bf16.msra.mxu1 %v3394_v8 }
 0x700   :  { %1311 = vmatprep.subr.bf16.mxu1 %v3397_v9 }
 0x703   :  { %1312 = vmatpush1.bf16.msra.mxu1 %v3400_v12 }
 0x704   :  { %1313 = vmatprep.subr.bf16.mxu1 %v3406_v20 }
 0x707   :  { %1314 = vmatpush1.bf16.msra.mxu1 %v3408_v21 }
 0x708   :  { %1431 = vmatprep.subr.bf16.mxu1 %v3452_v60 }
 0x70a   :  { %2883 = vmatmul.mubr.msk.bf16.vlgmr.msra.gmra.mxu1 %vm635_vm0, %v1188_v26 }
 0x70b   :  { %1432 = vmatpush1.bf16.msra.mxu1 %v3454_v61  ;;  %1455 = vmatprep.mubr.bf16.mxu1 %v4140_v22 }
 0x70c   :  { %1433 = vmatprep.subr.bf16.mxu1 %v3460_v1 }
 0x70f   :  { %1434 = vmatpush1.bf16.msra.mxu1 %v3468_v3 }
 0x710   :  { %1435 = vmatprep.subr.bf16.mxu1 %v3473_v7 }
 0x713   :  { %1436 = vmatpush1.bf16.msra.mxu1 %v3481_v11 }
 0x714   :  { %1437 = vmatprep.subr.bf16.mxu1 %v3486_v15 }
 0x717   :  { %1438 = vmatpush1.bf16.msra.mxu1 %v3493_v17 }
 0x7a5   :  { %v1274_v28 = vpop.f32.mrf.mxu0 }
 0x7a6   :  { %v1275_v37 = vadd.f32 %v1274_v28, %v3545_v33 }
 0x7a7   :  { %v1276_v27 = vpop.f32.mrf.mxu0 }
 0x7a8   :  { %v1277_v63 = vadd.f32 %v1276_v27, %v3552_v24 }
 0x7a9   :  { %v1278_v29 = vpop.f32.mrf.mxu0 }
 0x7ab   :  { %v1279_v35 = vpop.f32.mrf.mxu0 }
 0x7ba   :  { %v1226_v36 = vpop.f32.mrf.mxu1 }
 0x7bb   :  { %v1227_v42 = vadd.f32 %v1226_v36, %v3542_v32 }
 0x7bc   :  { %v1228_v43 = vpop.f32.mrf.mxu1 }
 0x7bd   :  { %v1281_v31 = vadd.f32 %v1275_v37, %v1227_v42  ;;  %v1229_v49 = vadd.f32 %v1228_v43, %v3555_v25 }
 0x7be   :  { %v1230_v30 = vpop.f32.mrf.mxu1 }
 0x7bf   :  { %v2882_v45 = vmul.f32 -1.442695, %v1281_v31 }
 0x7c0   :  { %v1231_v34 = vpop.f32.mrf.mxu1 }
 0x7c1   :  { %3135 = vpow2.f32 %v2882_v45 }
 0x7ca   :  { %v1333_v41 = vpop.f32.mrf.mxu1 }
 0x7cb   :  { %v1334_v44 = vadd.f32 %v1333_v41, %v3431_v39 }
 0x7cc   :  { %v1335_v38 = vpop.f32.mrf.mxu1 }
 0x7cd   :  { %v1341_v46 = vrot.slane %v1334_v44, 2  ;;  %v1336_v36 = vadd.f32 %v1335_v38, %v3441_v51 }
 0x7ce   :  { %v3136_v48 = vpop.eup %3135  ;;  %v1337_v47 = vpop.f32.mrf.mxu1 }
 0x7cf   :  { %v1285_v18 = vadd.f32 1.0, %v3136_v48  ;;  %v1343_v53 = vadd.f32 %v1341_v46, %v3433_v40  ;;  %v1363_v40 = vrot.slane %v3622_v57, 6  ;;  %v1351_v42 = vrot.slane %v1336_v36, 2 }
 0x7d0   :  { %v1338_v54 = vpop.f32.mrf.mxu1 }
 0x7d1   :  { %3137 = vrcp.f32 %v1285_v18  ;;  %v2884_v56 = vmul.f32 -1.442695, %v1343_v53 }
 0x7d3   :  { %3139 = vpow2.f32 %v2884_v56 }
 0x7de   :  { %v3138_v19 = vpop.eup %3137 }
 0x7df   :  { %v1288_v26 = vmul.f32 %v3138_v19, %v1277_v63  ;;  %v1291_v34 = vsub.f32 1.0, %v3138_v19  ;;  %v1297_v44 = vmul.f32 %v3138_v19, %v3617_v52 }
 0x7e0   :  { %v3140_v28 = vpop.eup %3139 }
 0x7e1   :  { %v1289_v29 = vadd.f32 %v1288_v26, %v1229_v49  ;;  %v1347_v35 = vadd.f32 1.0, %v3140_v28 }
 0x7e3   :  { %3141 = vtanh.f32 %v1289_v29 }
 0x7e4   :  { %3143 = vrcp.f32 %v1347_v35 }
 0x7f0   :  { %v3142_v37 = vpop.eup %3141 }
 0x7f1   :  { %v3144_v31 = vpop.eup %3143  ;;  %1293 = vrot.lane.b32.xlu0 %v3142_v37, %s3319_s15 }
 0x7f2   :  { %v1353_v30 = vmul.f32 %v3144_v31, %v1351_v42  ;;  %v1365_v27 = vmul.f32 %v3144_v31, %v1363_v40  ;;  %v1356_v48 = vsub.f32 1.0, %v3144_v31 }
 0x7f4   :  { %v1354_v45 = vadd.f32 %v1353_v30, %v3445_v55 }
 0x7f6   :  { %3145 = vtanh.f32 %v1354_v45 }
 0x803   :  { %v3146_v43 = vpop.eup %3145 }
 0x804   :  { %1358 = vrot.lane.b32.xlu1 %v3146_v43, %s3319_s15 }
 0x863   :  { %v1294_v41 = vpop.permute.xlu0 %1293 }
 0x864   :  { %v1296_v38 = vmul.f32 %v1294_v41, %v1291_v34 }
 0x866   :  { %v3667_v46 = vadd.f32 %v1297_v44, %v1296_v38  ;;  %v3688_v38 = vld [vmem:[#allocation5 + $0x134] ss:$8 sps:$4 sm:$0xff]  }
 0x867   :  { %1559 = vmatprep.subr.bf16.mxu0 %v3688_v38 }
 0x868   :  { %v1416_v57 = vpack.c.bf16 %v3667_v46, %v3667_v46 }
 0x86a   :  { %1418 = vrot.lane.b32.xlu0 %v1416_v57, %s3319_s15  ;;  %v3690_v57 = vld [vmem:[#allocation5 + $0x130] ss:$8 sps:$4 sm:$0xff]  }
 0x876   :  { %v1359_v47 = vpop.permute.xlu1 %1358 }
 0x877   :  { %v1361_v18 = vmul.f32 %v1359_v47, %v1356_v48  ;;  %v3692_v48 = vld [vmem:[#allocation5 + $0x74] ss:$8 sps:$4 sm:$0xff]   ;;  %v3694_v47 = vld [vmem:[#allocation5 + $0x70] ss:$8 sps:$4 sm:$0xff]  }
 0x878   :  { %1662 = vmatprep.subr.bf16.mxu1 %v3692_v48 }
 0x879   :  { %v3672_v55 = vadd.f32 %v1365_v27, %v1361_v18  ;;  %v3696_v18 = vld [vmem:[#allocation5 + $0x124] ss:$8 sps:$4 sm:$0xff]  }
 0x87b   :  { %v1367_v53 = vpack.c.bf16 %v3672_v55, %v3672_v55 }
 0x87d   :  { %v1369_v54 = vrot.slane %v1367_v53, 3  ;;  %v3700_v53 = vld [vmem:[#allocation5 + $0x64] ss:$8 sps:$4 sm:$0xff]  }
 0x87f   :  { %1370 = vrot.lane.b32.xlu1 %v1369_v54, %s3319_s15  ;;  %v3704_v54 = vld [vmem:[#allocation5 + $0x120] ss:$8 sps:$4 sm:$0xff]  }
 0x8dc   :  { %v1419_v52 = vpop.permute.xlu0 %1418 }
 0x8dd   :  { %2886 = vmatmul.mubr.msk.bf16.vlgmr.msra.gmra.mxu1 %vm635_vm0, %v1419_v52  ;;  %v3708_v52 = vld [vmem:[#allocation5 + $0x60] ss:$8 sps:$4 sm:$0xff]  }
 0x8de   :  { %1686 = vmatprep.mubr.bf16.mxu1 %v4140_v22  ;;  %1663 = vmatpush1.bf16.msra.mxu1 %v3694_v47 }
 0x8df   :  { %1664 = vmatprep.subr.bf16.mxu1 %v3700_v53 }
 0x8e2   :  { %1665 = vmatpush1.bf16.msra.mxu1 %v3708_v52 }
 0x8f1   :  { %v3679_v56 = vpop.permute.xlu1 %1370 }
 0x8f2   :  { %2885 = vmatmul.mubr.msk.bf16.vlgmr.msra.gmra.mxu0 %vm635_vm0, %v3679_v56 }
 0x8f3   :  { %1583 = vmatprep.mubr.bf16.mxu0 %v4140_v22  ;;  %1560 = vmatpush1.bf16.msra.mxu0 %v3690_v57 }
 0x8f4   :  { %1561 = vmatprep.subr.bf16.mxu0 %v3696_v18 }
 0x8f7   :  { %1562 = vmatpush1.bf16.msra.mxu0 %v3704_v54 }
 0x99d   :  { %v1457_v63 = vpop.f32.mrf.mxu1 }
 0x99e   :  { %v1458_v29 = vadd.f32 %v1457_v63, %v3545_v33  ;;  %v3710_v63 = vld [vmem:[#allocation5 + $0x114] ss:$8 sps:$4 sm:$0xff]  }
 0x99f   :  { %v1459_v19 = vpop.f32.mrf.mxu1  ;;  %1563 = vmatprep.subr.bf16.mxu0 %v3710_v63 }
 0x9a0   :  { %v1460_v45 = vadd.f32 %v1459_v19, %v3552_v24  ;;  %v3712_v19 = vld [vmem:[#allocation5 + $0x54] ss:$8 sps:$4 sm:$0xff]  }
 0x9a1   :  { %v1461_v49 = vpop.f32.mrf.mxu1  ;;  %4156 = vst [vmem:[#allocation15_spill] sm:$0xff] %v3712_v19  ;;  %1666 = vmatprep.subr.bf16.mxu1 %v3712_v19 }
 0x9a3   :  { %v1462_v26 = vpop.f32.mrf.mxu1 }
 0x9a4   :  { %v3716_v26 = vld [vmem:[#allocation5 + $0x110] ss:$8 sps:$4 sm:$0xff]  }
 0x9a5   :  { %1564 = vmatpush1.bf16.msra.mxu0 %v3716_v26 }
 0x9b2   :  { %v1409_v28 = vpop.f32.mrf.mxu0 }
 0x9b3   :  { %v1410_v35 = vadd.f32 %v1409_v28, %v3542_v32  ;;  %v3720_v28 = vld [vmem:[#allocation5 + $0x50] ss:$8 sps:$4 sm:$0xff]  }
 0x9b4   :  { %v1411_v36 = vpop.f32.mrf.mxu0  ;;  %4157 = vst [vmem:[#allocation16_spill] sm:$0xff] %v3720_v28  ;;  %1667 = vmatpush1.bf16.msra.mxu1 %v3720_v28 }
 0x9b5   :  { %v1464_v37 = vadd.f32 %v1458_v29, %v1410_v35  ;;  %v1412_v34 = vadd.f32 %v1411_v36, %v3555_v25  ;;  %v3722_v29 = vld [vmem:[#allocation5 + $0x104] ss:$8 sps:$4 sm:$0xff]   ;;  %v3728_v36 = vld [vmem:[#allocation5 + $0x100] ss:$8 sps:$4 sm:$0xff]  }
 0x9b6   :  { %v1413_v40 = vpop.f32.mrf.mxu0  ;;  %v3725_v35 = vld [vmem:[#allocation5 + $0x44] ss:$8 sps:$4 sm:$0xff]   ;;  %1565 = vmatprep.subr.bf16.mxu0 %v3722_v29 }
 0x9b7   :  { %v2887_v42 = vmul.f32 -1.442695, %v1464_v37  ;;  %4158 = vst [vmem:[#allocation17_spill] sm:$0xff] %v3725_v35  ;;  %v3732_v37 = vld [vmem:[#allocation5 + $0x40] ss:$8 sps:$4 sm:$0xff]   ;;  %1668 = vmatprep.subr.bf16.mxu1 %v3725_v35  ;;  %1566 = vmatpush1.bf16.msra.mxu0 %v3728_v36 }
 0x9b8   :  { %v1414_v31 = vpop.f32.mrf.mxu0  ;;  %4159 = vst [vmem:[#allocation18_spill] sm:$0xff] %v3732_v37  ;;  %1669 = vmatpush1.bf16.msra.mxu1 %v3732_v37  ;;  %1703 = vmatprep.subr.bf16.mxu0 %v3384_v0 }
 0x9b9   :  { %3147 = vpow2.f32 %v2887_v42  ;;  %1772 = vmatprep.subr.bf16.mxu1 %v3448_v58 }
 0x9c6   :  { %v3148_v30 = vpop.eup %3147 }
 0x9c7   :  { %v1468_v27 = vadd.f32 1.0, %v3148_v30 }
 0x9c9   :  { %3149 = vrcp.f32 %v1468_v27 }
 0x9d6   :  { %v3150_v43 = vpop.eup %3149 }
 0x9d7   :  { %v1471_v41 = vmul.f32 %v3150_v43, %v1460_v45  ;;  %v1474_v40 = vsub.f32 1.0, %v3150_v43  ;;  %v1480_v31 = vmul.f32 %v3150_v43, %v3667_v46 }
 0x9d9   :  { %v1472_v44 = vadd.f32 %v1471_v41, %v1412_v34  ;;  %v1753_v41 = vrot.slane %v3672_v55, 6 }
 0x9db   :  { %3151 = vtanh.f32 %v1472_v44 }
 0x9e8   :  { %v3152_v49 = vpop.eup %3151 }
 0x9e9   :  { %1476 = vrot.lane.b32.xlu1 %v3152_v49, %s3319_s15 }
 0xa5b   :  { %v1477_v42 = vpop.permute.xlu1 %1476 }
 0xa5c   :  { %v1479_v30 = vmul.f32 %v1477_v42, %v1474_v40 }
 0xa5e   :  { %v3740_v27 = vadd.f32 %v1480_v31, %v1479_v30 }
 0xa60   :  { %v1482_v45 = vpack.c.bf16 %v3740_v27, %v3740_v27 }
 0xa62   :  { %1506 = vrot.lane.b32.xlu0 %v1482_v45, %s3319_s15 }
 0xad4   :  { %v1507_v34 = vpop.permute.xlu0 %1506 }
 0xad5   :  { %2897 = vmatmul.mubr.msk.bf16.vlgmr.msra.gmra.mxu0 %vm635_vm0, %v1507_v34  ;;  %2907 = vmatmul.mubr.msk.bf16.vlgmr.msra.gmra.mxu1 %vm635_vm0, %v1507_v34 }
 0xad6   :  { %1704 = vmatpush1.bf16.msra.mxu0 %v3388_v4  ;;  %1727 = vmatprep.mubr.bf16.mxu0 %v4140_v22 }
 0xad7   :  { %1705 = vmatprep.subr.bf16.mxu0 %v3391_v5  ;;  %1773 = vmatpush1.bf16.msra.mxu1 %v3450_v59  ;;  %v2898_v59 = vld [vmem:[%s4137_s4 + $0x3] ss:$8 sm:$0x3] }
 0xad8   :  { %1774 = vmatprep.subr.bf16.mxu1 %v3456_v62  ;;  %1796 = vmatprep.mubr.bf16.mxu1 %v4140_v22  ;;  %v3799_v43 = vrot.slane %v2898_v59, %v3438_v50 }
 0xada   :  { %1706 = vmatpush1.bf16.msra.mxu0 %v3394_v8 }
 0xadb   :  { %1707 = vmatprep.subr.bf16.mxu0 %v3397_v9  ;;  %1775 = vmatpush1.bf16.msra.mxu1 %v3464_v2 }
 0xadc   :  { %1776 = vmatprep.subr.bf16.mxu1 %v3470_v6 }
 0xade   :  { %1708 = vmatpush1.bf16.msra.mxu0 %v3400_v12 }
 0xadf   :  { %1709 = vmatprep.subr.bf16.mxu0 %v3406_v20  ;;  %1777 = vmatpush1.bf16.msra.mxu1 %v3477_v10 }
 0xae0   :  { %1778 = vmatprep.subr.bf16.mxu1 %v3483_v13 }
 0xae2   :  { %1710 = vmatpush1.bf16.msra.mxu0 %v3408_v21 }
 0xae3   :  { %1813 = vmatprep.subr.bf16.mxu0 %v3452_v60  ;;  %1779 = vmatpush1.bf16.msra.mxu1 %v3489_v16  ;;  %v3794_v60 = vrot.slane %v2898_v59, %v3415_v23 }
 0xae4   :  { %1879 = vmatprep.subr.bf16.mxu1 %v3688_v38 }
 0xae5   :  { %2908 = vmatmul.mubr.msk.bf16.vlgmr.msra.gmra.mxu0 %vm635_vm0, %v3679_v56 }
 0xae6   :  { %1814 = vmatpush1.bf16.msra.mxu0 %v3454_v61  ;;  %1837 = vmatprep.mubr.bf16.mxu0 %v4140_v22 }
 0xae7   :  { %1815 = vmatprep.subr.bf16.mxu0 %v3460_v1 }
 0xaea   :  { %1816 = vmatpush1.bf16.msra.mxu0 %v3468_v3 }
 0xaeb   :  { %1817 = vmatprep.subr.bf16.mxu0 %v3473_v7 }
 0xaee   :  { %1818 = vmatpush1.bf16.msra.mxu0 %v3481_v11 }
 0xaef   :  { %1819 = vmatprep.subr.bf16.mxu0 %v3486_v15 }
 0xaf2   :  { %1820 = vmatpush1.bf16.msra.mxu0 %v3493_v17 }
 0xaf3   :  { %1920 = vmatprep.subr.bf16.mxu0 %v3692_v48 }
 0xaf5   :  { %2911 = vmatmul.mubr.msk.bf16.vlgmr.msra.gmra.mxu0 %vm635_vm0, %v1507_v34 }
 0xaf6   :  { %1921 = vmatpush1.bf16.msra.mxu0 %v3694_v47  ;;  %1944 = vmatprep.mubr.bf16.mxu0 %v4140_v22 }
 0xaf7   :  { %1922 = vmatprep.subr.bf16.mxu0 %v3700_v53 }
 0xafa   :  { %1923 = vmatpush1.bf16.msra.mxu0 %v3708_v52 }
 0xafb   :  { %1924 = vmatprep.subr.bf16.mxu0 %v3712_v19 }
 0xafe   :  { %1925 = vmatpush1.bf16.msra.mxu0 %v3720_v28 }
 0xaff   :  { %1926 = vmatprep.subr.bf16.mxu0 %v3725_v35 }
 0xb02   :  { %1927 = vmatpush1.bf16.msra.mxu0 %v3732_v37 }
 0xb03   :  { %2027 = vmatprep.subr.bf16.mxu0 %v3448_v58 }
 0xb95   :  { %v3786_v0 = vpop.f32.mrf.mxu0  ;;  %v1688_v4 = vpop.f32.mrf.mxu1 }
 0xb96   :  { %v1689_v58 = vadd.f32 %v1688_v4, %v3794_v60 }
 0xb97   :  { %v3788_v5 = vpop.f32.mrf.mxu0  ;;  %v1690_v8 = vpop.f32.mrf.mxu1 }
 0xb98   :  { %v1691_v40 = vadd.f32 %v1690_v8, %v3799_v43  ;;  %v3822_v8 = vld [vmem:[#allocation5 + $0x34] ss:$8 sps:$4 sm:$0xff]  }
 0xb99   :  { %v1589_v9 = vpop.f32.mrf.mxu0  ;;  %v1692_v12 = vpop.f32.mrf.mxu1 }
 0xb9b   :  { %v1590_v20 = vpop.f32.mrf.mxu0  ;;  %v1693_v21 = vpop.f32.mrf.mxu1 }
 0xba5   :  { %v1729_v61 = vpop.f32.mrf.mxu0 }
 0xba6   :  { %v1730_v62 = vadd.f32 %v1729_v61, %v3431_v39 }
 0xba7   :  { %v1731_v1 = vpop.f32.mrf.mxu0 }
 0xba8   :  { %v1736_v2 = vadd.f32 %v1730_v62, %v1689_v58  ;;  %v1732_v44 = vadd.f32 %v1731_v1, %v3441_v51 }
 0xba9   :  { %v1733_v3 = vpop.f32.mrf.mxu0 }
 0xbaa   :  { %v2909_v6 = vmul.f32 -1.442695, %v1736_v2 }
 0xbab   :  { %v1734_v7 = vpop.f32.mrf.mxu0 }
 0xbac   :  { %3153 = vpow2.f32 %v2909_v6 }
 0xbb5   :  { %v1839_v10 = vpop.f32.mrf.mxu0 }
 0xbb6   :  { %v1840_v59 = vadd.f32 %v1839_v10, %v3545_v33 }
 0xbb7   :  { %v1841_v11 = vpop.f32.mrf.mxu0 }
 0xbb9   :  { %v3154_v15 = vpop.eup %3153  ;;  %v1843_v17 = vpop.f32.mrf.mxu0 }
 0xbba   :  { %v1740_v46 = vadd.f32 1.0, %v3154_v15  ;;  %v1842_v15 = vadd.f32 %v1841_v11, %v3552_v24 }
 0xbbb   :  { %v1844_v56 = vpop.f32.mrf.mxu0 }
 0xbbc   :  { %3155 = vrcp.f32 %v1740_v46 }
 0xbc9   :  { %v3156_v49 = vpop.eup %3155 }
 0xbca   :  { %v1743_v42 = vmul.f32 %v3156_v49, %v1732_v44  ;;  %v1755_v31 = vmul.f32 %v3156_v49, %v1753_v41  ;;  %v1746_v34 = vsub.f32 1.0, %v3156_v49 }
 0xbcc   :  { %v1744_v30 = vadd.f32 %v1743_v42, %v1691_v40 }
 0xbce   :  { %3157 = vtanh.f32 %v1744_v30 }
 0xbdb   :  { %v3158_v45 = vpop.eup %3157 }
 0xbdc   :  { %1748 = vrot.lane.b32.xlu1 %v3158_v45, %s3319_s15  ;;  %v3838_v45 = vld [vmem:[#allocation5 + $0x30] ss:$8 sps:$4 sm:$0xff]  }
 0xc4e   :  { %v1749_v4 = vpop.permute.xlu1 %1748 }
 0xc4f   :  { %v1751_v9 = vmul.f32 %v1749_v4, %v1746_v34  ;;  %v3845_v34 = vld [vmem:[#allocation5 + $0xb0] ss:$8 sps:$4 sm:$0xff]   ;;  %v3848_v4 = vld [vmem:[#allocation5 + $0xa4] ss:$8 sps:$4 sm:$0xff]  }
 0xc51   :  { %v3805_v12 = vadd.f32 %v1755_v31, %v1751_v9  ;;  %v3852_v9 = vld [vmem:[#allocation5 + $0x20] ss:$8 sps:$4 sm:$0xff]  }
 0xc53   :  { %v1757_v55 = vpack.c.bf16 %v3805_v12, %v3805_v12 }
 0xc55   :  { %1759 = vrot.lane.b32.xlu0 %v1757_v55, %s3319_s15  ;;  %v3855_v55 = vld [vmem:[#allocation5 + $0x14] ss:$8 sps:$4 sm:$0xff]  }
 0xcc7   :  { %v3810_v20 = vpop.permute.xlu0 %1759 }
 0xcc8   :  { %2910 = vmatmul.mubr.msk.bf16.vlgmr.msra.gmra.mxu1 %vm635_vm0, %v3810_v20 }
 0xcc9   :  { %1880 = vmatpush1.bf16.msra.mxu1 %v3690_v57  ;;  %1903 = vmatprep.mubr.bf16.mxu1 %v4140_v22 }
 0xcca   :  { %1881 = vmatprep.subr.bf16.mxu1 %v3696_v18 }
 0xccd   :  { %1882 = vmatpush1.bf16.msra.mxu1 %v3704_v54 }
 0xcce   :  { %1883 = vmatprep.subr.bf16.mxu1 %v3710_v63 }
 0xcd1   :  { %1884 = vmatpush1.bf16.msra.mxu1 %v3716_v26 }
 0xcd2   :  { %1885 = vmatprep.subr.bf16.mxu1 %v3722_v29 }
 0xcd5   :  { %1886 = vmatpush1.bf16.msra.mxu1 %v3728_v36 }
 0xcd6   :  { %1961 = vmatprep.subr.bf16.mxu1 %v3822_v8 }
 0xd88   :  { %v1798_v21 = vpop.f32.mrf.mxu1 }
 0xd89   :  { %v1799_v61 = vadd.f32 %v1798_v21, %v3542_v32  ;;  %v3858_v21 = vld [vmem:[#allocation5 + $0xa0] ss:$8 sps:$4 sm:$0xff]  }
 0xd8a   :  { %v1800_v58 = vpop.f32.mrf.mxu1 }
 0xd8b   :  { %v1846_v62 = vadd.f32 %v1840_v59, %v1799_v61  ;;  %v1801_v46 = vadd.f32 %v1800_v58, %v3555_v25  ;;  %v3861_v59 = vld [vmem:[#allocation5 + $0x94] ss:$8 sps:$4 sm:$0xff]   ;;  %v3864_v61 = vld [vmem:[#allocation5 + $0x10] ss:$8 sps:$4 sm:$0xff]   ;;  %v3867_v58 = vld [vmem:[#allocation5 + $0x4] ss:$8 sps:$4 sm:$0xff]  }
 0xd8c   :  { %v1802_v1 = vpop.f32.mrf.mxu1 }
 0xd8d   :  { %v2912_v2 = vmul.f32 -1.442695, %v1846_v62  ;;  %v3870_v62 = vld [vmem:[#allocation5 + $0x90] ss:$8 sps:$4 sm:$0xff]   ;;  %v3874_v1 = vld [vmem:[#allocation5] ss:$8 sps:$4 sm:$0xff]  }
 0xd8e   :  { %v1803_v3 = vpop.f32.mrf.mxu1 }
 0xd8f   :  { %3159 = vpow2.f32 %v2912_v2  ;;  %v3877_v2 = vld [vmem:[#allocation5 + $0xf4] ss:$8 sps:$4 sm:$0xff]   ;;  %v3884_v3 = vld [vmem:[#allocation5 + $0xf0] ss:$8 sps:$4 sm:$0xff]  }
 0xd9c   :  { %v3160_v6 = vpop.eup %3159 }
 0xd9d   :  { %v1850_v7 = vadd.f32 1.0, %v3160_v6  ;;  %v3891_v6 = vld [vmem:[#allocation5 + $0xe0] ss:$8 sps:$4 sm:$0xff]  }
 0xd9f   :  { %3161 = vrcp.f32 %v1850_v7  ;;  %v3897_v7 = vld [vmem:[#allocation5 + $0xd0] ss:$8 sps:$4 sm:$0xff]  }
 0xdac   :  { %v3162_v17 = vpop.eup %3161 }
 0xdad   :  { %v1853_v56 = vmul.f32 %v3162_v17, %v1842_v15  ;;  %v1856_v44 = vsub.f32 1.0, %v3162_v17  ;;  %v1862_v40 = vmul.f32 %v3162_v17, %v3740_v27  ;;  %v3842_v27 = vld [vmem:[#allocation5 + $0x24] ss:$8 sps:$4 sm:$0xff]   ;;  %v3903_v15 = vld [vmem:[#allocation5 + $0xc0] ss:$8 sps:$4 sm:$0xff]  }
 0xdae   :  { %v3916_v17 = vld [vmem:[#allocation5 + $0xb4] ss:$8 sps:$4 sm:$0xff]  }
 0xdaf   :  { %v1854_v41 = vadd.f32 %v1853_v56, %v1801_v46  ;;  %4160 = vst [vmem:[#allocation19_spill] sm:$0xff] %v3916_v17  ;;  %v2888_v46 = vld [vmem:[%s4137_s4 + $0x6] ss:$8 sm:$0x3]  ;;  %s3321_s4 = smov [#allocation8]  }
 0xdb0   :  { %v3923_v56 = vrot.slane %v2888_v46, %v3415_v23  ;;  %s2759_s24 = sshll.u32 %s3321_s4, 4  ;;  %s2760_s24 = int_to_ptr.vmem [resolvable:$true] %s2759_s24 }
 0xdb1   :  { %3163 = vtanh.f32 %v1854_v41  ;;  %v3926_v41 = vrot.slane %v2888_v46, %v3438_v50  ;;  %s3265_s27 = scalar_lea.vmem %s2760_s24, 160  ;;  %p3270_p11 = scmp.lt.s32.totalorder %s2760_s24, %s2760_s24 }
 0xdb2   :  { %4161 = vst [vmem:[#allocation20_spill] sm:$0xff] %v3923_v56  ;;  %p3266_p10 = scmp.ne.s32.totalorder %s2760_s24, %s3265_s27  ;;  %p3271_p12 = scmp.lt.s32.totalorder %s3265_s27, %s3265_s27 }
 0xdb3   :  { %4162 = vst [vmem:[#allocation21_spill] sm:$0xff] %v3926_v41 }
 0xdb4   :  { %p3272_p13 = por %p3271_p12, %p3270_p11 }
 0xdb6   :  { %p3273_p0 = pnand %p3272_p13, %p3266_p10 }
 0xdbe   :  { %v3164_v10 = vpop.eup %3163 }
 0xdbf   :  { %1858 = vrot.lane.b32.xlu1 %v3164_v10, %s3319_s15 }
 0xe31   :  { %v1859_v49 = vpop.permute.xlu1 %1858 }
 0xe32   :  { %v1861_v42 = vmul.f32 %v1859_v49, %v1856_v44  ;;  %v3930_v49 = vadd.f32 %v3786_v0, %v3923_v56 }
 0xe34   :  { %v3831_v31 = vadd.f32 %v1862_v40, %v1861_v42  ;;  %4163 = vst [vmem:[#allocation22_spill] sm:$0xff] %v3930_v49 }
 0xe36   :  { %v1864_v30 = vpack.c.bf16 %v3831_v31, %v3831_v31 }
 0xe38   :  { %1866 = vrot.lane.b32.xlu0 %v1864_v30, %s3319_s15 }
 0xeaa   :  { %v1867_v11 = vpop.permute.xlu0 %1866 }
 0xeab   :  { %2913 = vmatmul.mubr.msk.bf16.vlgmr.msra.gmra.mxu1 %vm635_vm0, %v1867_v11  ;;  %2914 = vmatmul.mubr.msk.bf16.vlgmr.msra.gmra.mxu0 %vm635_vm0, %v1867_v11 }
 0xeac   :  { %1962 = vmatpush1.bf16.msra.mxu1 %v3838_v45  ;;  %1985 = vmatprep.mubr.bf16.mxu1 %v4140_v22 }
 0xead   :  { %1963 = vmatprep.subr.bf16.mxu1 %v3842_v27  ;;  %2028 = vmatpush1.bf16.msra.mxu0 %v3845_v34 }
 0xeae   :  { %2029 = vmatprep.subr.bf16.mxu0 %v3848_v4  ;;  %2051 = vmatprep.mubr.bf16.mxu0 %v4140_v22 }
 0xeb0   :  { %1964 = vmatpush1.bf16.msra.mxu1 %v3852_v9 }
 0xeb1   :  { %1965 = vmatprep.subr.bf16.mxu1 %v3855_v55  ;;  %2030 = vmatpush1.bf16.msra.mxu0 %v3858_v21 }
 0xeb2   :  { %2031 = vmatprep.subr.bf16.mxu0 %v3861_v59 }
 0xeb4   :  { %1966 = vmatpush1.bf16.msra.mxu1 %v3864_v61 }
 0xeb5   :  { %1967 = vmatprep.subr.bf16.mxu1 %v3867_v58  ;;  %2032 = vmatpush1.bf16.msra.mxu0 %v3870_v62 }
 0xeb6   :  { %2033 = vmatprep.subr.bf16.mxu0 %v3483_v13  ;;  %v3888_v13 = vld [vmem:[#allocation5 + $0xe4] ss:$8 sps:$4 sm:$0xff]  }
 0xeb8   :  { %1968 = vmatpush1.bf16.msra.mxu1 %v3874_v1 }
 0xeb9   :  { %2068 = vmatprep.subr.bf16.mxu1 %v3877_v2  ;;  %2034 = vmatpush1.bf16.msra.mxu0 %v3489_v16  ;;  %v3894_v16 = vld [vmem:[#allocation5 + $0xd4] ss:$8 sps:$4 sm:$0xff]  }
 0xeba   :  { %2134 = vmatprep.subr.bf16.mxu0 %v3688_v38 }
 0xebb   :  { %2915 = vmatmul.mubr.msk.bf16.vlgmr.msra.gmra.mxu1 %vm635_vm0, %v3810_v20  ;;  %v3900_v20 = vld [vmem:[#allocation5 + $0xc4] ss:$8 sps:$4 sm:$0xff]  }
 0xebc   :  { %2069 = vmatpush1.bf16.msra.mxu1 %v3884_v3  ;;  %2092 = vmatprep.mubr.bf16.mxu1 %v4140_v22 }
 0xebd   :  { %2070 = vmatprep.subr.bf16.mxu1 %v3888_v13 }
 0xec0   :  { %2071 = vmatpush1.bf16.msra.mxu1 %v3891_v6 }
 0xec1   :  { %2072 = vmatprep.subr.bf16.mxu1 %v3894_v16 }
 0xec4   :  { %2073 = vmatpush1.bf16.msra.mxu1 %v3897_v7 }
 0xec5   :  { %2074 = vmatprep.subr.bf16.mxu1 %v3900_v20 }
 0xec8   :  { %2075 = vmatpush1.bf16.msra.mxu1 %v3903_v15 }
 0xec9   :  { %2175 = vmatprep.subr.bf16.mxu1 %v3692_v48 }
 0xecb   :  { %2918 = vmatmul.mubr.msk.bf16.vlgmr.msra.gmra.mxu1 %vm635_vm0, %v1867_v11  ;;  %v3937_v11 = vadd.f32 %v3788_v5, %v3926_v41 }
 0xecc   :  { %2176 = vmatpush1.bf16.msra.mxu1 %v3694_v47  ;;  %2199 = vmatprep.mubr.bf16.mxu1 %v4140_v22 }
 0xecd   :  { %2177 = vmatprep.subr.bf16.mxu1 %v3700_v53 }
 0xed0   :  { %2178 = vmatpush1.bf16.msra.mxu1 %v3708_v52 }
 0xed1   :  { %2179 = vmatprep.subr.bf16.mxu1 %v3712_v19 }
 0xed4   :  { %2180 = vmatpush1.bf16.msra.mxu1 %v3720_v28 }
 0xed5   :  { %2181 = vmatprep.subr.bf16.mxu1 %v3725_v35 }
 0xed8   :  { %2182 = vmatpush1.bf16.msra.mxu1 %v3732_v37 }
 0xed9   :  { %2282 = vmatprep.subr.bf16.mxu1 %v3916_v17 }
 0xf6b   :  { %v1905_v10 = vpop.f32.mrf.mxu1  ;;  %v1946_v44 = vpop.f32.mrf.mxu0 }
 0xf6c   :  { %v3933_v40 = vadd.f32 %v1905_v10, %v3923_v56  ;;  %v1947_v17 = vadd.f32 %v1946_v44, %v3794_v60 }
 0xf6d   :  { %v1907_v42 = vpop.f32.mrf.mxu1  ;;  %v1948_v30 = vpop.f32.mrf.mxu0 }
 0xf6e   :  { %4164 = vst [vmem:[#allocation23_spill] sm:$0xff] %v3933_v40  ;;  %v3942_v50 = vadd.f32 %v1907_v42, %v3926_v41  ;;  %v1949_v44 = vadd.f32 %v1948_v30, %v3799_v43  ;;  %v4166_v30 = vmov 0  }
 0xf6f   :  { %v1909_v46 = vpop.f32.mrf.mxu1  ;;  %v1950_v22 = vpop.f32.mrf.mxu0 }
 0xf70   :  { %4165 = vst [vmem:[#allocation24_spill] sm:$0xff] %v3942_v50 }
 0xf71   :  { %v1910_v14 = vpop.f32.mrf.mxu1  ;;  %v1951_v10 = vpop.f32.mrf.mxu0 }
 0xf7b   :  { %v1987_v56 = vpop.f32.mrf.mxu1 }
 0xf7c   :  { %v1988_v37 = vadd.f32 %v1987_v56, %v3431_v39 }
 0xf7d   :  { %v1989_v5 = vpop.f32.mrf.mxu1 }
 0xf7e   :  { %v1994_v35 = vadd.f32 %v1988_v37, %v1947_v17  ;;  %v1990_v14 = vadd.f32 %v1989_v5, %v3441_v51 }
 0xf7f   :  { %v1991_v28 = vpop.f32.mrf.mxu1 }
 0xf80   :  { %v2916_v19 = vmul.f32 -1.442695, %v1994_v35 }
 0xf81   :  { %v1992_v23 = vpop.f32.mrf.mxu1 }
 0xf82   :  { %3165 = vpow2.f32 %v2916_v19 }
 0xf8b   :  { %v2094_v42 = vpop.f32.mrf.mxu1 }
 0xf8d   :  { %v2096_v40 = vpop.f32.mrf.mxu1 }
 0xf8f   :  { %v3166_v46 = vpop.eup %3165  ;;  %v2098_v22 = vpop.f32.mrf.mxu1 }
 0xf90   :  { %v1998_v49 = vadd.f32 1.0, %v3166_v46 }
 0xf91   :  { %v2099_v41 = vpop.f32.mrf.mxu1 }
 0xf92   :  { %3167 = vrcp.f32 %v1998_v49 }
 0xf9f   :  { %v3168_v10 = vpop.eup %3167 }
 0xfa0   :  { %v2001_v0 = vmul.f32 %v3168_v10, %v1990_v14  ;;  %v2004_v28 = vsub.f32 1.0, %v3168_v10  ;;  %v2010_v35 = vmul.f32 %v3168_v10, %v3805_v12 }
 0xfa2   :  { %v2002_v56 = vadd.f32 %v2001_v0, %v1949_v44  ;;  %v2095_v0 = vadd.f32 %v2094_v42, %v3545_v33 }
 0xfa4   :  { %3169 = vtanh.f32 %v2002_v56 }
 0xfb1   :  { %v3170_v37 = vpop.eup %3169 }
 0xfb2   :  { %2006 = vrot.lane.b32.xlu1 %v3170_v37, %s3319_s15 }
0x1024   :  { %v2007_v19 = vpop.permute.xlu1 %2006 }
0x1025   :  { %v2009_v17 = vmul.f32 %v2007_v19, %v2004_v28  ;;  %v2097_v28 = vadd.f32 %v2096_v40, %v3552_v24 }
0x1027   :  { %v3952_v23 = vadd.f32 %v2010_v35, %v2009_v17 }
0x1029   :  { %v2012_v41 = vpack.c.bf16 %v3952_v23, %v3952_v23 }
0x102b   :  { %2014 = vrot.lane.b32.xlu0 %v2012_v41, %s3319_s15 }
0x109d   :  { %v2015_v49 = vpop.permute.xlu0 %2014 }
0x109e   :  { %2917 = vmatmul.mubr.msk.bf16.vlgmr.msra.gmra.mxu0 %vm635_vm0, %v2015_v49 }
0x109f   :  { %2135 = vmatpush1.bf16.msra.mxu0 %v3690_v57  ;;  %2158 = vmatprep.mubr.bf16.mxu0 %v4166_v30 }
0x10a0   :  { %2136 = vmatprep.subr.bf16.mxu0 %v3696_v18 }
0x10a3   :  { %2137 = vmatpush1.bf16.msra.mxu0 %v3704_v54 }
0x10a4   :  { %2138 = vmatprep.subr.bf16.mxu0 %v3710_v63 }
0x10a7   :  { %2139 = vmatpush1.bf16.msra.mxu0 %v3716_v26 }
0x10a8   :  { %2140 = vmatprep.subr.bf16.mxu0 %v3722_v29 }
0x10ab   :  { %2141 = vmatpush1.bf16.msra.mxu0 %v3728_v36 }
0x10ac   :  { %2216 = vmatprep.subr.bf16.mxu0 %v3822_v8 }
0x115e   :  { %v2053_v12 = vpop.f32.mrf.mxu0 }
0x115f   :  { %v2054_v5 = vadd.f32 %v2053_v12, %v3542_v32 }
0x1160   :  { %v2055_v46 = vpop.f32.mrf.mxu0 }
0x1161   :  { %v2101_v22 = vadd.f32 %v2095_v0, %v2054_v5  ;;  %v2056_v35 = vadd.f32 %v2055_v46, %v3555_v25  ;;  %v3998_v46 = vld [vmem:[#allocation5 + $0x80] ss:$8 sps:$4 sm:$0xff]  }
0x1162   :  { %v2057_v14 = vpop.f32.mrf.mxu0 }
0x1163   :  { %v2919_v10 = vmul.f32 -1.442695, %v2101_v22 }
0x1164   :  { %v2058_v44 = vpop.f32.mrf.mxu0 }
0x1165   :  { %3171 = vpow2.f32 %v2919_v10  ;;  %v4168_v44 = vld [vmem:[#allocation16_spill] sm:$0xff] }
0x1172   :  { %v3172_v56 = vpop.eup %3171 }
0x1173   :  { %v2105_v37 = vadd.f32 1.0, %v3172_v56  ;;  %v4169_v56 = vld [vmem:[#allocation17_spill] sm:$0xff] }
0x1175   :  { %3173 = vrcp.f32 %v2105_v37  ;;  %v4170_v37 = vld [vmem:[#allocation18_spill] sm:$0xff] }
0x1182   :  { %v3174_v19 = vpop.eup %3173 }
0x1183   :  { %v2108_v17 = vmul.f32 %v3174_v19, %v2097_v28  ;;  %v2111_v12 = vsub.f32 1.0, %v3174_v19  ;;  %v2117_v5 = vmul.f32 %v3174_v19, %v3831_v31  ;;  %v3993_v31 = vld [vmem:[#allocation5 + $0x84] ss:$8 sps:$4 sm:$0xff]   ;;  %v4171_v28 = vld [vmem:[#allocation19_spill] sm:$0xff] }
0x1185   :  { %v2109_v41 = vadd.f32 %v2108_v17, %v2056_v35 }
0x1187   :  { %3175 = vtanh.f32 %v2109_v41 }
0x1194   :  { %v3176_v42 = vpop.eup %3175 }
0x1195   :  { %2113 = vrot.lane.b32.xlu1 %v3176_v42, %s3319_s15 }
0x1207   :  { %v2114_v0 = vpop.permute.xlu1 %2113 }
0x1208   :  { %v2116_v22 = vmul.f32 %v2114_v0, %v2111_v12 }
0x120a   :  { %v3973_v14 = vadd.f32 %v2117_v5, %v2116_v22 }
0x120c   :  { %v2119_v10 = vpack.c.bf16 %v3973_v14, %v3973_v14 }
0x120e   :  { %2121 = vrot.lane.b32.xlu0 %v2119_v10, %s3319_s15 }
0x1280   :  { %v2122_v40 = vpop.permute.xlu0 %2121 }
0x1281   :  { %2920 = vmatmul.mubr.msk.bf16.vlgmr.msra.gmra.mxu0 %vm635_vm0, %v2122_v40  ;;  %2921 = vmatmul.mubr.msk.bf16.vlgmr.msra.gmra.mxu1 %vm635_vm0, %v2122_v40 }
0x1282   :  { %2217 = vmatpush1.bf16.msra.mxu0 %v3838_v45  ;;  %2240 = vmatprep.mubr.bf16.mxu0 %v4166_v30 }
0x1283   :  { %2218 = vmatprep.subr.bf16.mxu0 %v3842_v27  ;;  %2283 = vmatpush1.bf16.msra.mxu1 %v3845_v34 }
0x1284   :  { %2284 = vmatprep.subr.bf16.mxu1 %v3848_v4  ;;  %2306 = vmatprep.mubr.bf16.mxu1 %v4166_v30 }
0x1286   :  { %2219 = vmatpush1.bf16.msra.mxu0 %v3852_v9 }
0x1287   :  { %2220 = vmatprep.subr.bf16.mxu0 %v3855_v55  ;;  %2285 = vmatpush1.bf16.msra.mxu1 %v3858_v21 }
0x1288   :  { %2286 = vmatprep.subr.bf16.mxu1 %v3861_v59 }
0x128a   :  { %2221 = vmatpush1.bf16.msra.mxu0 %v3864_v61 }
0x128b   :  { %2222 = vmatprep.subr.bf16.mxu0 %v3867_v58  ;;  %2287 = vmatpush1.bf16.msra.mxu1 %v3870_v62 }
0x128c   :  { %2288 = vmatprep.subr.bf16.mxu1 %v3993_v31 }
0x128e   :  { %2223 = vmatpush1.bf16.msra.mxu0 %v3874_v1 }
0x128f   :  { %2323 = vmatprep.subr.bf16.mxu0 %v3877_v2  ;;  %2289 = vmatpush1.bf16.msra.mxu1 %v3998_v46 }
0x1290   :  { %2389 = vmatprep.subr.bf16.mxu1 %v3688_v38 }
0x1291   :  { %2922 = vmatmul.mubr.msk.bf16.vlgmr.msra.gmra.mxu0 %vm635_vm0, %v2015_v49  ;;  %v4167_v49 = vld [vmem:[#allocation15_spill] sm:$0xff] }
0x1292   :  { %2324 = vmatpush1.bf16.msra.mxu0 %v3884_v3  ;;  %2347 = vmatprep.mubr.bf16.mxu0 %v4166_v30 }
0x1293   :  { %2325 = vmatprep.subr.bf16.mxu0 %v3888_v13 }
0x1296   :  { %2326 = vmatpush1.bf16.msra.mxu0 %v3891_v6 }
0x1297   :  { %2327 = vmatprep.subr.bf16.mxu0 %v3894_v16 }
0x129a   :  { %2328 = vmatpush1.bf16.msra.mxu0 %v3897_v7 }
0x129b   :  { %2329 = vmatprep.subr.bf16.mxu0 %v3900_v20 }
0x129e   :  { %2330 = vmatpush1.bf16.msra.mxu0 %v3903_v15 }
0x129f   :  { %2430 = vmatprep.subr.bf16.mxu0 %v3692_v48 }
0x12a1   :  { %2925 = vmatmul.mubr.msk.bf16.vlgmr.msra.gmra.mxu0 %vm635_vm0, %v2122_v40 }
0x12a2   :  { %2431 = vmatpush1.bf16.msra.mxu0 %v3694_v47  ;;  %2454 = vmatprep.mubr.bf16.mxu0 %v4166_v30 }
0x12a3   :  { %2432 = vmatprep.subr.bf16.mxu0 %v3700_v53 }
0x12a6   :  { %2433 = vmatpush1.bf16.msra.mxu0 %v3708_v52 }
0x12a7   :  { %2434 = vmatprep.subr.bf16.mxu0 %v4167_v49 }
0x12aa   :  { %2435 = vmatpush1.bf16.msra.mxu0 %v4168_v44 }
0x12ab   :  { %2436 = vmatprep.subr.bf16.mxu0 %v4169_v56 }
0x12ae   :  { %2437 = vmatpush1.bf16.msra.mxu0 %v4170_v37 }
0x12af   :  { %2537 = vmatprep.subr.bf16.mxu0 %v4171_v28 }
0x1341   :  { %v4022_v48 = vpop.f32.mrf.mxu0  ;;  %v2201_v19 = vpop.f32.mrf.mxu1 }
0x1342   :  { %v2202_v12 = vadd.f32 %v2201_v19, %v3794_v60 }
0x1343   :  { %v4024_v47 = vpop.f32.mrf.mxu0  ;;  %v2203_v35 = vpop.f32.mrf.mxu1 }
0x1344   :  { %v2204_v19 = vadd.f32 %v2203_v35, %v3799_v43 }
0x1345   :  { %v2164_v17 = vpop.f32.mrf.mxu0  ;;  %v2205_v53 = vpop.f32.mrf.mxu1 }
0x1347   :  { %v2165_v41 = vpop.f32.mrf.mxu0  ;;  %v2206_v52 = vpop.f32.mrf.mxu1 }
0x1351   :  { %v2242_v42 = vpop.f32.mrf.mxu0 }
0x1352   :  { %v2243_v0 = vadd.f32 %v2242_v42, %v3431_v39 }
0x1353   :  { %v2244_v5 = vpop.f32.mrf.mxu0 }
0x1354   :  { %v2249_v22 = vadd.f32 %v2243_v0, %v2202_v12  ;;  %v2245_v53 = vadd.f32 %v2244_v5, %v3441_v51 }
0x1355   :  { %v2246_v10 = vpop.f32.mrf.mxu0 }
0x1356   :  { %v2923_v40 = vmul.f32 -1.442695, %v2249_v22 }
0x1357   :  { %v2247_v49 = vpop.f32.mrf.mxu0 }
0x1358   :  { %3177 = vpow2.f32 %v2923_v40 }
0x1361   :  { %v2349_v44 = vpop.f32.mrf.mxu0 }
0x1362   :  { %v2350_v35 = vadd.f32 %v2349_v44, %v3545_v33 }
0x1363   :  { %v2351_v56 = vpop.f32.mrf.mxu0 }
0x1365   :  { %v3178_v37 = vpop.eup %3177  ;;  %v2353_v28 = vpop.f32.mrf.mxu0 }
0x1366   :  { %v2253_v50 = vadd.f32 1.0, %v3178_v37 }
0x1367   :  { %v2354_v17 = vpop.f32.mrf.mxu0 }
0x1368   :  { %3179 = vrcp.f32 %v2253_v50 }
0x1375   :  { %v3180_v41 = vpop.eup %3179 }
0x1376   :  { %v2256_v52 = vmul.f32 %v3180_v41, %v2245_v53  ;;  %v2259_v0 = vsub.f32 1.0, %v3180_v41  ;;  %v2265_v10 = vmul.f32 %v3180_v41, %v3952_v23 }
0x1378   :  { %v2257_v42 = vadd.f32 %v2256_v52, %v2204_v19 }
0x137a   :  { %3181 = vtanh.f32 %v2257_v42 }
0x1387   :  { %v3182_v12 = vpop.eup %3181 }
0x1388   :  { %2261 = vrot.lane.b32.xlu1 %v3182_v12, %s3319_s15  ;;  %v2352_v12 = vadd.f32 %v2351_v56, %v3552_v24 }
0x13fa   :  { %v2262_v22 = vpop.permute.xlu1 %2261 }
0x13fb   :  { %v2264_v40 = vmul.f32 %v2262_v22, %v2259_v0 }
0x13fd   :  { %v4032_v49 = vadd.f32 %v2265_v10, %v2264_v40 }
0x13ff   :  { %v2267_v50 = vpack.c.bf16 %v4032_v49, %v4032_v49 }
0x1401   :  { %2269 = vrot.lane.b32.xlu0 %v2267_v50, %s3319_s15 }
0x1473   :  { %v2270_v5 = vpop.permute.xlu0 %2269 }
0x1474   :  { %2924 = vmatmul.mubr.msk.bf16.vlgmr.msra.gmra.mxu1 %vm635_vm0, %v2270_v5 }
0x1475   :  { %2390 = vmatpush1.bf16.msra.mxu1 %v3690_v57  ;;  %2413 = vmatprep.mubr.bf16.mxu1 %v4166_v30 }
0x1476   :  { %2391 = vmatprep.subr.bf16.mxu1 %v3696_v18 }
0x1479   :  { %2392 = vmatpush1.bf16.msra.mxu1 %v3704_v54 }
0x147a   :  { %2393 = vmatprep.subr.bf16.mxu1 %v3710_v63 }
0x147d   :  { %2394 = vmatpush1.bf16.msra.mxu1 %v3716_v26 }
0x147e   :  { %2395 = vmatprep.subr.bf16.mxu1 %v3722_v29 }
0x1481   :  { %2396 = vmatpush1.bf16.msra.mxu1 %v3728_v36 }
0x1482   :  { %2471 = vmatprep.subr.bf16.mxu1 %v3822_v8 }
0x1534   :  { %v2308_v23 = vpop.f32.mrf.mxu1 }
0x1535   :  { %v2309_v37 = vadd.f32 %v2308_v23, %v3542_v32 }
0x1536   :  { %v2310_v28 = vpop.f32.mrf.mxu1 }
0x1537   :  { %v2356_v17 = vadd.f32 %v2350_v35, %v2309_v37  ;;  %v2311_v22 = vadd.f32 %v2310_v28, %v3555_v25  ;;  %v4178_v28 = vld [vmem:[#allocation24_spill] sm:$0xff] }
0x1538   :  { %v2312_v53 = vpop.f32.mrf.mxu1 }
0x1539   :  { %v2926_v41 = vmul.f32 -1.442695, %v2356_v17  ;;  %v4179_v53 = vcombine.low %v3937_v11, %v4178_v28 }
0x153a   :  { %v2313_v19 = vpop.f32.mrf.mxu1 }
0x153b   :  { %3183 = vpow2.f32 %v2926_v41 }
0x1548   :  { %v3184_v52 = vpop.eup %3183 }
0x1549   :  { %v2360_v42 = vadd.f32 1.0, %v3184_v52 }
0x154b   :  { %3185 = vrcp.f32 %v2360_v42 }
0x1558   :  { %v3186_v0 = vpop.eup %3185 }
0x1559   :  { %v2363_v8 = vmul.f32 %v3186_v0, %v2352_v12  ;;  %v2366_v40 = vsub.f32 1.0, %v3186_v0  ;;  %v2372_v23 = vmul.f32 %v3186_v0, %v3973_v14 }
0x155b   :  { %v2364_v10 = vadd.f32 %v2363_v8, %v2311_v22 }
0x155d   :  { %3187 = vtanh.f32 %v2364_v10 }
0x156a   :  { %v3188_v44 = vpop.eup %3187 }
0x156b   :  { %2368 = vrot.lane.b32.xlu1 %v3188_v44, %s3319_s15 }
0x15dd   :  { %v2369_v50 = vpop.permute.xlu1 %2368 }
0x15de   :  { %v2371_v35 = vmul.f32 %v2369_v50, %v2366_v40 }
0x15e0   :  { %v4053_v37 = vadd.f32 %v2372_v23, %v2371_v35 }
0x15e2   :  { %v2374_v17 = vpack.c.bf16 %v4053_v37, %v4053_v37 }
0x15e4   :  { %2376 = vrot.lane.b32.xlu0 %v2374_v17, %s3319_s15 }
0x1656   :  { %v2377_v56 = vpop.permute.xlu0 %2376 }
0x1657   :  { %2927 = vmatmul.mubr.msk.bf16.vlgmr.msra.gmra.mxu1 %vm635_vm0, %v2377_v56  ;;  %2928 = vmatmul.mubr.msk.bf16.vlgmr.msra.gmra.mxu0 %vm635_vm0, %v2377_v56 }
0x1658   :  { %2472 = vmatpush1.bf16.msra.mxu1 %v3838_v45  ;;  %2495 = vmatprep.mubr.bf16.mxu1 %v4166_v30 }
0x1659   :  { %2473 = vmatprep.subr.bf16.mxu1 %v3842_v27  ;;  %2538 = vmatpush1.bf16.msra.mxu0 %v3845_v34 }
0x165a   :  { %2539 = vmatprep.subr.bf16.mxu0 %v3848_v4  ;;  %2561 = vmatprep.mubr.bf16.mxu0 %v4166_v30 }
0x165c   :  { %2474 = vmatpush1.bf16.msra.mxu1 %v3852_v9  ;;  %v4172_v9 = vld [vmem:[#allocation14_spill] sm:$0xff] }
0x165d   :  { %2475 = vmatprep.subr.bf16.mxu1 %v3855_v55  ;;  %2540 = vmatpush1.bf16.msra.mxu0 %v3858_v21  ;;  %v4173_v21 = vld [vmem:[#allocation20_spill] sm:$0xff] }
0x165e   :  { %2541 = vmatprep.subr.bf16.mxu0 %v3861_v59  ;;  %v2161_v59 = vadd.f32 %v4022_v48, %v4173_v21 }
0x1660   :  { %2476 = vmatpush1.bf16.msra.mxu1 %v3864_v61 }
0x1661   :  { %2477 = vmatprep.subr.bf16.mxu1 %v3867_v58  ;;  %2542 = vmatpush1.bf16.msra.mxu0 %v3870_v62 }
0x1662   :  { %2543 = vmatprep.subr.bf16.mxu0 %v3993_v31 }
0x1664   :  { %2478 = vmatpush1.bf16.msra.mxu1 %v3874_v1  ;;  %v4174_v1 = vld [vmem:[#allocation21_spill] sm:$0xff] }
0x1665   :  { %2578 = vmatprep.subr.bf16.mxu1 %v3877_v2  ;;  %2544 = vmatpush1.bf16.msra.mxu0 %v3998_v46  ;;  %v2163_v2 = vadd.f32 %v4024_v47, %v4174_v1 }
0x1666   :  { %2644 = vmatprep.subr.bf16.mxu0 %v3688_v38  ;;  %v3320_v38 = vmov 1983009808  }
0x1667   :  { %2929 = vmatmul.mubr.msk.bf16.vlgmr.msra.gmra.mxu1 %vm635_vm0, %v2270_v5  ;;  %v2685_v45 = vunpack.c.l.s4 %v3320_v38 }
0x1668   :  { %2579 = vmatpush1.bf16.msra.mxu1 %v3884_v3  ;;  %2602 = vmatprep.mubr.bf16.mxu1 %v4166_v30 }
0x1669   :  { %2580 = vmatprep.subr.bf16.mxu1 %v3888_v13  ;;  %v2686_v27 = vunpack.c.0.s8 %v2685_v45 }
0x166b   :  { %v2689_v55 = vsub.s32 %v2686_v27, %v4172_v9 }
0x166c   :  { %2581 = vmatpush1.bf16.msra.mxu1 %v3891_v6 }
0x166d   :  { %2582 = vmatprep.subr.bf16.mxu1 %v3894_v16  ;;  %v2723_v41 = vrot.slane %v4179_v53, %v2689_v55 }
0x1670   :  { %2583 = vmatpush1.bf16.msra.mxu1 %v3897_v7  ;;  %v4175_v7 = vld [vmem:[#allocation22_spill] sm:$0xff] }
0x1671   :  { %2584 = vmatprep.subr.bf16.mxu1 %v3900_v20  ;;  %v4176_v20 = vld [vmem:[#allocation23_spill] sm:$0xff] }
0x1674   :  { %2585 = vmatpush1.bf16.msra.mxu1 %v3903_v15  ;;  %v4177_v15 = vcombine.low %v4175_v7, %v4176_v20 }
0x1676   :  { %v2690_v14 = vrot.slane %v4177_v15, %v2689_v55 }
0x1677   :  { %2932 = vmatmul.mubr.msk.bf16.vlgmr.msra.gmra.mxu1 %vm635_vm0, %v2377_v56 }
0x1717   :  { %v2415_v34 = vpop.f32.mrf.mxu1  ;;  %v2456_v4 = vpop.f32.mrf.mxu0 }
0x1718   :  { %v2416_v61 = vadd.f32 %v2415_v34, %v4173_v21  ;;  %v2457_v12 = vadd.f32 %v2456_v4, %v3794_v60 }
0x1719   :  { %v2417_v58 = vpop.f32.mrf.mxu1  ;;  %v2458_v62 = vpop.f32.mrf.mxu0 }
0x171a   :  { %v2683_v3 = vcombine.low %v2161_v59, %v2416_v61  ;;  %v2418_v13 = vadd.f32 %v2417_v58, %v4174_v1  ;;  %v2459_v60 = vadd.f32 %v2458_v62, %v3799_v43 }
0x171b   :  { %v2419_v6 = vpop.f32.mrf.mxu1  ;;  %v2460_v16 = vpop.f32.mrf.mxu0 }
0x171c   :  { %v2697_v31 = vrot.slane %v2683_v3, %v2689_v55  ;;  %v2716_v46 = vcombine.low %v2163_v2, %v2418_v13 }
0x171d   :  { %v2420_v5 = vpop.f32.mrf.mxu1  ;;  %v2461_v48 = vpop.f32.mrf.mxu0 }
0x171e   :  { %v2730_v19 = vrot.slane %v2716_v46, %v2689_v55  ;;  %v2698_v52 = vcombine.low %v2690_v14, %v2697_v31 }
0x1720   :  { %v2731_v47 = vcombine.low %v2723_v41, %v2730_v19  ;;  %2708 = vst [vmem:[#allocation8] sm:$0xff] %v2698_v52 }
0x1722   :  { %2741 = vst [vmem:[#allocation7] sm:$0xff] %v2731_v47 }
0x1727   :  { %v2497_v42 = vpop.f32.mrf.mxu1 }
0x1728   :  { %v2498_v0 = vadd.f32 %v2497_v42, %v3431_v39 }
0x1729   :  { %v2499_v22 = vpop.f32.mrf.mxu1 }
0x172a   :  { %v2504_v8 = vadd.f32 %v2498_v0, %v2457_v12  ;;  %v2500_v38 = vadd.f32 %v2499_v22, %v3441_v51 }
0x172b   :  { %v2501_v10 = vpop.f32.mrf.mxu1 }
0x172c   :  { %v2930_v44 = vmul.f32 -1.442695, %v2504_v8 }
0x172d   :  { %v2502_v40 = vpop.f32.mrf.mxu1 }
0x172e   :  { %3189 = vpow2.f32 %v2930_v44 }
0x1737   :  { %v2604_v50 = vpop.f32.mrf.mxu1 }
0x1738   :  { %v2605_v43 = vadd.f32 %v2604_v50, %v3545_v33 }
0x1739   :  { %v2606_v23 = vpop.f32.mrf.mxu1 }
0x173b   :  { %v3190_v11 = vpop.eup %3189  ;;  %v2608_v35 = vpop.f32.mrf.mxu1 }
0x173c   :  { %v2508_v17 = vadd.f32 1.0, %v3190_v11 }
0x173d   :  { %v2609_v56 = vpop.f32.mrf.mxu1 }
0x173e   :  { %3191 = vrcp.f32 %v2508_v17 }
0x174b   :  { %v3192_v45 = vpop.eup %3191 }
0x174c   :  { %v2511_v27 = vmul.f32 %v3192_v45, %v2500_v38  ;;  %v2514_v4 = vsub.f32 1.0, %v3192_v45  ;;  %v2520_v55 = vmul.f32 %v3192_v45, %v4032_v49 }
0x174e   :  { %v2512_v39 = vadd.f32 %v2511_v27, %v2459_v60 }
0x1750   :  { %3193 = vtanh.f32 %v2512_v39 }
0x175d   :  { %v3194_v34 = vpop.eup %3193 }
0x175e   :  { %2516 = vrot.lane.b32.xlu1 %v3194_v34, %s3319_s15 }
0x17d0   :  { %v2517_v9 = vpop.permute.xlu1 %2516 }
0x17d1   :  { %v2519_v59 = vmul.f32 %v2517_v9, %v2514_v4 }
0x17d3   :  { %v2521_v61 = vadd.f32 %v2520_v55, %v2519_v59 }
0x17d5   :  { %v2522_v58 = vpack.c.bf16 %v2521_v61, %v2521_v61 }
0x17d7   :  { %2524 = vrot.lane.b32.xlu0 %v2522_v58, %s3319_s15 }
0x1849   :  { %v2525_v2 = vpop.permute.xlu0 %2524 }
0x184a   :  { %2931 = vmatmul.mubr.msk.bf16.vlgmr.msra.gmra.mxu0 %vm635_vm0, %v2525_v2 }
0x184b   :  { %2645 = vmatpush1.bf16.msra.mxu0 %v3690_v57  ;;  %2668 = vmatprep.mubr.bf16.mxu0 %v4166_v30 }
0x184c   :  { %2646 = vmatprep.subr.bf16.mxu0 %v3696_v18 }
0x184f   :  { %2647 = vmatpush1.bf16.msra.mxu0 %v3704_v54 }
0x1850   :  { %2648 = vmatprep.subr.bf16.mxu0 %v3710_v63  ;;  %v2607_v63 = vadd.f32 %v2606_v23, %v3552_v24 }
0x1853   :  { %2649 = vmatpush1.bf16.msra.mxu0 %v3716_v26 }
0x1854   :  { %2650 = vmatprep.subr.bf16.mxu0 %v3722_v29 }
0x1857   :  { %2651 = vmatpush1.bf16.msra.mxu0 %v3728_v36 }
0x190a   :  { %v2563_v51 = vpop.f32.mrf.mxu0 }
0x190b   :  { %v2564_v49 = vadd.f32 %v2563_v51, %v3542_v32 }
0x190c   :  { %v2565_v57 = vpop.f32.mrf.mxu0 }
0x190d   :  { %v2611_v62 = vadd.f32 %v2605_v43, %v2564_v49  ;;  %v2566_v29 = vadd.f32 %v2565_v57, %v3555_v25 }
0x190e   :  { %v2567_v30 = vpop.f32.mrf.mxu0 }
0x190f   :  { %v2933_v3 = vmul.f32 -1.442695, %v2611_v62 }
0x1910   :  { %v2568_v18 = vpop.f32.mrf.mxu0 }
0x1911   :  { %3195 = vpow2.f32 %v2933_v3 }
0x191e   :  { %v3196_v54 = vpop.eup %3195 }
0x191f   :  { %v2615_v13 = vadd.f32 1.0, %v3196_v54 }
0x1921   :  { %3197 = vrcp.f32 %v2615_v13 }
0x192e   :  { %v3198_v26 = vpop.eup %3197 }
0x192f   :  { %v2618_v36 = vmul.f32 %v3198_v26, %v2607_v63  ;;  %v2621_v32 = vsub.f32 1.0, %v3198_v26  ;;  %v2627_v7 = vmul.f32 %v3198_v26, %v4053_v37 }
0x1931   :  { %v2619_v6 = vadd.f32 %v2618_v36, %v2566_v29 }
0x1933   :  { %3199 = vtanh.f32 %v2619_v6 }
0x1940   :  { %v3200_v33 = vpop.eup %3199 }
0x1941   :  { %2623 = vrot.lane.b32.xlu1 %v3200_v33, %s3319_s15 }
0x19b3   :  { %v2624_v16 = vpop.permute.xlu1 %2623 }
0x19b4   :  { %v2626_v20 = vmul.f32 %v2624_v16, %v2621_v32 }
0x19b6   :  { %v2628_v15 = vadd.f32 %v2627_v7, %v2626_v20 }
0x19b8   :  { %v2629_v14 = vpack.c.bf16 %v2628_v15, %v2628_v15 }
0x19ba   :  { %2631 = vrot.lane.b32.xlu0 %v2629_v14, %s3319_s15 }
0x1a2c   :  { %v2632_v31 = vpop.permute.xlu0 %2631 }
0x1a2d   :  { %2934 = vmatmul.mubr.msk.bf16.vlgmr.msra.gmra.mxu0 %vm635_vm0, %v2632_v31 }
0x1aed   :  { %v2670_v24 = vpop.f32.mrf.mxu0 }
0x1aee   :  { %v2671_v25 = vadd.f32 %v2670_v24, %v4173_v21 }
0x1aef   :  { %v2672_v46 = vpop.f32.mrf.mxu0 }
0x1af0   :  { %2935 = vst.sshfl [vmem:[#allocation8 + $0x8] sm:$0x3 pattern:$0x76325410] %v2671_v25  ;;  %v2673_v37 = vadd.f32 %v2672_v46, %v4174_v1 }
0x1af1   :  { %v2674_v5 = vpop.f32.mrf.mxu0 }
0x1af2   :  { %3276 = shalt.err (!%p3273_p0)
}
0x1af3   :  { %2762 = dma.vmem_to_hbm [thread:$0]  %s2760_s24, 160, %s4139_s6, [#allocation9]   ;;  %2936 = vst.sshfl [vmem:[#allocation7 + $0x8] sm:$0x3 pattern:$0x76325410] %v2673_v37  ;;  %v2675_v21 = vpop.f32.mrf.mxu0 }
0x1af4   :  { %s3285_s30 = scalar_lea.vmem %s2750_s26, 160  ;;  %p3290_p2 = scmp.lt.s32.totalorder %s2750_s26, %s2750_s26 }
0x1af5   :  { %p3286_p1 = scmp.ne.s32.totalorder %s2750_s26, %s3285_s30  ;;  %p3291_p3 = scmp.lt.s32.totalorder %s3285_s30, %s3285_s30 }
0x1af7   :  { %p3292_p4 = por %p3291_p3, %p3290_p2 }
0x1af9   :  { %p3293_p5 = pnand %p3292_p4, %p3286_p1 }
0x1afb   :  { %3296 = shalt.err (!%p3293_p5)
}
0x1afc   :  { %2752 = dma.vmem_to_hbm [thread:$0]  %s2750_s26, 160, %s4138_s5, [#allocation4]  }
0x1afd   :  { %3309 = dma.done.wait [#allocation4], 160  }
0x1afe   :  { %3310 = vsyncadd [#allocation4], 4294967136 }
0x1aff   :  { %3311 = dma.done.wait [#allocation9], 160  }
0x1b00   :  { %3312 = vsyncadd [#allocation9], 4294967136 }
0x1b01   :  { %2769 = vsyncpa [#allocation3], 1 }
0x1b02   :  { %2770 = vsyncpa [#allocation6], 1 }
0x1b03   :  { %2771 = vsyncpa [#allocation4], 1 }
0x1b04   :  { %2772 = vsyncpa [#allocation9], 1 }

</bundles_post_ra>
